<compile_context>
chip_gen: v7x
topology: tpu7x:2x2x1
jax: 0.10.0
libtpu: 0.0.40
codegen_flags: <defaults>
</compile_context>

<pallas_src>
import functools

import jax
import jax.numpy as jnp
from jax import lax
from jax.experimental import pallas as pl
from jax.experimental.pallas import tpu as pltpu

HIDDEN = 256
LN_EPS = 1e-5
LANE = 128


def _cdiv(a, b):
    return -(-a // b)


def _round_up(n, m):
    return _cdiv(n, m) * m


def _supports_single_buffer():
    """BlockSpec(pipeline_mode=pl.Buffered(1)) availability check (no device needed)."""
    if not hasattr(pl, "Buffered"):
        return False
    try:
        pl.BlockSpec((8, 128), lambda i: (0, 0), pipeline_mode=pl.Buffered(1))
        return True
    except Exception:
        return False


_HAS_SINGLE_BUFFER = _supports_single_buffer()


def _layernorm(h, gamma, beta):
    mu = jnp.mean(h, axis=-1, keepdims=True)
    var = jnp.mean((h - mu) * (h - mu), axis=-1, keepdims=True)
    return (h - mu) * lax.rsqrt(var + LN_EPS) * gamma + beta


def autoencoder_kernel(
    x_ref,
    w1_ref, b1_ref, g1_ref, be1_ref,
    wz_ref, bz_ref,
    g2_ref, be2_ref,
    w4_ref, b4_ref,
    recon_ref, z_ref,
):
    d_lat = z_ref.shape[-1]

    x = x_ref[...].astype(jnp.bfloat16)              # f32 HBM -> bf16 for MXU

    # ---- encoder ----
    h = jnp.dot(x, w1_ref[...], preferred_element_type=jnp.float32) + b1_ref[...]
    h = _layernorm(h, g1_ref[...], be1_ref[...])     # f32 math
    h = jnp.maximum(h, 0.0)

    # ---- fused latent matmul: [z | decoder pre-activation] in one MXU pass ----
    zd = jnp.dot(h.astype(jnp.bfloat16), wz_ref[...],
                 preferred_element_type=jnp.float32) + bz_ref[...]
    z = zd[:, :d_lat]                                # lane-aligned static slice
    d = zd[:, d_lat:]

    # ---- decoder ----
    d = _layernorm(d, g2_ref[...], be2_ref[...])
    d = jnp.maximum(d, 0.0)
    recon = jnp.dot(d.astype(jnp.bfloat16), w4_ref[...],
                    preferred_element_type=jnp.float32) + b4_ref[...]

    recon_ref[...] = recon.astype(recon_ref.dtype)
    z_ref[...] = z.astype(z_ref.dtype)


def prepare_params(params, *, dtype=jnp.bfloat16):
    """One-time prep: pad to lane multiples, cast weights to bf16, fuse w2/(w2@w3)."""
    input_dim = params["w1"].shape[0]
    latent_dim = params["w2"].shape[1]
    d_in = _round_up(input_dim, LANE)
    d_lat = _round_up(latent_dim, LANE)

    def pad2(a, rows, cols):
        return jnp.pad(a, ((0, rows - a.shape[0]), (0, cols - a.shape[1])))

    f32 = jnp.float32
    w1 = pad2(params["w1"].astype(f32), d_in, HIDDEN).astype(dtype)
    w4 = pad2(params["w4"].astype(f32), HIDDEN, d_in).astype(dtype)

    # Fused latent RHS (f32 product, then cast): zd = h @ [w2 | w2@w3] + [b2 | b2@w3+b3]
    w23 = params["w2"].astype(f32) @ params["w3"].astype(f32)          # [256, 256]
    wz = jnp.concatenate(
        [pad2(params["w2"].astype(f32), HIDDEN, d_lat), w23], axis=1).astype(dtype)
    b23 = params["b2"].astype(f32) @ params["w3"].astype(f32) + params["b3"].astype(f32)
    bz = jnp.concatenate([pad2(params["b2"].astype(f32), 1, d_lat), b23], axis=1)

    return dict(
        w1=w1, b1=params["b1"].astype(f32),
        g1=params["g1"].astype(f32), be1=params["be1"].astype(f32),
        wz=wz, bz=bz,
        g2=params["g2"].astype(f32), be2=params["be2"].astype(f32),
        w4=w4, b4=pad2(params["b4"].astype(f32), 1, d_in),
        input_dim=input_dim, latent_dim=latent_dim,
    )


def _choose_tiles(B, max_tile, num_cores):
    """Balanced batch tiles: minimal padding, tile count a multiple of num_cores."""
    n = max(1, _cdiv(B, max_tile))
    if num_cores > 1:
        n = _round_up(n, num_cores)
    tb = _round_up(_cdiv(B, n), 8)
    return tb, n, n * tb


def _vmem_limit_bytes(tb, d_in, d_lat):
    x_b = 2 * tb * d_in * 4                                   # f32 x, double-buffered
    out_b = 2 * tb * (d_in + d_lat) * 2                       # bf16 outs, double-buffered
    w_b = (d_in * HIDDEN + HIDDEN * (d_lat + HIDDEN) + HIDDEN * d_in) * 2  # bf16 weights
    vec_b = (2 * d_in + d_lat + 8 * HIDDEN) * 4               # biases / LN params
    live_b = tb * (d_in + d_lat + 4 * HIDDEN) * 4             # f32 intermediates (rough)
    est = x_b + out_b + w_b + vec_b + live_b
    return int(min(64 * 1024 * 1024, max(16 * 1024 * 1024, 2 * est)))


def _device_tiling_defaults():
    try:
        kind = jax.devices()[0].device_kind.lower()
    except Exception:
        kind = ""
    num_cores = 2 if "v7" in kind else 1    # >=2 parallel tiles to feed both v7x cores
    max_tile = 512                          # single big tile on 1-TC v5e/v6e
    return max_tile, num_cores


@functools.partial(
    jax.jit,
    static_argnames=("input_dim", "latent_dim", "max_tile", "num_cores", "out_dtype"))
def _forward_impl(x, prep, *, input_dim, latent_dim, max_tile, num_cores, out_dtype):
    B = x.shape[0]
    d_in = prep["w1"].shape[0]
    d_lat = prep["wz"].shape[1] - HIDDEN

    tb, n_tiles, Bp = _choose_tiles(B, max_tile, num_cores)

    xp = x
    if (Bp, d_in) != x.shape:
        xp = jnp.pad(x, ((0, Bp - B), (0, d_in - input_dim)))

    def rowmap(i):
        return (i, 0)

    def fixed(i):
        return (0, 0)

    def param_spec(a):
        if _HAS_SINGLE_BUFFER:
            return pl.BlockSpec(a.shape, fixed, pipeline_mode=pl.Buffered(1))
        return pl.BlockSpec(a.shape, fixed)

    param_keys = ("w1", "b1", "g1", "be1", "wz", "bz", "g2", "be2", "w4", "b4")
    in_specs = [pl.BlockSpec((tb, d_in), rowmap)] + [param_spec(prep[k]) for k in param_keys]
    out_specs = (
        pl.BlockSpec((tb, d_in), rowmap),     # reconstruction (padded, lane-dense)
        pl.BlockSpec((tb, d_lat), rowmap),    # latent z (padded, lane-dense)
    )
    out_shape = (
        jax.ShapeDtypeStruct((Bp, d_in), out_dtype),
        jax.ShapeDtypeStruct((Bp, d_lat), out_dtype),
    )

    out_itemsize = jnp.dtype(out_dtype).itemsize
    flops = 2 * Bp * HIDDEN * (2 * d_in + d_lat + HIDDEN)
    bytes_accessed = (
        Bp * d_in * 4                                          # x (f32 in)
        + Bp * (d_in + d_lat) * out_itemsize                   # recon + z out
        + (2 * d_in * HIDDEN + HIDDEN * (d_lat + HIDDEN)) * 2  # bf16 weights
        + (2 * d_in + d_lat + 6 * HIDDEN) * 4                  # biases / LN params
    )
    cost = pl.CostEstimate(flops=flops, transcendentals=2 * Bp,
                           bytes_accessed=int(bytes_accessed))

    recon_p, z_p = pl.pallas_call(
        autoencoder_kernel,
        out_shape=out_shape,
        grid_spec=pltpu.PrefetchScalarGridSpec(
            num_scalar_prefetch=0,
            grid=(n_tiles,),
            in_specs=in_specs,
            out_specs=out_specs,
        ),
        compiler_params=pltpu.CompilerParams(
            dimension_semantics=("parallel",),
            vmem_limit_bytes=_vmem_limit_bytes(tb, d_in, d_lat),
        ),
        cost_estimate=cost,
    )(
        xp,
        prep["w1"], prep["b1"], prep["g1"], prep["be1"],
        prep["wz"], prep["bz"], prep["g2"], prep["be2"],
        prep["w4"], prep["b4"],
    )

    # Strip batch / feature padding outside the kernel.
    return recon_p[:B, :input_dim], z_p[:B, :latent_dim]


def autoencoder_forward(x, prep, *, tile_b=None, out_dtype=jnp.bfloat16):
    max_tile, num_cores = _device_tiling_defaults()
    if tile_b is not None:
        max_tile = int(tile_b)
    arrays = {k: v for k, v in prep.items() if k not in ("input_dim", "latent_dim")}
    return _forward_impl(
        x, arrays,
        input_dim=prep["input_dim"], latent_dim=prep["latent_dim"],
        max_tile=max_tile, num_cores=num_cores, out_dtype=out_dtype)


def init_params(key, input_dim, latent_dim=32):
    """PyTorch Linear default init (U(-1/sqrt(fan_in), 1/sqrt(fan_in)));
    weights stored as [in, out] for the kernel."""
    ks = jax.random.split(key, 8)

    def lin(kw, kb, fan_in, fan_out):
        bound = 1.0 / jnp.sqrt(fan_in)
        w = jax.random.uniform(kw, (fan_in, fan_out), jnp.float32, -bound, bound)
        b = jax.random.uniform(kb, (1, fan_out), jnp.float32, -bound, bound)
        return w, b

    w1, b1 = lin(ks[0], ks[1], input_dim, HIDDEN)
    w2, b2 = lin(ks[2], ks[3], HIDDEN, latent_dim)
    w3, b3 = lin(ks[4], ks[5], latent_dim, HIDDEN)
    w4, b4 = lin(ks[6], ks[7], HIDDEN, input_dim)

    return dict(
        w1=w1, b1=b1,
        g1=jnp.ones((1, HIDDEN), jnp.float32), be1=jnp.zeros((1, HIDDEN), jnp.float32),
        w2=w2, b2=b2,
        w3=w3, b3=b3,
        g2=jnp.ones((1, HIDDEN), jnp.float32), be2=jnp.zeros((1, HIDDEN), jnp.float32),
        w4=w4, b4=b4,
    )


def reference_forward(x, p):
    """Pure-JAX f32 reference for correctness checking."""
    def ln(h, g, b):
        mu = jnp.mean(h, axis=-1, keepdims=True)
        var = jnp.mean((h - mu) ** 2, axis=-1, keepdims=True)
        return (h - mu) / jnp.sqrt(var + LN_EPS) * g + b

    h = jnp.maximum(ln(x @ p["w1"] + p["b1"], p["g1"], p["be1"]), 0.0)
    z = h @ p["w2"] + p["b2"]
    d = jnp.maximum(ln(z @ p["w3"] + p["b3"], p["g2"], p["be2"]), 0.0)
    recon = d @ p["w4"] + p["b4"]
    return recon, z


if __name__ == "__main__":
    key = jax.random.PRNGKey(0)
    k_x, k_p = jax.random.split(key)

    B = 256          # two balanced 128-row tiles on v7x, one 256-row tile on v5e/v6e
    INPUT_DIM = 128  # lane-aligned flat feature dim
    LATENT_DIM = 32  # padded to 128 inside prepare_params for lane-dense stores

    x = jax.random.normal(k_x, (B, INPUT_DIM), dtype=jnp.float32)
    params = init_params(k_p, INPUT_DIM, LATENT_DIM)

    prep = prepare_params(params)                 # one-time pad/cast/fuse of weights
    recon, z = autoencoder_forward(x, prep)       # bf16 outputs
    jax.block_until_ready((recon, z))

    recon_ref, z_ref = reference_forward(x, params)
    assert recon.shape == (B, INPUT_DIM) and z.shape == (B, LATENT_DIM)

    recon_f = recon.astype(jnp.float32)
    z_f = z.astype(jnp.float32)
    # bf16 MXU inputs (f32 accumulation) + bf16 outputs -> loose tolerances vs f32 ref.
    assert jnp.allclose(recon_f, recon_ref, atol=5e-2, rtol=5e-2), (
        float(jnp.max(jnp.abs(recon_f - recon_ref))))
    assert jnp.allclose(z_f, z_ref, atol=5e-2, rtol=5e-2), (
        float(jnp.max(jnp.abs(z_f - z_ref))))

    print("KERNEL_OK")
</pallas_src>

<mosaic_0001>
module attributes {stable_mosaic.version = 11 : i64} {
  func.func @autoencoder_kernel(%arg0: i32, %arg1: memref<256x128xf32, #tpu.memory_space<vmem>>, %arg2: memref<128x256xbf16, #tpu.memory_space<vmem>>, %arg3: memref<1x256xf32, #tpu.memory_space<vmem>>, %arg4: memref<1x256xf32, #tpu.memory_space<vmem>>, %arg5: memref<1x256xf32, #tpu.memory_space<vmem>>, %arg6: memref<256x384xbf16, #tpu.memory_space<vmem>>, %arg7: memref<1x384xf32, #tpu.memory_space<vmem>>, %arg8: memref<1x256xf32, #tpu.memory_space<vmem>>, %arg9: memref<1x256xf32, #tpu.memory_space<vmem>>, %arg10: memref<256x128xbf16, #tpu.memory_space<vmem>>, %arg11: memref<1x128xf32, #tpu.memory_space<vmem>>, %arg12: memref<256x128xbf16, #tpu.memory_space<vmem>>, %arg13: memref<256x128xbf16, #tpu.memory_space<vmem>>) attributes {dimension_semantics = [#tpu.dimension_semantics<parallel>], iteration_bounds = array<i64: 1>, scalar_prefetch = 0 : i64, scratch_operands = 0 : i64, tpu.core_type = #tpu.core_type<tc>, window_params = [{transform_indices = @transform_0, window_bounds = array<i64: 256, 128>}, {pipeline_mode = #tpu.pipeline_mode<synchronous>, transform_indices = @transform_1, window_bounds = array<i64: 128, 256>}, {pipeline_mode = #tpu.pipeline_mode<synchronous>, transform_indices = @transform_2, window_bounds = array<i64: 1, 256>}, {pipeline_mode = #tpu.pipeline_mode<synchronous>, transform_indices = @transform_3, window_bounds = array<i64: 1, 256>}, {pipeline_mode = #tpu.pipeline_mode<synchronous>, transform_indices = @transform_4, window_bounds = array<i64: 1, 256>}, {pipeline_mode = #tpu.pipeline_mode<synchronous>, transform_indices = @transform_5, window_bounds = array<i64: 256, 384>}, {pipeline_mode = #tpu.pipeline_mode<synchronous>, transform_indices = @transform_6, window_bounds = array<i64: 1, 384>}, {pipeline_mode = #tpu.pipeline_mode<synchronous>, transform_indices = @transform_7, window_bounds = array<i64: 1, 256>}, {pipeline_mode = #tpu.pipeline_mode<synchronous>, transform_indices = @transform_8, window_bounds = array<i64: 1, 256>}, {pipeline_mode = #tpu.pipeline_mode<synchronous>, transform_indices = @transform_9, window_bounds = array<i64: 256, 128>}, {pipeline_mode = #tpu.pipeline_mode<synchronous>, transform_indices = @transform_10, window_bounds = array<i64: 1, 128>}, {transform_indices = @transform_11, window_bounds = array<i64: 256, 128>}, {transform_indices = @transform_12, window_bounds = array<i64: 256, 128>}]} {
    %c0 = arith.constant 0 : index
    %c0_0 = arith.constant 0 : index
    %0 = vector.load %arg1[%c0, %c0_0] : memref<256x128xf32, #tpu.memory_space<vmem>>, vector<256x128xf32>
    %1 = arith.truncf %0 : vector<256x128xf32> to vector<256x128xbf16>
    %c0_1 = arith.constant 0 : index
    %c0_2 = arith.constant 0 : index
    %2 = vector.load %arg2[%c0_1, %c0_2] : memref<128x256xbf16, #tpu.memory_space<vmem>>, vector<128x256xbf16>
    %cst = arith.constant dense<0.000000e+00> : vector<256x256xf32>
    %3 = tpu.matmul %1, %2, %cst {dimension_numbers = #tpu.dot_dimension_numbers<[1], [0], [0], [1], [0, 0, 1, 1], [], []>} : vector<256x128xbf16>, vector<128x256xbf16>, vector<256x256xf32> -> vector<256x256xf32>
    %c0_3 = arith.constant 0 : index
    %c0_4 = arith.constant 0 : index
    %4 = vector.load %arg3[%c0_3, %c0_4] : memref<1x256xf32, #tpu.memory_space<vmem>>, vector<1x256xf32>
    %5 = vector.broadcast %4 : vector<1x256xf32> to vector<256x256xf32>
    %6 = arith.addf %3, %5 : vector<256x256xf32>
    %c0_5 = arith.constant 0 : index
    %c0_6 = arith.constant 0 : index
    %7 = vector.load %arg4[%c0_5, %c0_6] : memref<1x256xf32, #tpu.memory_space<vmem>>, vector<1x256xf32>
    %c0_7 = arith.constant 0 : index
    %c0_8 = arith.constant 0 : index
    %8 = vector.load %arg5[%c0_7, %c0_8] : memref<1x256xf32, #tpu.memory_space<vmem>>, vector<1x256xf32>
    %cst_9 = arith.constant dense<0.000000e+00> : vector<256xf32>
    %9 = vector.multi_reduction <add>, %6, %cst_9 [1] : vector<256x256xf32> to vector<256xf32>
    %10 = vector.shape_cast %9 : vector<256xf32> to vector<256x1xf32>
    %cst_10 = arith.constant 2.560000e+02 : f32
    %11 = vector.broadcast %cst_10 : f32 to vector<256x1xf32>
    %12 = arith.divf %10, %11 : vector<256x1xf32>
    %13 = vector.broadcast %12 : vector<256x1xf32> to vector<256x256xf32>
    %14 = arith.subf %6, %13 : vector<256x256xf32>
    %15 = vector.broadcast %12 : vector<256x1xf32> to vector<256x256xf32>
    %16 = arith.subf %6, %15 : vector<256x256xf32>
    %17 = arith.mulf %14, %16 : vector<256x256xf32>
    %cst_11 = arith.constant dense<0.000000e+00> : vector<256xf32>
    %18 = vector.multi_reduction <add>, %17, %cst_11 [1] : vector<256x256xf32> to vector<256xf32>
    %19 = vector.shape_cast %18 : vector<256xf32> to vector<256x1xf32>
    %cst_12 = arith.constant 2.560000e+02 : f32
    %20 = vector.broadcast %cst_12 : f32 to vector<256x1xf32>
    %21 = arith.divf %19, %20 : vector<256x1xf32>
    %22 = vector.broadcast %12 : vector<256x1xf32> to vector<256x256xf32>
    %23 = arith.subf %6, %22 : vector<256x256xf32>
    %cst_13 = arith.constant 9.99999974E-6 : f32
    %24 = vector.broadcast %cst_13 : f32 to vector<256x1xf32>
    %25 = arith.addf %21, %24 : vector<256x1xf32>
    %26 = math.rsqrt %25 : vector<256x1xf32>
    %27 = vector.broadcast %26 : vector<256x1xf32> to vector<256x256xf32>
    %28 = arith.mulf %23, %27 : vector<256x256xf32>
    %29 = vector.broadcast %7 : vector<1x256xf32> to vector<256x256xf32>
    %30 = arith.mulf %28, %29 : vector<256x256xf32>
    %31 = vector.broadcast %8 : vector<1x256xf32> to vector<256x256xf32>
    %32 = arith.addf %30, %31 : vector<256x256xf32>
    %cst_14 = arith.constant 0.000000e+00 : f32
    %33 = vector.broadcast %cst_14 : f32 to vector<256x256xf32>
    %34 = arith.maximumf %32, %33 : vector<256x256xf32>
    %35 = arith.truncf %34 : vector<256x256xf32> to vector<256x256xbf16>
    %c0_15 = arith.constant 0 : index
    %c0_16 = arith.constant 0 : index
    %36 = vector.load %arg6[%c0_15, %c0_16] : memref<256x384xbf16, #tpu.memory_space<vmem>>, vector<256x384xbf16>
    %cst_17 = arith.constant dense<0.000000e+00> : vector<256x384xf32>
    %37 = tpu.matmul %35, %36, %cst_17 {dimension_numbers = #tpu.dot_dimension_numbers<[1], [0], [0], [1], [0, 0, 1, 1], [], []>} : vector<256x256xbf16>, vector<256x384xbf16>, vector<256x384xf32> -> vector<256x384xf32>
    %c0_18 = arith.constant 0 : index
    %c0_19 = arith.constant 0 : index
    %38 = vector.load %arg7[%c0_18, %c0_19] : memref<1x384xf32, #tpu.memory_space<vmem>>, vector<1x384xf32>
    %39 = vector.broadcast %38 : vector<1x384xf32> to vector<256x384xf32>
    %40 = arith.addf %37, %39 : vector<256x384xf32>
    %41 = vector.extract_strided_slice %40 {offsets = [0, 0], sizes = [256, 128], strides = [1, 1]} : vector<256x384xf32> to vector<256x128xf32>
    %42 = vector.extract_strided_slice %40 {offsets = [0, 128], sizes = [256, 256], strides = [1, 1]} : vector<256x384xf32> to vector<256x256xf32>
    %c0_20 = arith.constant 0 : index
    %c0_21 = arith.constant 0 : index
    %43 = vector.load %arg8[%c0_20, %c0_21] : memref<1x256xf32, #tpu.memory_space<vmem>>, vector<1x256xf32>
    %c0_22 = arith.constant 0 : index
    %c0_23 = arith.constant 0 : index
    %44 = vector.load %arg9[%c0_22, %c0_23] : memref<1x256xf32, #tpu.memory_space<vmem>>, vector<1x256xf32>
    %cst_24 = arith.constant dense<0.000000e+00> : vector<256xf32>
    %45 = vector.multi_reduction <add>, %42, %cst_24 [1] : vector<256x256xf32> to vector<256xf32>
    %46 = vector.shape_cast %45 : vector<256xf32> to vector<256x1xf32>
    %cst_25 = arith.constant 2.560000e+02 : f32
    %47 = vector.broadcast %cst_25 : f32 to vector<256x1xf32>
    %48 = arith.divf %46, %47 : vector<256x1xf32>
    %49 = vector.broadcast %48 : vector<256x1xf32> to vector<256x256xf32>
    %50 = arith.subf %42, %49 : vector<256x256xf32>
    %51 = vector.broadcast %48 : vector<256x1xf32> to vector<256x256xf32>
    %52 = arith.subf %42, %51 : vector<256x256xf32>
    %53 = arith.mulf %50, %52 : vector<256x256xf32>
    %cst_26 = arith.constant dense<0.000000e+00> : vector<256xf32>
    %54 = vector.multi_reduction <add>, %53, %cst_26 [1] : vector<256x256xf32> to vector<256xf32>
    %55 = vector.shape_cast %54 : vector<256xf32> to vector<256x1xf32>
    %cst_27 = arith.constant 2.560000e+02 : f32
    %56 = vector.broadcast %cst_27 : f32 to vector<256x1xf32>
    %57 = arith.divf %55, %56 : vector<256x1xf32>
    %58 = vector.broadcast %48 : vector<256x1xf32> to vector<256x256xf32>
    %59 = arith.subf %42, %58 : vector<256x256xf32>
    %cst_28 = arith.constant 9.99999974E-6 : f32
    %60 = vector.broadcast %cst_28 : f32 to vector<256x1xf32>
    %61 = arith.addf %57, %60 : vector<256x1xf32>
    %62 = math.rsqrt %61 : vector<256x1xf32>
    %63 = vector.broadcast %62 : vector<256x1xf32> to vector<256x256xf32>
    %64 = arith.mulf %59, %63 : vector<256x256xf32>
    %65 = vector.broadcast %43 : vector<1x256xf32> to vector<256x256xf32>
    %66 = arith.mulf %64, %65 : vector<256x256xf32>
    %67 = vector.broadcast %44 : vector<1x256xf32> to vector<256x256xf32>
    %68 = arith.addf %66, %67 : vector<256x256xf32>
    %cst_29 = arith.constant 0.000000e+00 : f32
    %69 = vector.broadcast %cst_29 : f32 to vector<256x256xf32>
    %70 = arith.maximumf %68, %69 : vector<256x256xf32>
    %71 = arith.truncf %70 : vector<256x256xf32> to vector<256x256xbf16>
    %c0_30 = arith.constant 0 : index
    %c0_31 = arith.constant 0 : index
    %72 = vector.load %arg10[%c0_30, %c0_31] : memref<256x128xbf16, #tpu.memory_space<vmem>>, vector<256x128xbf16>
    %cst_32 = arith.constant dense<0.000000e+00> : vector<256x128xf32>
    %73 = tpu.matmul %71, %72, %cst_32 {dimension_numbers = #tpu.dot_dimension_numbers<[1], [0], [0], [1], [0, 0, 1, 1], [], []>} : vector<256x256xbf16>, vector<256x128xbf16>, vector<256x128xf32> -> vector<256x128xf32>
    %c0_33 = arith.constant 0 : index
    %c0_34 = arith.constant 0 : index
    %74 = vector.load %arg11[%c0_33, %c0_34] : memref<1x128xf32, #tpu.memory_space<vmem>>, vector<1x128xf32>
    %75 = vector.broadcast %74 : vector<1x128xf32> to vector<256x128xf32>
    %76 = arith.addf %73, %75 : vector<256x128xf32>
    %77 = arith.truncf %76 : vector<256x128xf32> to vector<256x128xbf16>
    %c0_35 = arith.constant 0 : index
    %c0_36 = arith.constant 0 : index
    %78 = vector.load %arg12[%c0_35, %c0_36] : memref<256x128xbf16, #tpu.memory_space<vmem>>, vector<256x128xbf16>
    tpu.vector_store %arg12[%c0_35, %c0_36], %77 {strides = array<i32>} : memref<256x128xbf16, #tpu.memory_space<vmem>>, vector<256x128xbf16>,
    %79 = arith.truncf %41 : vector<256x128xf32> to vector<256x128xbf16>
    %c0_37 = arith.constant 0 : index
    %c0_38 = arith.constant 0 : index
    %80 = vector.load %arg13[%c0_37, %c0_38] : memref<256x128xbf16, #tpu.memory_space<vmem>>, vector<256x128xbf16>
    tpu.vector_store %arg13[%c0_37, %c0_38], %79 {strides = array<i32>} : memref<256x128xbf16, #tpu.memory_space<vmem>>, vector<256x128xbf16>,
    return
  }
  func.func @transform_0(%arg0: i32) -> (i32, i32) {
    %c0_i32 = arith.constant 0 : i32
    %c0_i32_0 = arith.constant 0 : i32
    return %arg0, %c0_i32 : i32, i32
  }
  func.func @transform_1(%arg0: i32) -> (i32, i32) {
    %c0_i32 = arith.constant 0 : i32
    %c0_i32_0 = arith.constant 0 : i32
    %c0_i32_1 = arith.constant 0 : i32
    return %c0_i32, %c0_i32_0 : i32, i32
  }
  func.func @transform_2(%arg0: i32) -> (i32, i32) {
    %c0_i32 = arith.constant 0 : i32
    %c0_i32_0 = arith.constant 0 : i32
    %c0_i32_1 = arith.constant 0 : i32
    return %c0_i32, %c0_i32_0 : i32, i32
  }
  func.func @transform_3(%arg0: i32) -> (i32, i32) {
    %c0_i32 = arith.constant 0 : i32
    %c0_i32_0 = arith.constant 0 : i32
    %c0_i32_1 = arith.constant 0 : i32
    return %c0_i32, %c0_i32_0 : i32, i32
  }
  func.func @transform_4(%arg0: i32) -> (i32, i32) {
    %c0_i32 = arith.constant 0 : i32
    %c0_i32_0 = arith.constant 0 : i32
    %c0_i32_1 = arith.constant 0 : i32
    return %c0_i32, %c0_i32_0 : i32, i32
  }
  func.func @transform_5(%arg0: i32) -> (i32, i32) {
    %c0_i32 = arith.constant 0 : i32
    %c0_i32_0 = arith.constant 0 : i32
    %c0_i32_1 = arith.constant 0 : i32
    return %c0_i32, %c0_i32_0 : i32, i32
  }
  func.func @transform_6(%arg0: i32) -> (i32, i32) {
    %c0_i32 = arith.constant 0 : i32
    %c0_i32_0 = arith.constant 0 : i32
    %c0_i32_1 = arith.constant 0 : i32
    return %c0_i32, %c0_i32_0 : i32, i32
  }
  func.func @transform_7(%arg0: i32) -> (i32, i32) {
    %c0_i32 = arith.constant 0 : i32
    %c0_i32_0 = arith.constant 0 : i32
    %c0_i32_1 = arith.constant 0 : i32
    return %c0_i32, %c0_i32_0 : i32, i32
  }
  func.func @transform_8(%arg0: i32) -> (i32, i32) {
    %c0_i32 = arith.constant 0 : i32
    %c0_i32_0 = arith.constant 0 : i32
    %c0_i32_1 = arith.constant 0 : i32
    return %c0_i32, %c0_i32_0 : i32, i32
  }
  func.func @transform_9(%arg0: i32) -> (i32, i32) {
    %c0_i32 = arith.constant 0 : i32
    %c0_i32_0 = arith.constant 0 : i32
    %c0_i32_1 = arith.constant 0 : i32
    return %c0_i32, %c0_i32_0 : i32, i32
  }
  func.func @transform_10(%arg0: i32) -> (i32, i32) {
    %c0_i32 = arith.constant 0 : i32
    %c0_i32_0 = arith.constant 0 : i32
    %c0_i32_1 = arith.constant 0 : i32
    return %c0_i32, %c0_i32_0 : i32, i32
  }
  func.func @transform_11(%arg0: i32) -> (i32, i32) {
    %c0_i32 = arith.constant 0 : i32
    %c0_i32_0 = arith.constant 0 : i32
    return %arg0, %c0_i32 : i32, i32
  }
  func.func @transform_12(%arg0: i32) -> (i32, i32) {
    %c0_i32 = arith.constant 0 : i32
    %c0_i32_0 = arith.constant 0 : i32
    return %arg0, %c0_i32 : i32, i32
  }
}

</mosaic_0001>

<bundles_post_ra>
// kernel: _forward_impl.1
= control target key start
LH: loop header
LB: loop body
LE: loop exit
PB: predicated region body
PF: predicated region fallthrough
CT: control target
= control target key end

     0   :  { %18 = vsyncpa [#allocation3], 0  ;;  %s6323_s0 = inlined_call_operand.hbm [shape: f32[256,128], index: 0, kind: input, shape index: {}]   ;;  %s6324_s1 = inlined_call_operand.hbm [shape: bf16[128,256], index: 1, kind: input, shape index: {}]   ;;  %s6325_s2 = inlined_call_operand.vmem [shape: f32[1,256], index: 2, kind: input, shape index: {}]   ;;  %s6326_s3 = inlined_call_operand.vmem [shape: f32[1,256], index: 3, kind: input, shape index: {}]   ;;  %s6327_s4 = inlined_call_operand.vmem [shape: f32[1,256], index: 4, kind: input, shape index: {}]   ;;  %s6328_s5 = inlined_call_operand.hbm [shape: bf16[256,384], index: 5, kind: input, shape index: {}]   ;;  %s6329_s6 = inlined_call_operand.vmem [shape: f32[1,384], index: 6, kind: input, shape index: {}]   ;;  %s6330_s7 = inlined_call_operand.vmem [shape: f32[1,256], index: 7, kind: input, shape index: {}]   ;;  %s6331_s8 = inlined_call_operand.vmem [shape: f32[1,256], index: 8, kind: input, shape index: {}]   ;;  %s6332_s9 = inlined_call_operand.hbm [shape: bf16[256,128], index: 9, kind: input, shape index: {}]   ;;  %s6333_s10 = inlined_call_operand.hbm [shape: f32[1,128], index: 10, kind: input, shape index: {}]   ;;  %s6334_s11 = inlined_call_operand.hbm [shape: bf16[256,128], index: 11, kind: output, shape index: {0}]   ;;  %s6335_s12 = inlined_call_operand.vmem [shape: bf16[256,128], index: 12, kind: output, shape index: {1}]  }
   0x1   :  { %19 = vsyncpa [#allocation6], 0 }
   0x2   :  { %20 = vsyncpa [#allocation9], 0 }
   0x3   :  { %21 = vsyncpa [#allocation4], 0  ;;  %s4332_s21 = smov [#allocation5]   ;;  %s4333_s23 = smov [#allocation8]  }
   0x4   :  { %s39_s22 = sshll.u32 %s4332_s21, 4  ;;  %s75_s24 = sshll.u32 %s4333_s23, 4  ;;  %s40_s22 = int_to_ptr.vmem [resolvable:$true] %s39_s22  ;;  %s4410_s24 = int_to_ptr.vmem [resolvable:$true] %s75_s24 }
   0x5   :  { %s4192_s27 = scalar_lea.hbm %s6324_s1, 2048 }
   0x6   :  { %p4193_p0 = scmp.ne.s32.totalorder %s6324_s1, %s4192_s27  ;;  %p4196_p1 = scmp.lt.u32.totalorder %s4192_s27, %s6324_s1 }
   0x8   :  { %p4198_p2 = pnand %p4196_p1, %p4193_p0 }
   0xa   :  { %4201 = shalt.err (!%p4198_p2)
}
   0xb   :  { %s4202_s14 = scalar_lea.vmem %s40_s22, 2048  ;;  %p4207_p4 = scmp.lt.s32.totalorder %s40_s22, %s40_s22 }
   0xc   :  { %p4203_p3 = scmp.ne.s32.totalorder %s40_s22, %s4202_s14  ;;  %p4208_p5 = scmp.lt.s32.totalorder %s4202_s14, %s4202_s14 }
   0xe   :  { %p4209_p6 = por %p4208_p5, %p4207_p4 }
  0x10   :  { %p4210_p7 = pnand %p4209_p6, %p4203_p3 }
  0x12   :  { %4213 = shalt.err (!%p4210_p7)
}
  0x13   :  { %s4334_s15 = smov 128   ;;  %s4335_s16 = smov 8  }
  0x14   :  { %45 = dma.hbm_to_vmem [thread:$0]  %s6324_s1, 2048, %s40_s22, [#allocation6], %s4334_s15, %s4334_s15, %s4335_s16  }
  0x15   :  { %s4214_s21 = scalar_lea.hbm %s6332_s9, 2048 }
  0x16   :  { %p4215_p8 = scmp.ne.s32.totalorder %s6332_s9, %s4214_s21  ;;  %p4218_p9 = scmp.lt.u32.totalorder %s4214_s21, %s6332_s9 }
  0x18   :  { %p4220_p10 = pnand %p4218_p9, %p4215_p8 }
  0x1a   :  { %4223 = shalt.err (!%p4220_p10)
}
  0x1b   :  { %s4224_s28 = scalar_lea.vmem %s4410_s24, 2048  ;;  %p4229_p12 = scmp.lt.s32.totalorder %s4410_s24, %s4410_s24 }
  0x1c   :  { %p4225_p11 = scmp.ne.s32.totalorder %s4410_s24, %s4224_s28  ;;  %p4230_p13 = scmp.lt.s32.totalorder %s4224_s28, %s4224_s28 }
  0x1e   :  { %p4231_p0 = por %p4230_p13, %p4229_p12 }
  0x20   :  { %p4232_p1 = pnand %p4231_p0, %p4225_p11 }
  0x22   :  { %4235 = shalt.err (!%p4232_p1)
}
  0x23   :  { %s4336_s1 = smov 64   ;;  %s4337_s22 = smov 4  }
  0x24   :  { %81 = dma.hbm_to_vmem [thread:$0]  %s6332_s9, 2048, %s4410_s24, [#allocation9], %s4336_s1, %s4336_s1, %s4337_s22  }
  0x25   :  { %s4338_s13 = smov [#allocation2]   ;;  %s4339_s17 = smov [#allocation7]  }
  0x26   :  { %s27_s14 = sshll.u32 %s4338_s13, 4  ;;  %s57_s18 = sshll.u32 %s4339_s17, 4  ;;  %s28_s14 = int_to_ptr.vmem [resolvable:$true] %s27_s14  ;;  %s4447_s18 = int_to_ptr.vmem [resolvable:$true] %s57_s18 }
  0x27   :  { %s4236_s21 = scalar_lea.hbm %s6323_s0, 4096 }
  0x28   :  { %p4237_p2 = scmp.ne.s32.totalorder %s6323_s0, %s4236_s21  ;;  %p4240_p3 = scmp.lt.u32.totalorder %s4236_s21, %s6323_s0 }
  0x2a   :  { %p4242_p4 = pnand %p4240_p3, %p4237_p2 }
  0x2c   :  { %4245 = shalt.err (!%p4242_p4)
}
  0x2d   :  { %s4246_s9 = scalar_lea.vmem %s28_s14, 4096  ;;  %p4251_p6 = scmp.lt.s32.totalorder %s28_s14, %s28_s14 }
  0x2e   :  { %p4247_p5 = scmp.ne.s32.totalorder %s28_s14, %s4246_s9  ;;  %p4252_p7 = scmp.lt.s32.totalorder %s4246_s9, %s4246_s9 }
  0x30   :  { %p4253_p8 = por %p4252_p7, %p4251_p6 }
  0x32   :  { %p4254_p9 = pnand %p4253_p8, %p4247_p5 }
  0x34   :  { %4257 = shalt.err (!%p4254_p9)
}
  0x35   :  { %33 = dma.hbm_to_vmem [thread:$0]  %s6323_s0, 4096, %s28_s14, [#allocation3], %s4334_s15, %s4334_s15, %s4335_s16  }
  0x36   :  { %s4258_s13 = scalar_lea.hbm %s6328_s5, 6144 }
  0x37   :  { %p4259_p10 = scmp.ne.s32.totalorder %s6328_s5, %s4258_s13  ;;  %p4262_p11 = scmp.lt.u32.totalorder %s4258_s13, %s6328_s5 }
  0x39   :  { %p4264_p12 = pnand %p4262_p11, %p4259_p10 }
  0x3b   :  { %4267 = shalt.err (!%p4264_p12)
}
  0x3c   :  { %s4268_s23 = scalar_lea.vmem %s4447_s18, 6144  ;;  %p4273_p0 = scmp.lt.s32.totalorder %s4447_s18, %s4447_s18 }
  0x3d   :  { %p4269_p13 = scmp.ne.s32.totalorder %s4447_s18, %s4268_s23  ;;  %p4274_p1 = scmp.lt.s32.totalorder %s4268_s23, %s4268_s23 }
  0x3f   :  { %p4275_p2 = por %p4274_p1, %p4273_p0 }
  0x41   :  { %p4276_p3 = pnand %p4275_p2, %p4269_p13 }
  0x43   :  { %4279 = shalt.err (!%p4276_p3)
}
  0x44   :  { %s4340_s0 = smov 192   ;;  %s4341_s15 = smov 12  }
  0x45   :  { %63 = dma.hbm_to_vmem [thread:$0]  %s6328_s5, 6144, %s4447_s18, [#allocation6], %s4340_s0, %s4340_s0, %s4341_s15  }
  0x46   :  { %s4342_s25 = smov [#allocation10]   ;;  %s4280_s24 = scalar_lea.hbm %s6333_s10, 16 }
  0x47   :  { %s88_s26 = sshll.u32 %s4342_s25, 4  ;;  %p4281_p4 = scmp.ne.s32.totalorder %s6333_s10, %s4280_s24  ;;  %s89_s26 = int_to_ptr.vmem [resolvable:$true] %s88_s26 }
  0x48   :  { %p4284_p5 = scmp.lt.u32.totalorder %s4280_s24, %s6333_s10 }
  0x4a   :  { %p4286_p6 = pnand %p4284_p5, %p4281_p4 }
  0x4c   :  { %4289 = shalt.err (!%p4286_p6)
}
  0x4d   :  { %s4290_s17 = scalar_lea.vmem %s89_s26, 16  ;;  %s4294_s5 = scalar_lea.vmem %s89_s26, 32 }
  0x4e   :  { %p4291_p7 = scmp.ne.s32.totalorder %s89_s26, %s4290_s17  ;;  %p4295_p8 = scmp.lt.s32.totalorder %s89_s26, %s89_s26 }
  0x4f   :  { %p4296_p9 = scmp.lt.s32.totalorder %s4294_s5, %s4290_s17 }
  0x51   :  { %p4297_p10 = por %p4296_p9, %p4295_p8 }
  0x53   :  { %p4298_p11 = pnand %p4297_p10, %p4291_p7 }
  0x55   :  { %4301 = shalt.err (!%p4298_p11)
}
  0x56   :  { %91 = dma.hbm_to_vmem [thread:$0]  %s6333_s10, 16, %s89_s26, [#allocation9]  }
  0x57   :  { %4324 = dma.done.wait [#allocation3], 4096  }
  0x58   :  { %4325 = vsyncadd [#allocation3], 4294963200 }
  0x59   :  { %4326 = dma.done.wait [#allocation6], 8192  }
  0x5a   :  { %4327 = vsyncadd [#allocation6], 4294959104 }
  0x5b   :  { %4328 = dma.done.wait [#allocation9], 2064  }
  0x5c   :  { %4329 = vsyncadd [#allocation9], 4294965232  ;;  %v4343_v0 = vmov 0   ;;  %v3960_v1 = vld [vmem:[#allocation5 + $0x4] ss:$8 sps:$4 sm:$0xff]   ;;  %v110_v20 = vld [vmem:[#allocation2 + $0x10] sm:$0xff] }
  0x5d   :  { %296 = vmatprep.mubr.bf16.mxu0 %v4343_v0  ;;  %v3962_v2 = vld [vmem:[#allocation5] ss:$8 sps:$4 sm:$0xff]   ;;  %264 = vmatprep.subr.bf16.mxu0 %v3960_v1  ;;  %v3963_v3 = vld [vmem:[#allocation5 + $0x14] ss:$8 sps:$4 sm:$0xff]   ;;  %v3965_v4 = vld [vmem:[#allocation5 + $0x10] ss:$8 sps:$4 sm:$0xff]  }
  0x5e   :  { %265 = vmatpush1.bf16.msra.mxu0 %v3962_v2  ;;  %v3966_v5 = vld [vmem:[#allocation5 + $0x24] ss:$8 sps:$4 sm:$0xff]   ;;  %v3968_v6 = vld [vmem:[#allocation5 + $0x20] ss:$8 sps:$4 sm:$0xff]   ;;  %v3969_v7 = vld [vmem:[#allocation5 + $0x34] ss:$8 sps:$4 sm:$0xff]   ;;  %v174_v2 = vlaneseq }
  0x5f   :  { %266 = vmatprep.subr.bf16.mxu0 %v3963_v3  ;;  %v3971_v8 = vld [vmem:[#allocation5 + $0x30] ss:$8 sps:$4 sm:$0xff]   ;;  %v3972_v9 = vld [vmem:[#allocation5 + $0x44] ss:$8 sps:$4 sm:$0xff]   ;;  %v3974_v10 = vld [vmem:[#allocation5 + $0x40] ss:$8 sps:$4 sm:$0xff]  }
  0x60   :  { %v3975_v11 = vld [vmem:[#allocation5 + $0x54] ss:$8 sps:$4 sm:$0xff]   ;;  %v3977_v12 = vld [vmem:[#allocation5 + $0x50] ss:$8 sps:$4 sm:$0xff]   ;;  %v3978_v13 = vld [vmem:[#allocation5 + $0x64] ss:$8 sps:$4 sm:$0xff]  }
  0x61   :  { %v3980_v14 = vld [vmem:[#allocation5 + $0x60] ss:$8 sps:$4 sm:$0xff]   ;;  %v3981_v15 = vld [vmem:[#allocation5 + $0x74] ss:$8 sps:$4 sm:$0xff]   ;;  %v3983_v16 = vld [vmem:[#allocation5 + $0x70] ss:$8 sps:$4 sm:$0xff]  }
  0x62   :  { %267 = vmatpush1.bf16.msra.mxu0 %v3965_v4  ;;  %v108_v17 = vld [vmem:[#allocation2] sm:$0xff]  ;;  %v109_v18 = vld [vmem:[#allocation2 + $0x8] sm:$0xff]  ;;  %v111_v21 = vld [vmem:[#allocation2 + $0x18] sm:$0xff]  ;;  %v4509_v3 = vshrl.u32 %v174_v2, 7 }
  0x63   :  { %268 = vmatprep.subr.bf16.mxu0 %v3966_v5  ;;  %v140_v19 = vpack.c.bf16 %v109_v18, %v108_v17  ;;  %v141_v22 = vpack.c.bf16 %v111_v21, %v110_v20  ;;  %v112_v23 = vld [vmem:[#allocation2 + $0x20] sm:$0xff]  ;;  %v113_v24 = vld [vmem:[#allocation2 + $0x28] sm:$0xff]  ;;  %v114_v26 = vld [vmem:[#allocation2 + $0x30] sm:$0xff] }
  0x64   :  { %v142_v25 = vpack.c.bf16 %v113_v24, %v112_v23  ;;  %v115_v27 = vld [vmem:[#allocation2 + $0x38] sm:$0xff]  ;;  %v116_v29 = vld [vmem:[#allocation2 + $0x40] sm:$0xff]  ;;  %v117_v30 = vld [vmem:[#allocation2 + $0x48] sm:$0xff]  ;;  %6422 = vst [vmem:[#allocation16_spill] sm:$0xff] %v4509_v3  ;;  %v4512_v4 = vsub.s32 0, %v4509_v3 }
  0x65   :  { %v143_v28 = vpack.c.bf16 %v115_v27, %v114_v26  ;;  %v144_v31 = vpack.c.bf16 %v117_v30, %v116_v29  ;;  %v118_v32 = vld [vmem:[#allocation2 + $0x50] sm:$0xff]  ;;  %v119_v33 = vld [vmem:[#allocation2 + $0x58] sm:$0xff]  ;;  %v120_v35 = vld [vmem:[#allocation2 + $0x60] sm:$0xff] }
  0x66   :  { %269 = vmatpush1.bf16.msra.mxu0 %v3968_v6  ;;  %v145_v34 = vpack.c.bf16 %v119_v33, %v118_v32  ;;  %v121_v36 = vld [vmem:[#allocation2 + $0x68] sm:$0xff]  ;;  %v122_v38 = vld [vmem:[#allocation2 + $0x70] sm:$0xff]  ;;  %v123_v39 = vld [vmem:[#allocation2 + $0x78] sm:$0xff]  ;;  %6423 = vst [vmem:[#allocation17_spill] sm:$0xff] %v4512_v4  ;;  %v4518_v6 = vsub.s32 1, %v4509_v3 }
  0x67   :  { %270 = vmatprep.subr.bf16.mxu0 %v3969_v7  ;;  %v146_v37 = vpack.c.bf16 %v121_v36, %v120_v35  ;;  %v147_v40 = vpack.c.bf16 %v123_v39, %v122_v38  ;;  %v124_v41 = vld [vmem:[#allocation2 + $0x80] sm:$0xff]  ;;  %v125_v42 = vld [vmem:[#allocation2 + $0x88] sm:$0xff]  ;;  %v126_v44 = vld [vmem:[#allocation2 + $0x90] sm:$0xff] }
  0x68   :  { %v148_v43 = vpack.c.bf16 %v125_v42, %v124_v41  ;;  %v127_v45 = vld [vmem:[#allocation2 + $0x98] sm:$0xff]  ;;  %v128_v47 = vld [vmem:[#allocation2 + $0xa0] sm:$0xff]  ;;  %v129_v48 = vld [vmem:[#allocation2 + $0xa8] sm:$0xff]  ;;  %6424 = vst [vmem:[#allocation18_spill] sm:$0xff] %v4518_v6 }
  0x69   :  { %v149_v46 = vpack.c.bf16 %v127_v45, %v126_v44  ;;  %v150_v49 = vpack.c.bf16 %v129_v48, %v128_v47  ;;  %v130_v50 = vld [vmem:[#allocation2 + $0xb0] sm:$0xff]  ;;  %v131_v51 = vld [vmem:[#allocation2 + $0xb8] sm:$0xff]  ;;  %v132_v53 = vld [vmem:[#allocation2 + $0xc0] sm:$0xff] }
  0x6a   :  { %271 = vmatpush1.bf16.msra.mxu0 %v3971_v8  ;;  %v151_v52 = vpack.c.bf16 %v131_v51, %v130_v50  ;;  %v133_v54 = vld [vmem:[#allocation2 + $0xc8] sm:$0xff]  ;;  %v134_v56 = vld [vmem:[#allocation2 + $0xd0] sm:$0xff]  ;;  %v135_v57 = vld [vmem:[#allocation2 + $0xd8] sm:$0xff] }
  0x6b   :  { %272 = vmatprep.subr.bf16.mxu0 %v3972_v9  ;;  %v152_v55 = vpack.c.bf16 %v133_v54, %v132_v53  ;;  %v153_v58 = vpack.c.bf16 %v135_v57, %v134_v56  ;;  %v136_v59 = vld [vmem:[#allocation2 + $0xe0] sm:$0xff]  ;;  %v137_v60 = vld [vmem:[#allocation2 + $0xe8] sm:$0xff]  ;;  %v138_v62 = vld [vmem:[#allocation2 + $0xf0] sm:$0xff] }
  0x6c   :  { %v154_v61 = vpack.c.bf16 %v137_v60, %v136_v59  ;;  %v139_v63 = vld [vmem:[#allocation2 + $0xf8] sm:$0xff]  ;;  %v172_v5 = vld [vmem:[%s6325_s2] sm:$0x3] }
  0x6d   :  { %v155_v1 = vpack.c.bf16 %v139_v63, %v138_v62  ;;  %v4521_v7 = vrot.slane %v172_v5, %v4512_v4  ;;  %v3989_v3 = vld [vmem:[#allocation7 + $0x38] ss:$12 sps:$4 sm:$0xff]  }
  0x6e   :  { %273 = vmatpush1.bf16.msra.mxu0 %v3974_v10  ;;  %v3992_v4 = vld [vmem:[#allocation7 + $0x4] ss:$12 sps:$4 sm:$0xff]  }
  0x6f   :  { %274 = vmatprep.subr.bf16.mxu0 %v3975_v11  ;;  %1555 = vmatprep.subr.bf16.mxu1 %v3992_v4 }
  0x72   :  { %275 = vmatpush1.bf16.msra.mxu0 %v3977_v12 }
  0x73   :  { %276 = vmatprep.subr.bf16.mxu0 %v3978_v13 }
  0x76   :  { %277 = vmatpush1.bf16.msra.mxu0 %v3980_v14 }
  0x77   :  { %278 = vmatprep.subr.bf16.mxu0 %v3981_v15 }
  0x7a   :  { %279 = vmatpush1.bf16.msra.mxu0 %v3983_v16 }
  0x7d   :  { %297 = vmatmul.mubr.bf16.vlgmr.msra.gmra.mrb[0].mxu0 %v140_v19 }
  0x7e   :  { %306 = vmatprep.mubr.bf16.mxu0 %v4343_v0 }
  0x85   :  { %307 = vmatmul.mubr.bf16.gmra.mrb[4].mxu0 %v141_v22 }
  0x86   :  { %316 = vmatprep.mubr.bf16.mxu0 %v4343_v0 }
  0x8d   :  { %317 = vmatmul.mubr.bf16.gmra.mrb[8].mxu0 %v142_v25 }
  0x8e   :  { %326 = vmatprep.mubr.bf16.mxu0 %v4343_v0 }
  0x95   :  { %327 = vmatmul.mubr.bf16.gmra.mrb[12].mxu0 %v143_v28 }
  0x96   :  { %336 = vmatprep.mubr.bf16.mxu0 %v4343_v0 }
  0x9d   :  { %337 = vmatmul.mubr.bf16.gmra.mrb[16].mxu0 %v144_v31 }
  0x9e   :  { %346 = vmatprep.mubr.bf16.mxu0 %v4343_v0 }
  0xa5   :  { %347 = vmatmul.mubr.bf16.gmra.mrb[20].mxu0 %v145_v34 }
  0xa6   :  { %356 = vmatprep.mubr.bf16.mxu0 %v4343_v0 }
  0xad   :  { %357 = vmatmul.mubr.bf16.gmra.mrb[24].mxu0 %v146_v37 }
  0xae   :  { %366 = vmatprep.mubr.bf16.mxu0 %v4343_v0 }
  0xb5   :  { %367 = vmatmul.mubr.bf16.gmra.mrb[28].mxu0 %v147_v40 }
  0xb6   :  { %376 = vmatprep.mubr.bf16.mxu0 %v4343_v0 }
  0xbd   :  { %377 = vmatmul.mubr.bf16.gmra.mrb[32].mxu0 %v148_v43 }
  0xbe   :  { %386 = vmatprep.mubr.bf16.mxu0 %v4343_v0 }
  0xc5   :  { %387 = vmatmul.mubr.bf16.gmra.mrb[36].mxu0 %v149_v46 }
  0xc6   :  { %396 = vmatprep.mubr.bf16.mxu0 %v4343_v0 }
  0xcd   :  { %397 = vmatmul.mubr.bf16.gmra.mrb[40].mxu0 %v150_v49 }
  0xce   :  { %406 = vmatprep.mubr.bf16.mxu0 %v4343_v0 }
  0xd5   :  { %407 = vmatmul.mubr.bf16.gmra.mrb[44].mxu0 %v151_v52 }
  0xd6   :  { %416 = vmatprep.mubr.bf16.mxu0 %v4343_v0 }
  0xdd   :  { %417 = vmatmul.mubr.bf16.gmra.mrb[48].mxu0 %v152_v55 }
  0xde   :  { %426 = vmatprep.mubr.bf16.mxu0 %v4343_v0 }
  0xe5   :  { %427 = vmatmul.mubr.bf16.gmra.mrb[52].mxu0 %v153_v58 }
  0xe6   :  { %436 = vmatprep.mubr.bf16.mxu0 %v4343_v0 }
  0xed   :  { %437 = vmatmul.mubr.bf16.gmra.mrb[56].mxu0 %v154_v61 }
  0xee   :  { %446 = vmatprep.mubr.bf16.mxu0 %v4343_v0  ;;  %v4524_v0 = vrot.slane %v172_v5, %v4518_v6  ;;  %v3990_v6 = vld [vmem:[#allocation7 + $0x110] ss:$12 sps:$4 sm:$0xff]  }
  0xf5   :  { %447 = vmatmul.mubr.bf16.gmra.mrb[60].mxu0 %v155_v1 }
 0x150   :  { %v298_v8 = vpop.f32.mrb[0].mxu0 }
 0x151   :  { %v4527_v9 = vadd.f32 %v298_v8, %v4521_v7  ;;  %v300_v10 = vpop.f32.mrb[1].mxu0 }
 0x152   :  { %v4530_v11 = vadd.f32 %v300_v10, %v4524_v0  ;;  %v302_v12 = vpop.f32.mrb[2].mxu0 }
 0x153   :  { %v304_v13 = vpop.f32.mrb[3].mxu0  ;;  %v4533_v14 = vadd.f32 %v302_v12, %v4521_v7 }
 0x154   :  { %v4536_v15 = vadd.f32 %v304_v13, %v4524_v0  ;;  %v459_v16 = vadd.f32 %v4530_v11, %v4527_v9 }
 0x156   :  { %460 = vadd.xlane.f32.xlu0 %v459_v16  ;;  %v462_v18 = vadd.f32 %v4536_v15, %v4533_v14 }
 0x158   :  { %v308_v17 = vpop.f32.mrb[4].mxu0 }
 0x159   :  { %v4543_v19 = vadd.f32 %v308_v17, %v4521_v7  ;;  %v310_v20 = vpop.f32.mrb[5].mxu0 }
 0x15a   :  { %v4546_v21 = vadd.f32 %v310_v20, %v4524_v0  ;;  %v312_v22 = vpop.f32.mrb[6].mxu0  ;;  %463 = vadd.xlane.f32.xlu0 %v462_v18 }
 0x15b   :  { %v314_v23 = vpop.f32.mrb[7].mxu0  ;;  %v4549_v24 = vadd.f32 %v312_v22, %v4521_v7 }
 0x15c   :  { %v4552_v25 = vadd.f32 %v314_v23, %v4524_v0  ;;  %v465_v26 = vadd.f32 %v4546_v21, %v4543_v19 }
 0x15e   :  { %466 = vadd.xlane.f32.xlu1 %v465_v26  ;;  %v468_v28 = vadd.f32 %v4552_v25, %v4549_v24 }
 0x160   :  { %v318_v27 = vpop.f32.mrb[8].mxu0 }
 0x161   :  { %v4559_v29 = vadd.f32 %v318_v27, %v4521_v7  ;;  %v320_v30 = vpop.f32.mrb[9].mxu0 }
 0x162   :  { %v4562_v31 = vadd.f32 %v320_v30, %v4524_v0  ;;  %v322_v32 = vpop.f32.mrb[10].mxu0  ;;  %469 = vadd.xlane.f32.xlu1 %v468_v28 }
 0x163   :  { %v4565_v33 = vadd.f32 %v322_v32, %v4521_v7  ;;  %v324_v34 = vpop.f32.mrb[11].mxu0 }
 0x164   :  { %v4568_v35 = vadd.f32 %v324_v34, %v4524_v0  ;;  %v471_v36 = vadd.f32 %v4562_v31, %v4559_v29 }
 0x166   :  { %472 = vadd.xlane.f32.xlu0 %v471_v36  ;;  %v474_v37 = vadd.f32 %v4568_v35, %v4565_v33 }
 0x168   :  { %v328_v38 = vpop.f32.mrb[12].mxu0  ;;  %475 = vadd.xlane.f32.xlu1 %v474_v37 }
 0x169   :  { %v4575_v39 = vadd.f32 %v328_v38, %v4521_v7  ;;  %v330_v40 = vpop.f32.mrb[13].mxu0 }
 0x16a   :  { %v4578_v41 = vadd.f32 %v330_v40, %v4524_v0  ;;  %v332_v42 = vpop.f32.mrb[14].mxu0 }
 0x16b   :  { %v4581_v43 = vadd.f32 %v332_v42, %v4521_v7  ;;  %v334_v44 = vpop.f32.mrb[15].mxu0 }
 0x16c   :  { %v4584_v45 = vadd.f32 %v334_v44, %v4524_v0  ;;  %v477_v46 = vadd.f32 %v4578_v41, %v4575_v39 }
 0x16e   :  { %478 = vadd.xlane.f32.xlu0 %v477_v46  ;;  %v480_v47 = vadd.f32 %v4584_v45, %v4581_v43 }
 0x170   :  { %v338_v48 = vpop.f32.mrb[16].mxu0  ;;  %481 = vadd.xlane.f32.xlu1 %v480_v47 }
 0x171   :  { %v4591_v49 = vadd.f32 %v338_v48, %v4521_v7  ;;  %v340_v50 = vpop.f32.mrb[17].mxu0 }
 0x172   :  { %v4594_v51 = vadd.f32 %v340_v50, %v4524_v0  ;;  %v342_v52 = vpop.f32.mrb[18].mxu0 }
 0x173   :  { %v4597_v53 = vadd.f32 %v342_v52, %v4521_v7  ;;  %v344_v54 = vpop.f32.mrb[19].mxu0 }
 0x174   :  { %v4600_v55 = vadd.f32 %v344_v54, %v4524_v0  ;;  %v483_v56 = vadd.f32 %v4594_v51, %v4591_v49 }
 0x176   :  { %484 = vadd.xlane.f32.xlu0 %v483_v56  ;;  %v486_v57 = vadd.f32 %v4600_v55, %v4597_v53 }
 0x178   :  { %v348_v58 = vpop.f32.mrb[20].mxu0  ;;  %487 = vadd.xlane.f32.xlu1 %v486_v57 }
 0x179   :  { %v4607_v59 = vadd.f32 %v348_v58, %v4521_v7  ;;  %v350_v60 = vpop.f32.mrb[21].mxu0 }
 0x17a   :  { %v4610_v61 = vadd.f32 %v350_v60, %v4524_v0  ;;  %v352_v62 = vpop.f32.mrb[22].mxu0 }
 0x17b   :  { %v4613_v63 = vadd.f32 %v352_v62, %v4521_v7  ;;  %v354_v1 = vpop.f32.mrb[23].mxu0 }
 0x17c   :  { %v4616_v2 = vadd.f32 %v354_v1, %v4524_v0  ;;  %v489_v5 = vadd.f32 %v4610_v61, %v4607_v59 }
 0x17e   :  { %490 = vadd.xlane.f32.xlu0 %v489_v5  ;;  %v492_v8 = vadd.f32 %v4616_v2, %v4613_v63 }
 0x180   :  { %v358_v10 = vpop.f32.mrb[24].mxu0  ;;  %493 = vadd.xlane.f32.xlu1 %v492_v8 }
 0x181   :  { %v4623_v12 = vadd.f32 %v358_v10, %v4521_v7  ;;  %v360_v13 = vpop.f32.mrb[25].mxu0 }
 0x182   :  { %v4626_v16 = vadd.f32 %v360_v13, %v4524_v0  ;;  %v362_v17 = vpop.f32.mrb[26].mxu0 }
 0x183   :  { %v4629_v18 = vadd.f32 %v362_v17, %v4521_v7  ;;  %v364_v20 = vpop.f32.mrb[27].mxu0 }
 0x184   :  { %v4632_v22 = vadd.f32 %v364_v20, %v4524_v0  ;;  %v495_v23 = vadd.f32 %v4626_v16, %v4623_v12 }
 0x186   :  { %496 = vadd.xlane.f32.xlu0 %v495_v23  ;;  %v498_v26 = vadd.f32 %v4632_v22, %v4629_v18 }
 0x188   :  { %v368_v27 = vpop.f32.mrb[28].mxu0  ;;  %499 = vadd.xlane.f32.xlu1 %v498_v26 }
 0x189   :  { %v4639_v28 = vadd.f32 %v368_v27, %v4521_v7  ;;  %v370_v30 = vpop.f32.mrb[29].mxu0  ;;  %v3984_v27 = vld [vmem:[#allocation7 + $0xc8] ss:$12 sps:$4 sm:$0xff]  }
 0x18a   :  { %v4642_v32 = vadd.f32 %v370_v30, %v4524_v0  ;;  %v372_v34 = vpop.f32.mrb[30].mxu0  ;;  %v3985_v30 = vld [vmem:[#allocation7 + $0x8] ss:$12 sps:$4 sm:$0xff]   ;;  %3707 = vmatprep.subr.bf16.mxu0 %v3984_v27 }
 0x18b   :  { %v4645_v36 = vadd.f32 %v372_v34, %v4521_v7  ;;  %v374_v37 = vpop.f32.mrb[31].mxu0  ;;  %3708 = vmatpush3.bf16.msra.mxu0 %v3985_v30 }
 0x18c   :  { %v4648_v38 = vadd.f32 %v374_v37, %v4524_v0  ;;  %v501_v40 = vadd.f32 %v4642_v32, %v4639_v28 }
 0x18d   :  { %6425 = vst [vmem:[#allocation19_spill] sm:$0xff] %v4645_v36 }
 0x18e   :  { %6426 = vst [vmem:[#allocation20_spill] sm:$0xff] %v4648_v38  ;;  %502 = vadd.xlane.f32.xlu0 %v501_v40  ;;  %v504_v42 = vadd.f32 %v4648_v38, %v4645_v36  ;;  %v4013_v38 = vld [vmem:[#allocation7 + $0x94] ss:$12 sps:$4 sm:$0xff]   ;;  %v4017_v36 = vld [vmem:[#allocation7 + $0xac] ss:$12 sps:$4 sm:$0xff]  }
 0x190   :  { %v378_v44 = vpop.f32.mrb[32].mxu0  ;;  %505 = vadd.xlane.f32.xlu1 %v504_v42 }
 0x191   :  { %v4655_v46 = vadd.f32 %v378_v44, %v4521_v7  ;;  %v380_v47 = vpop.f32.mrb[33].mxu0 }
 0x192   :  { %v4658_v48 = vadd.f32 %v380_v47, %v4524_v0  ;;  %v382_v50 = vpop.f32.mrb[34].mxu0 }
 0x193   :  { %6427 = vst [vmem:[#allocation21_spill] sm:$0xff] %v4655_v46  ;;  %v4661_v52 = vadd.f32 %v382_v50, %v4521_v7  ;;  %v384_v54 = vpop.f32.mrb[35].mxu0 }
 0x194   :  { %6428 = vst [vmem:[#allocation22_spill] sm:$0xff] %v4658_v48  ;;  %v4664_v56 = vadd.f32 %v384_v54, %v4524_v0  ;;  %v507_v57 = vadd.f32 %v4658_v48, %v4655_v46  ;;  %v4005_v46 = vld [vmem:[#allocation7 + $0x48] ss:$12 sps:$4 sm:$0xff]  }
 0x195   :  { %6429 = vst [vmem:[#allocation23_spill] sm:$0xff] %v4661_v52 }
 0x196   :  { %6430 = vst [vmem:[#allocation24_spill] sm:$0xff] %v4664_v56  ;;  %508 = vadd.xlane.f32.xlu0 %v507_v57  ;;  %v510_v58 = vadd.f32 %v4664_v56, %v4661_v52  ;;  %v4001_v56 = vld [vmem:[#allocation7 + $0x68] ss:$12 sps:$4 sm:$0xff]   ;;  %v4012_v52 = vld [vmem:[#allocation7 + $0x140] ss:$12 sps:$4 sm:$0xff]  }
 0x198   :  { %v388_v60 = vpop.f32.mrb[36].mxu0  ;;  %511 = vadd.xlane.f32.xlu1 %v510_v58 }
 0x199   :  { %v4671_v62 = vadd.f32 %v388_v60, %v4521_v7  ;;  %v390_v1 = vpop.f32.mrb[37].mxu0 }
 0x19a   :  { %v4674_v5 = vadd.f32 %v390_v1, %v4524_v0  ;;  %v392_v8 = vpop.f32.mrb[38].mxu0 }
 0x19b   :  { %6431 = vst [vmem:[#allocation25_spill] sm:$0xff] %v4671_v62  ;;  %v4677_v10 = vadd.f32 %v392_v8, %v4521_v7  ;;  %v394_v13 = vpop.f32.mrb[39].mxu0 }
 0x19c   :  { %6432 = vst [vmem:[#allocation26_spill] sm:$0xff] %v4674_v5  ;;  %v4680_v17 = vadd.f32 %v394_v13, %v4524_v0  ;;  %v513_v20 = vadd.f32 %v4674_v5, %v4671_v62  ;;  %v3999_v62 = vld [vmem:[#allocation7 + $0x34] ss:$12 sps:$4 sm:$0xff]  }
 0x19d   :  { %6433 = vst [vmem:[#allocation27_spill] sm:$0xff] %v4677_v10 }
 0x19e   :  { %6434 = vst [vmem:[#allocation28_spill] sm:$0xff] %v4680_v17  ;;  %514 = vadd.xlane.f32.xlu0 %v513_v20  ;;  %v516_v23 = vadd.f32 %v4680_v17, %v4677_v10  ;;  %v3986_v20 = vld [vmem:[#allocation7 + $0xe0] ss:$12 sps:$4 sm:$0xff]   ;;  %v3997_v17 = vld [vmem:[#allocation7 + $0x18] ss:$12 sps:$4 sm:$0xff]  }
 0x19f   :  { %3709 = vmatprep.subr.bf16.mxu0 %v3986_v20  ;;  %v3995_v20 = vld [vmem:[#allocation7 + $0x1c] ss:$12 sps:$4 sm:$0xff]  }
 0x1a0   :  { %v398_v26 = vpop.f32.mrb[40].mxu0  ;;  %517 = vadd.xlane.f32.xlu1 %v516_v23  ;;  %v3987_v23 = vld [vmem:[#allocation7 + $0x20] ss:$12 sps:$4 sm:$0xff]   ;;  %v3998_v10 = vld [vmem:[#allocation7 + $0x128] ss:$12 sps:$4 sm:$0xff]  }
 0x1a1   :  { %v4687_v34 = vadd.f32 %v398_v26, %v4521_v7  ;;  %v400_v37 = vpop.f32.mrb[41].mxu0  ;;  %3710 = vmatpush3.bf16.msra.mxu0 %v3987_v23  ;;  %v3991_v23 = vld [vmem:[#allocation7 + $0x50] ss:$12 sps:$4 sm:$0xff]  }
 0x1a2   :  { %v4690_v40 = vadd.f32 %v400_v37, %v4524_v0  ;;  %v402_v42 = vpop.f32.mrb[42].mxu0 }
 0x1a3   :  { %6435 = vst [vmem:[#allocation29_spill] sm:$0xff] %v4687_v34  ;;  %v4693_v44 = vadd.f32 %v402_v42, %v4521_v7  ;;  %v404_v47 = vpop.f32.mrb[43].mxu0 }
 0x1a4   :  { %6436 = vst [vmem:[#allocation30_spill] sm:$0xff] %v4690_v40  ;;  %v4696_v50 = vadd.f32 %v404_v47, %v4524_v0  ;;  %v519_v54 = vadd.f32 %v4690_v40, %v4687_v34 }
 0x1a5   :  { %6437 = vst [vmem:[#allocation31_spill] sm:$0xff] %v4693_v44 }
 0x1a6   :  { %6438 = vst [vmem:[#allocation32_spill] sm:$0xff] %v4696_v50  ;;  %520 = vadd.xlane.f32.xlu0 %v519_v54  ;;  %v522_v57 = vadd.f32 %v4696_v50, %v4693_v44  ;;  %v3994_v50 = vld [vmem:[#allocation7] ss:$12 sps:$4 sm:$0xff]  }
 0x1a7   :  { %1556 = vmatpush1.bf16.msra.mxu1 %v3994_v50 }
 0x1a8   :  { %523 = vadd.xlane.f32.xlu1 %v522_v57  ;;  %v4702_v58 = vpop.f32.mrb[44].mxu0  ;;  %v3988_v57 = vld [vmem:[#allocation7 + $0xf8] ss:$12 sps:$4 sm:$0xff]   ;;  %1557 = vmatprep.subr.bf16.mxu1 %v3995_v20 }
 0x1a9   :  { %v4704_v60 = vpop.f32.mrb[45].mxu0  ;;  %3711 = vmatprep.subr.bf16.mxu0 %v3988_v57  ;;  %v4002_v57 = vld [vmem:[#allocation7 + $0x30] ss:$12 sps:$4 sm:$0xff]  }
 0x1aa   :  { %v4706_v1 = vpop.f32.mrb[46].mxu0  ;;  %3712 = vmatpush3.bf16.msra.mxu0 %v3989_v3  ;;  %v4003_v3 = vld [vmem:[#allocation7 + $0x4c] ss:$12 sps:$4 sm:$0xff]  }
 0x1ab   :  { %v4708_v8 = vpop.f32.mrb[47].mxu0  ;;  %3713 = vmatprep.subr.bf16.mxu0 %v3990_v6  ;;  %1558 = vmatpush1.bf16.msra.mxu1 %v3997_v17  ;;  %v4015_v6 = vld [vmem:[#allocation7 + $0x80] ss:$12 sps:$4 sm:$0xff]   ;;  %v4006_v17 = vld [vmem:[#allocation7 + $0x64] ss:$12 sps:$4 sm:$0xff]  }
 0x1ac   :  { %1559 = vmatprep.subr.bf16.mxu1 %v3999_v62  ;;  %v4009_v62 = vld [vmem:[#allocation7 + $0x7c] ss:$12 sps:$4 sm:$0xff]  }
 0x1ae   :  { %3714 = vmatpush3.bf16.msra.mxu0 %v3991_v23  ;;  %v4011_v23 = vld [vmem:[#allocation7 + $0x78] ss:$12 sps:$4 sm:$0xff]  }
 0x1af   :  { %3715 = vmatprep.subr.bf16.mxu0 %v3998_v10  ;;  %1560 = vmatpush1.bf16.msra.mxu1 %v4002_v57  ;;  %v4008_v10 = vld [vmem:[#allocation7 + $0x60] ss:$12 sps:$4 sm:$0xff]   ;;  %v4019_v57 = vld [vmem:[#allocation7 + $0xa8] ss:$12 sps:$4 sm:$0xff]  }
 0x1b0   :  { %v4710_v13 = vpop.f32.mrb[48].mxu0  ;;  %1561 = vmatprep.subr.bf16.mxu1 %v4003_v3  ;;  %v4022_v3 = vld [vmem:[#allocation7 + $0xc0] ss:$12 sps:$4 sm:$0xff]  }
 0x1b1   :  { %v4712_v26 = vpop.f32.mrb[49].mxu0 }
 0x1b2   :  { %v4714_v27 = vpop.f32.mrb[50].mxu0  ;;  %3716 = vmatpush3.bf16.msra.mxu0 %v4001_v56  ;;  %v4016_v56 = vld [vmem:[#allocation7 + $0x90] ss:$12 sps:$4 sm:$0xff]  }
 0x1b3   :  { %v4716_v30 = vpop.f32.mrb[51].mxu0  ;;  %3717 = vmatprep.subr.bf16.mxu0 %v4012_v52  ;;  %1562 = vmatpush1.bf16.msra.mxu1 %v4005_v46  ;;  %v4020_v52 = vld [vmem:[#allocation7 + $0xc4] ss:$12 sps:$4 sm:$0xff]  }
 0x1b4   :  { %1563 = vmatprep.subr.bf16.mxu1 %v4006_v17 }
 0x1b6   :  { %3718 = vmatpush3.bf16.msra.mxu0 %v4015_v6 }
 0x1b7   :  { %1564 = vmatpush1.bf16.msra.mxu1 %v4008_v10 }
 0x1b8   :  { %v4718_v37 = vpop.f32.mrb[52].mxu0  ;;  %1565 = vmatprep.subr.bf16.mxu1 %v4009_v62 }
 0x1b9   :  { %v4720_v42 = vpop.f32.mrb[53].mxu0 }
 0x1ba   :  { %v4722_v47 = vpop.f32.mrb[54].mxu0 }
 0x1bb   :  { %v4724_v54 = vpop.f32.mrb[55].mxu0  ;;  %1566 = vmatpush1.bf16.msra.mxu1 %v4011_v23 }
 0x1bc   :  { %1567 = vmatprep.subr.bf16.mxu1 %v4013_v38  ;;  %v4750_v38 = vadd.f32 %v4702_v58, %v4521_v7 }
 0x1bf   :  { %1568 = vmatpush1.bf16.msra.mxu1 %v4016_v56 }
 0x1c0   :  { %v4726_v44 = vpop.f32.mrb[56].mxu0  ;;  %1569 = vmatprep.subr.bf16.mxu1 %v4017_v36  ;;  %v4754_v36 = vadd.f32 %v4704_v60, %v4524_v0 }
 0x1c1   :  { %v4728_v40 = vpop.f32.mrb[57].mxu0 }
 0x1c2   :  { %v4730_v34 = vpop.f32.mrb[58].mxu0  ;;  %v525_v60 = vadd.f32 %v4754_v36, %v4750_v38 }
 0x1c3   :  { %v4732_v5 = vpop.f32.mrb[59].mxu0  ;;  %1570 = vmatpush1.bf16.msra.mxu1 %v4019_v57 }
 0x1c4   :  { %1571 = vmatprep.subr.bf16.mxu1 %v4020_v52 }
 0x1c7   :  { %1572 = vmatpush1.bf16.msra.mxu1 %v4022_v3 }
 0x1c8   :  { %v4734_v48 = vpop.f32.mrb[60].mxu0 }
 0x1c9   :  { %v4736_v4 = vpop.f32.mrb[61].mxu0 }
 0x1ca   :  { %v4738_v50 = vpop.f32.mrb[62].mxu0 }
 0x1cb   :  { %v4740_v20 = vpop.f32.mrb[63].mxu0 }
 0x1e3   :  { %v461_v46 = vpop.xlane.xlu0 %460 }
 0x1e4   :  { %v556_v6 = vmul.f32 0.00390625, %v461_v46 }
 0x1e6   :  { %v4743_v17 = vsub.f32 %v4527_v9, %v556_v6  ;;  %v4746_v10 = vsub.f32 %v4530_v11, %v556_v6 }
 0x1e7   :  { %v464_v62 = vpop.xlane.xlu0 %463 }
 0x1e8   :  { %v557_v23 = vmul.f32 0.00390625, %v464_v62  ;;  %v652_v56 = vmul.f32 %v4743_v17, %v4743_v17  ;;  %v653_v9 = vmul.f32 %v4746_v10, %v4746_v10 }
 0x1ea   :  { %v4761_v57 = vsub.f32 %v4533_v14, %v557_v23  ;;  %v4764_v11 = vsub.f32 %v4536_v15, %v557_v23  ;;  %v716_v52 = vadd.f32 %v653_v9, %v652_v56  ;;  %v4774_v14 = vadd.f32 %v4706_v1, %v4521_v7 }
 0x1eb   :  { %v467_v58 = vpop.xlane.xlu1 %466  ;;  %v4784_v23 = vadd.f32 %v4708_v8, %v4524_v0 }
 0x1ec   :  { %v558_v3 = vmul.f32 0.00390625, %v467_v58  ;;  %717 = vadd.xlane.f32.xlu0 %v716_v52  ;;  %v654_v46 = vmul.f32 %v4761_v57, %v4761_v57  ;;  %v655_v6 = vmul.f32 %v4764_v11, %v4764_v11  ;;  %v4788_v52 = vadd.f32 %v4710_v13, %v4521_v7 }
 0x1ee   :  { %v4777_v15 = vsub.f32 %v4543_v19, %v558_v3  ;;  %v4780_v62 = vsub.f32 %v4546_v21, %v558_v3  ;;  %v719_v56 = vadd.f32 %v655_v6, %v654_v46  ;;  %v4792_v19 = vadd.f32 %v4712_v26, %v4524_v0 }
 0x1ef   :  { %v470_v9 = vpop.xlane.xlu1 %469 }
 0x1f0   :  { %v559_v58 = vmul.f32 0.00390625, %v470_v9  ;;  %526 = vadd.xlane.f32.xlu0 %v525_v60  ;;  %720 = vadd.xlane.f32.xlu1 %v719_v56  ;;  %v656_v21 = vmul.f32 %v4777_v15, %v4777_v15  ;;  %v657_v1 = vmul.f32 %v4780_v62, %v4780_v62  ;;  %v528_v60 = vadd.f32 %v4784_v23, %v4774_v14 }
 0x1f1   :  { %v531_v26 = vadd.f32 %v4792_v19, %v4788_v52  ;;  %v4818_v9 = vadd.f32 %v4716_v30, %v4524_v0 }
 0x1f2   :  { %v4799_v8 = vsub.f32 %v4549_v24, %v559_v58  ;;  %v4802_v3 = vsub.f32 %v4552_v25, %v559_v58  ;;  %v722_v13 = vadd.f32 %v657_v1, %v656_v21  ;;  %v4814_v25 = vadd.f32 %v4714_v27, %v4521_v7 }
 0x1f3   :  { %v473_v46 = vpop.xlane.xlu0 %472 }
 0x1f4   :  { %6439 = vst [vmem:[#allocation33_spill] sm:$0xff] %v4799_v8  ;;  %v560_v6 = vmul.f32 0.00390625, %v473_v46  ;;  %723 = vadd.xlane.f32.xlu0 %v722_v13  ;;  %529 = vadd.xlane.f32.xlu1 %v528_v60  ;;  %v658_v56 = vmul.f32 %v4799_v8, %v4799_v8  ;;  %v659_v24 = vmul.f32 %v4802_v3, %v4802_v3 }
 0x1f5   :  { %v476_v58 = vpop.xlane.xlu1 %475 }
 0x1f6   :  { %v4821_v21 = vsub.f32 %v4559_v29, %v560_v6  ;;  %v4824_v1 = vsub.f32 %v4562_v31, %v560_v6  ;;  %v561_v13 = vmul.f32 0.00390625, %v476_v58  ;;  %v725_v60 = vadd.f32 %v659_v24, %v658_v56  ;;  %v4025_v58 = vld [vmem:[#allocation7 + $0xd8] ss:$12 sps:$4 sm:$0xff]  }
 0x1f7   :  { %v4836_v29 = vadd.f32 %v4718_v37, %v4521_v7  ;;  %v4840_v31 = vadd.f32 %v4720_v42, %v4524_v0  ;;  %v4023_v37 = vld [vmem:[#allocation7 + $0xdc] ss:$12 sps:$4 sm:$0xff]   ;;  %v4852_v42 = vadd.f32 %v4722_v47, %v4521_v7  ;;  %v4027_v47 = vld [vmem:[#allocation7 + $0xf4] ss:$12 sps:$4 sm:$0xff]  }
 0x1f8   :  { %6440 = vst [vmem:[#allocation34_spill] sm:$0xff] %v4821_v21  ;;  %v4827_v46 = vsub.f32 %v4565_v33, %v561_v13  ;;  %v4830_v8 = vsub.f32 %v4568_v35, %v561_v13  ;;  %532 = vadd.xlane.f32.xlu0 %v531_v26  ;;  %726 = vadd.xlane.f32.xlu1 %v725_v60 }
 0x1f9   :  { %v660_v27 = vmul.f32 %v4821_v21, %v4821_v21  ;;  %v661_v33 = vmul.f32 %v4824_v1, %v4824_v1  ;;  %v534_v35 = vadd.f32 %v4818_v9, %v4814_v25  ;;  %v4856_v13 = vadd.f32 %v4724_v54, %v4524_v0  ;;  %1573 = vmatprep.subr.bf16.mxu1 %v4023_v37  ;;  %v4030_v37 = vld [vmem:[#allocation7 + $0xf0] ss:$12 sps:$4 sm:$0xff]  }
 0x1fa   :  { %6441 = vst [vmem:[#allocation35_spill] sm:$0xff] %v4827_v46  ;;  %v662_v30 = vmul.f32 %v4827_v46, %v4827_v46  ;;  %v663_v6 = vmul.f32 %v4830_v8, %v4830_v8  ;;  %v537_v46 = vadd.f32 %v4840_v31, %v4836_v29  ;;  %1574 = vmatpush1.bf16.msra.mxu1 %v4025_v58  ;;  %v4029_v58 = vld [vmem:[#allocation7 + $0x98] ss:$12 sps:$4 sm:$0xff]  }
 0x1fb   :  { %v479_v26 = vpop.xlane.xlu0 %478  ;;  %v728_v56 = vadd.f32 %v661_v33, %v660_v27  ;;  %1575 = vmatprep.subr.bf16.mxu1 %v4027_v47  ;;  %v4896_v47 = vadd.f32 %v4732_v5, %v4524_v0 }
 0x1fc   :  { %v562_v24 = vmul.f32 0.00390625, %v479_v26  ;;  %535 = vadd.xlane.f32.xlu1 %v534_v35  ;;  %v731_v26 = vadd.f32 %v663_v6, %v662_v30 }
 0x1fd   :  { %729 = vadd.xlane.f32.xlu0 %v728_v56  ;;  %v482_v60 = vpop.xlane.xlu1 %481 }
 0x1fe   :  { %v4861_v27 = vsub.f32 %v4575_v39, %v562_v24  ;;  %v4864_v33 = vsub.f32 %v4578_v41, %v562_v24  ;;  %v563_v35 = vmul.f32 0.00390625, %v482_v60  ;;  %v4878_v41 = vadd.f32 %v4726_v44, %v4521_v7  ;;  %1576 = vmatpush1.bf16.msra.mxu1 %v4030_v37  ;;  %v4031_v60 = vld [vmem:[#allocation7 + $0x10c] ss:$12 sps:$4 sm:$0xff]  }
 0x1ff   :  { %1577 = vmatprep.subr.bf16.mxu1 %v4031_v60 }
 0x200   :  { %v4867_v21 = vsub.f32 %v4581_v43, %v563_v35  ;;  %v4870_v54 = vsub.f32 %v4584_v45, %v563_v35  ;;  %732 = vadd.xlane.f32.xlu1 %v731_v26  ;;  %v664_v56 = vmul.f32 %v4861_v27, %v4861_v27  ;;  %v665_v39 = vmul.f32 %v4864_v33, %v4864_v33 }
 0x201   :  { %538 = vadd.xlane.f32.xlu0 %v537_v46  ;;  %v4882_v43 = vadd.f32 %v4728_v40, %v4524_v0  ;;  %v540_v45 = vadd.f32 %v4856_v13, %v4852_v42  ;;  %v4026_v46 = vld [vmem:[#allocation7 + $0x158] ss:$12 sps:$4 sm:$0xff]   ;;  %v4033_v40 = vld [vmem:[#allocation7 + $0x108] ss:$12 sps:$4 sm:$0xff]   ;;  %v4892_v26 = vadd.f32 %v4730_v34, %v4521_v7 }
 0x202   :  { %v734_v30 = vadd.f32 %v665_v39, %v664_v56  ;;  %v666_v6 = vmul.f32 %v4867_v21, %v4867_v21  ;;  %v667_v24 = vmul.f32 %v4870_v54, %v4870_v54  ;;  %3719 = vmatprep.subr.bf16.mxu0 %v4026_v46  ;;  %1578 = vmatpush1.bf16.msra.mxu1 %v4033_v40  ;;  %v4034_v34 = vld [vmem:[#allocation7 + $0x124] ss:$12 sps:$4 sm:$0xff]  }
 0x203   :  { %v485_v44 = vpop.xlane.xlu0 %484  ;;  %v543_v39 = vadd.f32 %v4882_v43, %v4878_v41  ;;  %3720 = vmatpush3.bf16.msra.mxu0 %v4029_v58  ;;  %1579 = vmatprep.subr.bf16.mxu1 %v4034_v34 }
 0x204   :  { %v564_v35 = vmul.f32 0.00390625, %v485_v44  ;;  %541 = vadd.xlane.f32.xlu1 %v540_v45  ;;  %v737_v44 = vadd.f32 %v667_v24, %v666_v6  ;;  %v4918_v6 = vadd.f32 %v4734_v48, %v4521_v7  ;;  %v4932_v48 = vadd.f32 %v4738_v50, %v4521_v7 }
 0x205   :  { %735 = vadd.xlane.f32.xlu0 %v734_v30  ;;  %v488_v56 = vpop.xlane.xlu1 %487 }
 0x206   :  { %v4901_v37 = vsub.f32 %v4591_v49, %v564_v35  ;;  %v4904_v45 = vsub.f32 %v4594_v51, %v564_v35  ;;  %v565_v46 = vmul.f32 0.00390625, %v488_v56  ;;  %v4036_v51 = vld [vmem:[#allocation7 + $0x120] ss:$12 sps:$4 sm:$0xff]   ;;  %v4037_v56 = vld [vmem:[#allocation7 + $0x13c] ss:$12 sps:$4 sm:$0xff]  }
 0x207   :  { %1580 = vmatpush1.bf16.msra.mxu1 %v4036_v51 }
 0x208   :  { %v4907_v5 = vsub.f32 %v4597_v53, %v565_v46  ;;  %v4910_v30 = vsub.f32 %v4600_v55, %v565_v46  ;;  %738 = vadd.xlane.f32.xlu1 %v737_v44  ;;  %v668_v58 = vmul.f32 %v4901_v37, %v4901_v37  ;;  %v669_v49 = vmul.f32 %v4904_v45, %v4904_v45  ;;  %v4039_v46 = vld [vmem:[#allocation7 + $0x138] ss:$12 sps:$4 sm:$0xff]  }
 0x209   :  { %544 = vadd.xlane.f32.xlu0 %v543_v39  ;;  %v4922_v53 = vadd.f32 %v4736_v4, %v4524_v0  ;;  %v546_v55 = vadd.f32 %v4896_v47, %v4892_v26  ;;  %v4936_v4 = vadd.f32 %v4740_v20, %v4524_v0  ;;  %1581 = vmatprep.subr.bf16.mxu1 %v4037_v56 }
 0x20a   :  { %v740_v24 = vadd.f32 %v669_v49, %v668_v58  ;;  %v670_v60 = vmul.f32 %v4907_v5, %v4907_v5  ;;  %v671_v35 = vmul.f32 %v4910_v30, %v4910_v30  ;;  %v4041_v49 = vld [vmem:[#allocation7 + $0x154] ss:$12 sps:$4 sm:$0xff]  }
 0x20b   :  { %v491_v40 = vpop.xlane.xlu0 %490  ;;  %v549_v34 = vadd.f32 %v4922_v53, %v4918_v6  ;;  %v552_v20 = vadd.f32 %v4936_v4, %v4932_v48  ;;  %1582 = vmatpush1.bf16.msra.mxu1 %v4039_v46 }
 0x20c   :  { %v566_v39 = vmul.f32 0.00390625, %v491_v40  ;;  %547 = vadd.xlane.f32.xlu1 %v546_v55  ;;  %v743_v0 = vadd.f32 %v671_v35, %v670_v60  ;;  %1583 = vmatprep.subr.bf16.mxu1 %v4041_v49  ;;  %v4040_v40 = vld [vmem:[#allocation7 + $0x170] ss:$12 sps:$4 sm:$0xff]  }
 0x20d   :  { %741 = vadd.xlane.f32.xlu0 %v740_v24  ;;  %v494_v44 = vpop.xlane.xlu1 %493  ;;  %v4044_v24 = vld [vmem:[#allocation7 + $0x150] ss:$12 sps:$4 sm:$0xff]   ;;  %3721 = vmatprep.subr.bf16.mxu0 %v4040_v40 }
 0x20e   :  { %v4941_v58 = vsub.f32 %v4607_v59, %v566_v39  ;;  %v4944_v7 = vsub.f32 %v4610_v61, %v566_v39  ;;  %v567_v50 = vmul.f32 0.00390625, %v494_v44  ;;  %v4045_v39 = vld [vmem:[#allocation7 + $0x16c] ss:$12 sps:$4 sm:$0xff]   ;;  %v4047_v44 = vld [vmem:[#allocation7 + $0x168] ss:$12 sps:$4 sm:$0xff]  }
 0x20f   :  { %1584 = vmatpush1.bf16.msra.mxu1 %v4044_v24 }
 0x210   :  { %v4949_v51 = vsub.f32 %v4613_v63, %v567_v50  ;;  %v4952_v55 = vsub.f32 %v4616_v2, %v567_v50  ;;  %744 = vadd.xlane.f32.xlu1 %v743_v0  ;;  %v672_v59 = vmul.f32 %v4941_v58, %v4941_v58  ;;  %v673_v61 = vmul.f32 %v4944_v7, %v4944_v7  ;;  %v4043_v2 = vld [vmem:[#allocation7 + $0xb0] ss:$12 sps:$4 sm:$0xff]  }
 0x211   :  { %550 = vadd.xlane.f32.xlu0 %v549_v34  ;;  %3722 = vmatpush3.bf16.msra.mxu0 %v4043_v2 }
 0x212   :  { %v746_v60 = vadd.f32 %v673_v61, %v672_v59  ;;  %v674_v35 = vmul.f32 %v4949_v51, %v4949_v51  ;;  %v675_v63 = vmul.f32 %v4952_v55, %v4952_v55  ;;  %1585 = vmatprep.subr.bf16.mxu1 %v4045_v39 }
 0x213   :  { %v497_v56 = vpop.xlane.xlu0 %496  ;;  %1586 = vmatpush1.bf16.msra.mxu1 %v4047_v44 }
 0x214   :  { %v568_v46 = vmul.f32 0.00390625, %v497_v56  ;;  %553 = vadd.xlane.f32.xlu1 %v552_v20  ;;  %v749_v59 = vadd.f32 %v675_v63, %v674_v35 }
 0x215   :  { %747 = vadd.xlane.f32.xlu0 %v746_v60  ;;  %v500_v50 = vpop.xlane.xlu1 %499 }
 0x216   :  { %v4963_v34 = vsub.f32 %v4623_v12, %v568_v46  ;;  %v4966_v0 = vsub.f32 %v4626_v16, %v568_v46  ;;  %v569_v49 = vmul.f32 0.00390625, %v500_v50  ;;  %v6442_v46 = vld [vmem:[#allocation19_spill] sm:$0xff]  ;;  %v6444_v50 = vld [vmem:[#allocation20_spill] sm:$0xff] }
 0x218   :  { %v4969_v61 = vsub.f32 %v4629_v18, %v569_v49  ;;  %v4972_v20 = vsub.f32 %v4632_v22, %v569_v49  ;;  %750 = vadd.xlane.f32.xlu1 %v749_v59  ;;  %v676_v24 = vmul.f32 %v4963_v34, %v4963_v34  ;;  %v677_v12 = vmul.f32 %v4966_v0, %v4966_v0 }
 0x21a   :  { %v752_v60 = vadd.f32 %v677_v12, %v676_v24  ;;  %v678_v16 = vmul.f32 %v4969_v61, %v4969_v61  ;;  %v679_v35 = vmul.f32 %v4972_v20, %v4972_v20 }
 0x21b   :  { %v503_v63 = vpop.xlane.xlu0 %502 }
 0x21c   :  { %v570_v18 = vmul.f32 0.00390625, %v503_v63  ;;  %753 = vadd.xlane.f32.xlu0 %v752_v60  ;;  %v755_v40 = vadd.f32 %v679_v35, %v678_v16 }
 0x21d   :  { %v506_v22 = vpop.xlane.xlu1 %505 }
 0x21e   :  { %v4983_v2 = vsub.f32 %v4639_v28, %v570_v18  ;;  %v4986_v56 = vsub.f32 %v4642_v32, %v570_v18  ;;  %v571_v39 = vmul.f32 0.00390625, %v506_v22  ;;  %756 = vadd.xlane.f32.xlu1 %v755_v40  ;;  %v6446_v18 = vld [vmem:[#allocation21_spill] sm:$0xff]  ;;  %v6448_v22 = vld [vmem:[#allocation22_spill] sm:$0xff] }
 0x220   :  { %v4989_v44 = vsub.f32 %v6442_v46, %v571_v39  ;;  %v4992_v49 = vsub.f32 %v6444_v50, %v571_v39  ;;  %v680_v59 = vmul.f32 %v4983_v2, %v4983_v2  ;;  %v681_v24 = vmul.f32 %v4986_v56, %v4986_v56  ;;  %v6450_v50 = vld [vmem:[#allocation23_spill] sm:$0xff] }
 0x222   :  { %6443 = vst [vmem:[#allocation19_spill] sm:$0xff] %v4989_v44  ;;  %6445 = vst [vmem:[#allocation20_spill] sm:$0xff] %v4992_v49  ;;  %v758_v12 = vadd.f32 %v681_v24, %v680_v59  ;;  %v682_v28 = vmul.f32 %v4989_v44, %v4989_v44  ;;  %v683_v32 = vmul.f32 %v4992_v49, %v4992_v49  ;;  %v6452_v24 = vld [vmem:[#allocation24_spill] sm:$0xff] }
 0x223   :  { %v509_v60 = vpop.xlane.xlu0 %508 }
 0x224   :  { %v572_v16 = vmul.f32 0.00390625, %v509_v60  ;;  %759 = vadd.xlane.f32.xlu0 %v758_v12  ;;  %v761_v35 = vadd.f32 %v683_v32, %v682_v28 }
 0x225   :  { %v512_v63 = vpop.xlane.xlu1 %511 }
 0x226   :  { %v5003_v40 = vsub.f32 %v6446_v18, %v572_v16  ;;  %v5006_v39 = vsub.f32 %v6448_v22, %v572_v16  ;;  %v573_v46 = vmul.f32 0.00390625, %v512_v63  ;;  %762 = vadd.xlane.f32.xlu1 %v761_v35 }
 0x228   :  { %6447 = vst [vmem:[#allocation21_spill] sm:$0xff] %v5003_v40  ;;  %6449 = vst [vmem:[#allocation22_spill] sm:$0xff] %v5006_v39  ;;  %v5009_v59 = vsub.f32 %v6450_v50, %v573_v46  ;;  %v5012_v44 = vsub.f32 %v6452_v24, %v573_v46  ;;  %v684_v60 = vmul.f32 %v5003_v40, %v5003_v40  ;;  %v6454_v46 = vld [vmem:[#allocation25_spill] sm:$0xff]  ;;  %v6456_v24 = vld [vmem:[#allocation26_spill] sm:$0xff] }
 0x229   :  { %v685_v12 = vmul.f32 %v5006_v39, %v5006_v39 }
 0x22a   :  { %6451 = vst [vmem:[#allocation23_spill] sm:$0xff] %v5009_v59  ;;  %6453 = vst [vmem:[#allocation24_spill] sm:$0xff] %v5012_v44  ;;  %v686_v32 = vmul.f32 %v5009_v59, %v5009_v59  ;;  %v687_v16 = vmul.f32 %v5012_v44, %v5012_v44  ;;  %v6460_v59 = vld [vmem:[#allocation28_spill] sm:$0xff] }
 0x22b   :  { %v764_v28 = vadd.f32 %v685_v12, %v684_v60  ;;  %v515_v35 = vpop.xlane.xlu0 %514  ;;  %v6458_v60 = vld [vmem:[#allocation27_spill] sm:$0xff] }
 0x22c   :  { %v574_v63 = vmul.f32 0.00390625, %v515_v35  ;;  %v767_v18 = vadd.f32 %v687_v16, %v686_v32 }
 0x22d   :  { %765 = vadd.xlane.f32.xlu0 %v764_v28  ;;  %v518_v22 = vpop.xlane.xlu1 %517 }
 0x22e   :  { %v5023_v50 = vsub.f32 %v6454_v46, %v574_v63  ;;  %v5026_v40 = vsub.f32 %v6456_v24, %v574_v63  ;;  %v575_v49 = vmul.f32 0.00390625, %v518_v22  ;;  %768 = vadd.xlane.f32.xlu1 %v767_v18 }
 0x230   :  { %6455 = vst [vmem:[#allocation25_spill] sm:$0xff] %v5023_v50  ;;  %6457 = vst [vmem:[#allocation26_spill] sm:$0xff] %v5026_v40  ;;  %v5029_v12 = vsub.f32 %v6458_v60, %v575_v49  ;;  %v5032_v39 = vsub.f32 %v6460_v59, %v575_v49  ;;  %v688_v35 = vmul.f32 %v5023_v50, %v5023_v50  ;;  %v6462_v49 = vld [vmem:[#allocation29_spill] sm:$0xff]  ;;  %v6464_v60 = vld [vmem:[#allocation30_spill] sm:$0xff] }
 0x231   :  { %v689_v28 = vmul.f32 %v5026_v40, %v5026_v40 }
 0x232   :  { %6459 = vst [vmem:[#allocation27_spill] sm:$0xff] %v5029_v12  ;;  %6461 = vst [vmem:[#allocation28_spill] sm:$0xff] %v5032_v39  ;;  %v690_v16 = vmul.f32 %v5029_v12, %v5029_v12  ;;  %v691_v63 = vmul.f32 %v5032_v39, %v5032_v39  ;;  %v6467_v12 = vld [vmem:[#allocation32_spill] sm:$0xff] }
 0x233   :  { %v770_v32 = vadd.f32 %v689_v28, %v688_v35  ;;  %v521_v18 = vpop.xlane.xlu0 %520  ;;  %v6465_v35 = vld [vmem:[#allocation31_spill] sm:$0xff] }
 0x234   :  { %v576_v22 = vmul.f32 0.00390625, %v521_v18  ;;  %v773_v46 = vadd.f32 %v691_v63, %v690_v16 }
 0x235   :  { %771 = vadd.xlane.f32.xlu0 %v770_v32  ;;  %v524_v24 = vpop.xlane.xlu1 %523 }
 0x236   :  { %v5043_v59 = vsub.f32 %v6462_v49, %v576_v22  ;;  %v5046_v50 = vsub.f32 %v6464_v60, %v576_v22  ;;  %v577_v44 = vmul.f32 0.00390625, %v524_v24  ;;  %774 = vadd.xlane.f32.xlu1 %v773_v46 }
 0x238   :  { %6463 = vst [vmem:[#allocation29_spill] sm:$0xff] %v5043_v59  ;;  %v5049_v28 = vsub.f32 %v6465_v35, %v577_v44  ;;  %v5052_v40 = vsub.f32 %v6467_v12, %v577_v44  ;;  %v692_v18 = vmul.f32 %v5043_v59, %v5043_v59  ;;  %v693_v32 = vmul.f32 %v5046_v50, %v5046_v50 }
 0x23a   :  { %6466 = vst [vmem:[#allocation30_spill] sm:$0xff] %v5049_v28  ;;  %6468 = vst [vmem:[#allocation31_spill] sm:$0xff] %v5052_v40  ;;  %v776_v16 = vadd.f32 %v693_v32, %v692_v18  ;;  %v694_v63 = vmul.f32 %v5049_v28, %v5049_v28  ;;  %v695_v22 = vmul.f32 %v5052_v40, %v5052_v40 }
 0x23c   :  { %777 = vadd.xlane.f32.xlu0 %v776_v16  ;;  %v779_v46 = vadd.f32 %v695_v22, %v694_v63 }
 0x23e   :  { %780 = vadd.xlane.f32.xlu1 %v779_v46 }
 0x279   :  { %v718_v24 = vpop.xlane.xlu0 %717 }
 0x27a   :  { %v812_v49 = vmul.f32 0.00390625, %v718_v24 }
 0x27c   :  { %v844_v44 = vadd.f32 1e-05, %v812_v49 }
 0x27d   :  { %v721_v12 = vpop.xlane.xlu1 %720  ;;  %v527_v60 = vpop.xlane.xlu0 %526 }
 0x27e   :  { %4064 = vrsqrt.f32 %v844_v44  ;;  %v813_v35 = vmul.f32 0.00390625, %v721_v12  ;;  %v578_v59 = vmul.f32 0.00390625, %v527_v60  ;;  %v6473_v60 = vld [vmem:[#allocation17_spill] sm:$0xff] }
 0x280   :  { %v845_v39 = vadd.f32 1e-05, %v813_v35  ;;  %v5063_v18 = vsub.f32 %v4750_v38, %v578_v59  ;;  %v5066_v32 = vsub.f32 %v4754_v36, %v578_v59  ;;  %v457_v36 = vld [vmem:[%s6326_s3] sm:$0x3] }
 0x281   :  { %v530_v28 = vpop.xlane.xlu1 %529  ;;  %v724_v40 = vpop.xlane.xlu0 %723  ;;  %v5089_v35 = vrot.slane %v457_v36, %v6473_v60 }
 0x282   :  { %6469 = vst [vmem:[#allocation32_spill] sm:$0xff] %v5063_v18  ;;  %6470 = vst [vmem:[#allocation36_spill] sm:$0xff] %v5066_v32  ;;  %4066 = vrsqrt.f32 %v845_v39  ;;  %v579_v16 = vmul.f32 0.00390625, %v530_v28  ;;  %v814_v63 = vmul.f32 0.00390625, %v724_v40  ;;  %v696_v22 = vmul.f32 %v5063_v18, %v5063_v18  ;;  %v458_v28 = vld [vmem:[%s6327_s4] sm:$0x3] }
 0x283   :  { %v697_v46 = vmul.f32 %v5066_v32, %v5066_v32 }
 0x284   :  { %v5073_v24 = vsub.f32 %v4774_v14, %v579_v16  ;;  %v5076_v38 = vsub.f32 %v4784_v23, %v579_v16  ;;  %v846_v49 = vadd.f32 1e-05, %v814_v63  ;;  %v6474_v16 = vld [vmem:[#allocation18_spill] sm:$0xff] }
 0x285   :  { %v727_v39 = vpop.xlane.xlu1 %726  ;;  %v533_v59 = vpop.xlane.xlu0 %532  ;;  %v782_v40 = vadd.f32 %v697_v46, %v696_v22  ;;  %v5092_v63 = vrot.slane %v457_v36, %v6474_v16 }
 0x286   :  { %6471 = vst [vmem:[#allocation37_spill] sm:$0xff] %v5073_v24  ;;  %6472 = vst [vmem:[#allocation38_spill] sm:$0xff] %v5076_v38  ;;  %4068 = vrsqrt.f32 %v846_v49  ;;  %v815_v44 = vmul.f32 0.00390625, %v727_v39  ;;  %v580_v12 = vmul.f32 0.00390625, %v533_v59  ;;  %v698_v14 = vmul.f32 %v5073_v24, %v5073_v24 }
 0x287   :  { %783 = vadd.xlane.f32.xlu0 %v782_v40  ;;  %v699_v23 = vmul.f32 %v5076_v38, %v5076_v38  ;;  %v5101_v39 = vrot.slane %v458_v28, %v6473_v60  ;;  %v5105_v38 = vrot.slane %v458_v28, %v6474_v16 }
 0x288   :  { %v4065_v22 = vpop.eup %4064  ;;  %v847_v46 = vadd.f32 1e-05, %v815_v44  ;;  %v5095_v18 = vsub.f32 %v4788_v52, %v580_v12  ;;  %v5098_v49 = vsub.f32 %v4792_v19, %v580_v12 }
 0x289   :  { %v536_v59 = vpop.xlane.xlu1 %535  ;;  %v785_v40 = vadd.f32 %v699_v23, %v698_v14  ;;  %v909_v24 = vmul.f32 %v4065_v22, %v4746_v10  ;;  %v908_v36 = vmul.f32 %v4065_v22, %v4743_v17 }
 0x28a   :  { %4070 = vrsqrt.f32 %v847_v46  ;;  %v581_v44 = vmul.f32 0.00390625, %v536_v59  ;;  %v730_v32 = vpop.xlane.xlu0 %729  ;;  %v700_v52 = vmul.f32 %v5095_v18, %v5095_v18  ;;  %v701_v19 = vmul.f32 %v5098_v49, %v5098_v49 }
 0x28b   :  { %v816_v12 = vmul.f32 0.00390625, %v730_v32  ;;  %786 = vadd.xlane.f32.xlu1 %v785_v40  ;;  %v984_v14 = vmul.f32 %v5092_v63, %v909_v24  ;;  %v983_v10 = vmul.f32 %v5089_v35, %v908_v36 }
 0x28c   :  { %v4067_v23 = vpop.eup %4066  ;;  %v5115_v28 = vsub.f32 %v4814_v25, %v581_v44  ;;  %v5118_v17 = vsub.f32 %v4818_v9, %v581_v44  ;;  %v788_v22 = vadd.f32 %v701_v19, %v700_v52 }
 0x28d   :  { %v848_v46 = vadd.f32 1e-05, %v816_v12  ;;  %v733_v59 = vpop.xlane.xlu1 %732  ;;  %v911_v16 = vmul.f32 %v4067_v23, %v4764_v11  ;;  %v1059_v60 = vadd.f32 %v5105_v38, %v984_v14  ;;  %v910_v32 = vmul.f32 %v4067_v23, %v4761_v57 }
 0x28e   :  { %6475 = vst [vmem:[#allocation39_spill] sm:$0xff] %v5115_v28  ;;  %v817_v40 = vmul.f32 0.00390625, %v733_v59  ;;  %v539_v24 = vpop.xlane.xlu0 %538  ;;  %789 = vadd.xlane.f32.xlu0 %v788_v22  ;;  %v702_v36 = vmul.f32 %v5115_v28, %v5115_v28  ;;  %v703_v25 = vmul.f32 %v5118_v17, %v5118_v17  ;;  %v1058_v9 = vadd.f32 %v5101_v39, %v983_v10 }
 0x28f   :  { %4072 = vrsqrt.f32 %v848_v46  ;;  %v582_v44 = vmul.f32 0.00390625, %v539_v24  ;;  %v986_v52 = vmul.f32 %v5092_v63, %v911_v16  ;;  %v1123_v11 = vmax.f32 %v1059_v60, 0.0 }
 0x290   :  { %v4069_v19 = vpop.eup %4068  ;;  %v849_v12 = vadd.f32 1e-05, %v817_v40  ;;  %v791_v14 = vadd.f32 %v703_v25, %v702_v36  ;;  %v985_v57 = vmul.f32 %v5089_v35, %v910_v32  ;;  %v1122_v23 = vmax.f32 %v1058_v9, 0.0 }
 0x291   :  { %v5131_v22 = vsub.f32 %v4836_v29, %v582_v44  ;;  %v5134_v59 = vsub.f32 %v4840_v31, %v582_v44  ;;  %v542_v28 = vpop.xlane.xlu1 %541  ;;  %v1061_v10 = vadd.f32 %v5105_v38, %v986_v52  ;;  %v913_v46 = vmul.f32 %v4069_v19, %v4780_v62 }
 0x292   :  { %4074 = vrsqrt.f32 %v849_v12  ;;  %v583_v16 = vmul.f32 0.00390625, %v542_v28  ;;  %v736_v60 = vpop.xlane.xlu0 %735  ;;  %792 = vadd.xlane.f32.xlu1 %v791_v14  ;;  %v1060_v40 = vadd.f32 %v5101_v39, %v985_v57  ;;  %v912_v32 = vmul.f32 %v4069_v19, %v4777_v15 }
 0x293   :  { %6476 = vst [vmem:[#allocation40_spill] sm:$0xff] %v5131_v22  ;;  %v818_v24 = vmul.f32 0.00390625, %v736_v60  ;;  %v704_v29 = vmul.f32 %v5131_v22, %v5131_v22  ;;  %v705_v31 = vmul.f32 %v5134_v59, %v5134_v59  ;;  %v1125_v36 = vmax.f32 %v1061_v10, 0.0 }
 0x294   :  { %v4071_v25 = vpop.eup %4070  ;;  %v5145_v9 = vsub.f32 %v4852_v42, %v583_v16  ;;  %v5148_v62 = vsub.f32 %v4856_v13, %v583_v16  ;;  %v1124_v28 = vmax.f32 %v1060_v40, 0.0  ;;  %v988_v44 = vmul.f32 %v5092_v63, %v913_v46  ;;  %v6477_v40 = vld [vmem:[#allocation33_spill] sm:$0xff] }
 0x295   :  { %v850_v52 = vadd.f32 1e-05, %v818_v24  ;;  %v739_v15 = vpop.xlane.xlu1 %738  ;;  %v794_v19 = vadd.f32 %v705_v31, %v704_v29  ;;  %v1187_v12 = vpack.c.bf16 %v1125_v36, %v1123_v11  ;;  %v915_v14 = vmul.f32 %v4071_v25, %v4802_v3 }
 0x296   :  { %v819_v57 = vmul.f32 0.00390625, %v739_v15  ;;  %v545_v60 = vpop.xlane.xlu0 %544  ;;  %v1186_v22 = vpack.c.bf16 %v1124_v28, %v1122_v23  ;;  %v706_v10 = vmul.f32 %v5145_v9, %v5145_v9  ;;  %v707_v42 = vmul.f32 %v5148_v62, %v5148_v62 }
 0x297   :  { %4076 = vrsqrt.f32 %v850_v52  ;;  %v584_v13 = vmul.f32 0.00390625, %v545_v60  ;;  %795 = vadd.xlane.f32.xlu0 %v794_v19  ;;  %1587 = vmatprep.mubr.bf16.mxu1 %v1187_v12  ;;  %v990_v46 = vmul.f32 %v5092_v63, %v915_v14  ;;  %v1063_v16 = vadd.f32 %v5105_v38, %v988_v44 }
 0x298   :  { %v851_v11 = vadd.f32 1e-05, %v819_v57  ;;  %1780 = vmatprep.mubr.bf16.mxu0 %v1187_v12  ;;  %1588 = vmatmul.mubr.bf16.vlgmr.msra.gmra.mrb[0].mxu1 %v1186_v22  ;;  %v797_v3 = vadd.f32 %v707_v42, %v706_v10  ;;  %v914_v23 = vmul.f32 %v4071_v25, %v6477_v40  ;;  %v987_v24 = vmul.f32 %v5089_v35, %v912_v32 }
 0x299   :  { %v4073_v29 = vpop.eup %4072  ;;  %v5161_v31 = vsub.f32 %v4878_v41, %v584_v13  ;;  %v5164_v36 = vsub.f32 %v4882_v43, %v584_v13  ;;  %1781 = vmatmul.mubr.bf16.vlgmr.msra.gmra.mrb[64].mxu0 %v1186_v22  ;;  %v548_v28 = vpop.xlane.xlu1 %547  ;;  %v1065_v52 = vadd.f32 %v5105_v38, %v990_v46  ;;  %v1127_v44 = vmax.f32 %v1063_v16, 0.0 }
 0x29a   :  { %4078 = vrsqrt.f32 %v851_v11  ;;  %v585_v15 = vmul.f32 0.00390625, %v548_v28  ;;  %v742_v19 = vpop.xlane.xlu0 %741  ;;  %798 = vadd.xlane.f32.xlu1 %v797_v3  ;;  %v989_v25 = vmul.f32 %v5089_v35, %v914_v23  ;;  %v1062_v32 = vadd.f32 %v5101_v39, %v987_v24 }
 0x29b   :  { %v820_v12 = vmul.f32 0.00390625, %v742_v19  ;;  %v708_v41 = vmul.f32 %v5161_v31, %v5161_v31  ;;  %v709_v43 = vmul.f32 %v5164_v36, %v5164_v36  ;;  %v1129_v22 = vmax.f32 %v1065_v52, 0.0 }
 0x29c   :  { %v4075_v14 = vpop.eup %4074  ;;  %v5174_v57 = vsub.f32 %v4892_v26, %v585_v15  ;;  %v5177_v60 = vsub.f32 %v4896_v47, %v585_v15  ;;  %v1064_v10 = vadd.f32 %v5101_v39, %v989_v25  ;;  %v1126_v42 = vmax.f32 %v1062_v32, 0.0  ;;  %v6478_v25 = vld [vmem:[#allocation34_spill] sm:$0xff] }
 0x29d   :  { %v852_v13 = vadd.f32 1e-05, %v820_v12  ;;  %v745_v46 = vpop.xlane.xlu1 %744  ;;  %v800_v16 = vadd.f32 %v709_v43, %v708_v41  ;;  %v1189_v11 = vpack.c.bf16 %v1129_v22, %v1127_v44  ;;  %v917_v3 = vmul.f32 %v4073_v29, %v4824_v1 }
 0x29e   :  { %v821_v40 = vmul.f32 0.00390625, %v745_v46  ;;  %v551_v23 = vpop.xlane.xlu0 %550  ;;  %v1128_v24 = vmax.f32 %v1064_v10, 0.0  ;;  %v710_v28 = vmul.f32 %v5174_v57, %v5174_v57  ;;  %v711_v26 = vmul.f32 %v5177_v60, %v5177_v60  ;;  %v6479_v46 = vld [vmem:[#allocation35_spill] sm:$0xff] }
 0x29f   :  { %4080 = vrsqrt.f32 %v852_v13  ;;  %v586_v47 = vmul.f32 0.00390625, %v551_v23  ;;  %801 = vadd.xlane.f32.xlu0 %v800_v16  ;;  %1597 = vmatprep.mubr.bf16.mxu1 %v1189_v11  ;;  %v919_v52 = vmul.f32 %v4075_v14, %v4830_v8  ;;  %v992_v15 = vmul.f32 %v5092_v63, %v917_v3 }
 0x2a0   :  { %v853_v44 = vadd.f32 1e-05, %v821_v40  ;;  %1788 = vmatprep.mubr.bf16.mxu0 %v1189_v11  ;;  %v1188_v1 = vpack.c.bf16 %v1128_v24, %v1126_v42  ;;  %v803_v19 = vadd.f32 %v711_v26, %v710_v28  ;;  %v916_v32 = vmul.f32 %v4073_v29, %v6478_v25 }
 0x2a1   :  { %v4077_v12 = vpop.eup %4076  ;;  %v5189_v41 = vsub.f32 %v4918_v6, %v586_v47  ;;  %v5192_v43 = vsub.f32 %v4922_v53, %v586_v47  ;;  %v554_v22 = vpop.xlane.xlu1 %553  ;;  %v994_v10 = vmul.f32 %v5092_v63, %v919_v52  ;;  %v1067_v8 = vadd.f32 %v5105_v38, %v992_v15 }
 0x2a2   :  { %4082 = vrsqrt.f32 %v853_v44  ;;  %1598 = vmatmul.mubr.bf16.gmra.mrb[4].mxu1 %v1188_v1  ;;  %1789 = vmatmul.mubr.bf16.gmra.mrb[68].mxu0 %v1188_v1  ;;  %v587_v13 = vmul.f32 0.00390625, %v554_v22  ;;  %v748_v42 = vpop.xlane.xlu0 %747  ;;  %v918_v16 = vmul.f32 %v4075_v14, %v6479_v46  ;;  %v991_v29 = vmul.f32 %v5089_v35, %v916_v32 }
 0x2a3   :  { %v822_v11 = vmul.f32 0.00390625, %v748_v42  ;;  %804 = vadd.xlane.f32.xlu1 %v803_v19  ;;  %v712_v6 = vmul.f32 %v5189_v41, %v5189_v41  ;;  %v713_v53 = vmul.f32 %v5192_v43, %v5192_v43  ;;  %v1069_v3 = vadd.f32 %v5105_v38, %v994_v10 }
 0x2a4   :  { %v4079_v40 = vpop.eup %4078  ;;  %v5204_v23 = vsub.f32 %v4932_v48, %v587_v13  ;;  %v5207_v24 = vsub.f32 %v4936_v4, %v587_v13  ;;  %v1131_v14 = vmax.f32 %v1067_v8, 0.0  ;;  %v993_v28 = vmul.f32 %v5089_v35, %v918_v16 }
 0x2a5   :  { %v854_v26 = vadd.f32 1e-05, %v822_v11  ;;  %v751_v47 = vpop.xlane.xlu1 %750  ;;  %v806_v52 = vadd.f32 %v713_v53, %v712_v6  ;;  %v1133_v15 = vmax.f32 %v1069_v3, 0.0  ;;  %v1066_v44 = vadd.f32 %v5101_v39, %v991_v29 }
 0x2a6   :  { %v823_v1 = vmul.f32 0.00390625, %v751_v47  ;;  %v1068_v19 = vadd.f32 %v5101_v39, %v993_v28  ;;  %v714_v25 = vmul.f32 %v5204_v23, %v5204_v23  ;;  %v715_v48 = vmul.f32 %v5207_v24, %v5207_v24 }
 0x2a7   :  { %4084 = vrsqrt.f32 %v854_v26  ;;  %807 = vadd.xlane.f32.xlu0 %v806_v52  ;;  %v1191_v4 = vpack.c.bf16 %v1133_v15, %v1131_v14  ;;  %v1130_v32 = vmax.f32 %v1066_v44, 0.0  ;;  %v921_v22 = vmul.f32 %v4077_v12, %v4864_v33 }
 0x2a8   :  { %v855_v10 = vadd.f32 1e-05, %v823_v1  ;;  %v1132_v8 = vmax.f32 %v1068_v19, 0.0  ;;  %v809_v13 = vadd.f32 %v715_v48, %v714_v25  ;;  %v923_v42 = vmul.f32 %v4079_v40, %v4870_v54 }
 0x2a9   :  { %v4081_v46 = vpop.eup %4080  ;;  %1607 = vmatprep.mubr.bf16.mxu1 %v1191_v4  ;;  %1796 = vmatprep.mubr.bf16.mxu0 %v1191_v4  ;;  %v754_v16 = vpop.xlane.xlu0 %753  ;;  %v996_v29 = vmul.f32 %v5092_v63, %v921_v22  ;;  %v920_v11 = vmul.f32 %v4077_v12, %v4861_v27  ;;  %v922_v6 = vmul.f32 %v4079_v40, %v4867_v21 }
 0x2aa   :  { %4086 = vrsqrt.f32 %v855_v10  ;;  %v1190_v53 = vpack.c.bf16 %v1132_v8, %v1130_v32  ;;  %v824_v3 = vmul.f32 0.00390625, %v754_v16  ;;  %810 = vadd.xlane.f32.xlu1 %v809_v13  ;;  %v998_v33 = vmul.f32 %v5092_v63, %v923_v42 }
 0x2ab   :  { %v757_v14 = vpop.xlane.xlu1 %756  ;;  %v1071_v28 = vadd.f32 %v5105_v38, %v996_v29  ;;  %v995_v54 = vmul.f32 %v5089_v35, %v920_v11  ;;  %v997_v26 = vmul.f32 %v5089_v35, %v922_v6  ;;  %v925_v47 = vmul.f32 %v4081_v46, %v4904_v45 }
 0x2ac   :  { %v4083_v52 = vpop.eup %4082  ;;  %1608 = vmatmul.mubr.bf16.gmra.mrb[8].mxu1 %v1190_v53  ;;  %1797 = vmatmul.mubr.bf16.gmra.mrb[72].mxu0 %v1190_v53  ;;  %v856_v27 = vadd.f32 1e-05, %v824_v3  ;;  %v825_v21 = vmul.f32 0.00390625, %v757_v14  ;;  %v1073_v12 = vadd.f32 %v5105_v38, %v998_v33  ;;  %v924_v40 = vmul.f32 %v4081_v46, %v4901_v37 }
 0x2ad   :  { %v1135_v15 = vmax.f32 %v1071_v28, 0.0  ;;  %v1070_v44 = vadd.f32 %v5101_v39, %v995_v54  ;;  %v1072_v1 = vadd.f32 %v5101_v39, %v997_v26  ;;  %v927_v19 = vmul.f32 %v4083_v52, %v4910_v30 }
 0x2ae   :  { %4088 = vrsqrt.f32 %v856_v27  ;;  %v857_v25 = vadd.f32 1e-05, %v825_v21  ;;  %v1137_v48 = vmax.f32 %v1073_v12, 0.0  ;;  %v1000_v45 = vmul.f32 %v5092_v63, %v925_v47 }
 0x2af   :  { %v1134_v4 = vmax.f32 %v1070_v44, 0.0  ;;  %v1136_v32 = vmax.f32 %v1072_v1, 0.0  ;;  %v1002_v22 = vmul.f32 %v5092_v63, %v927_v19  ;;  %v926_v10 = vmul.f32 %v4083_v52, %v4907_v5 }
 0x2b0   :  { %4090 = vrsqrt.f32 %v857_v25  ;;  %v1193_v37 = vpack.c.bf16 %v1137_v48, %v1135_v15  ;;  %v1075_v8 = vadd.f32 %v5105_v38, %v1000_v45  ;;  %v999_v13 = vmul.f32 %v5089_v35, %v924_v40 }
 0x2b1   :  { %v4085_v42 = vpop.eup %4084  ;;  %v1192_v46 = vpack.c.bf16 %v1136_v32, %v1134_v4  ;;  %v760_v30 = vpop.xlane.xlu0 %759  ;;  %v1077_v16 = vadd.f32 %v5105_v38, %v1002_v22  ;;  %v1001_v29 = vmul.f32 %v5089_v35, %v926_v10 }
 0x2b2   :  { %1617 = vmatprep.mubr.bf16.mxu1 %v1193_v37  ;;  %1804 = vmatprep.mubr.bf16.mxu0 %v1193_v37  ;;  %v826_v11 = vmul.f32 0.00390625, %v760_v30  ;;  %v1074_v6 = vadd.f32 %v5101_v39, %v999_v13  ;;  %v929_v5 = vmul.f32 %v4085_v42, %v4944_v7  ;;  %v1139_v3 = vmax.f32 %v1075_v8, 0.0 }
 0x2b3   :  { %v763_v53 = vpop.xlane.xlu1 %762  ;;  %v1141_v33 = vmax.f32 %v1077_v16, 0.0  ;;  %v1076_v14 = vadd.f32 %v5101_v39, %v1001_v29  ;;  %v928_v28 = vmul.f32 %v4085_v42, %v4941_v58 }
 0x2b4   :  { %v4087_v54 = vpop.eup %4086  ;;  %1618 = vmatmul.mubr.bf16.gmra.mrb[12].mxu1 %v1192_v46  ;;  %1805 = vmatmul.mubr.bf16.gmra.mrb[76].mxu0 %v1192_v46  ;;  %v858_v26 = vadd.f32 1e-05, %v826_v11  ;;  %v827_v47 = vmul.f32 0.00390625, %v763_v53  ;;  %v1138_v52 = vmax.f32 %v1074_v6, 0.0  ;;  %v1004_v27 = vmul.f32 %v5092_v63, %v929_v5 }
 0x2b5   :  { %v1195_v21 = vpack.c.bf16 %v1141_v33, %v1139_v3  ;;  %v1140_v12 = vmax.f32 %v1076_v14, 0.0  ;;  %v931_v40 = vmul.f32 %v4087_v54, %v4952_v55  ;;  %v930_v7 = vmul.f32 %v4087_v54, %v4949_v51 }
 0x2b6   :  { %4092 = vrsqrt.f32 %v858_v26  ;;  %v859_v15 = vadd.f32 1e-05, %v827_v47  ;;  %v1079_v44 = vadd.f32 %v5105_v38, %v1004_v27  ;;  %v1003_v58 = vmul.f32 %v5089_v35, %v928_v28 }
 0x2b7   :  { %1627 = vmatprep.mubr.bf16.mxu1 %v1195_v21  ;;  %1812 = vmatprep.mubr.bf16.mxu0 %v1195_v21  ;;  %v1006_v1 = vmul.f32 %v5092_v63, %v931_v40  ;;  %v1005_v19 = vmul.f32 %v5089_v35, %v930_v7  ;;  %v1194_v48 = vpack.c.bf16 %v1140_v12, %v1138_v52 }
 0x2b8   :  { %v4089_v25 = vpop.eup %4088  ;;  %4094 = vrsqrt.f32 %v859_v15  ;;  %v1143_v10 = vmax.f32 %v1079_v44, 0.0  ;;  %v1078_v37 = vadd.f32 %v5101_v39, %v1003_v58  ;;  %v6480_v44 = vld [vmem:[#allocation20_spill] sm:$0xff] }
 0x2b9   :  { %v1081_v55 = vadd.f32 %v5105_v38, %v1006_v1  ;;  %v1080_v51 = vadd.f32 %v5101_v39, %v1005_v19  ;;  %v933_v4 = vmul.f32 %v4089_v25, %v4966_v0  ;;  %v932_v30 = vmul.f32 %v4089_v25, %v4963_v34  ;;  %v6481_v19 = vld [vmem:[#allocation19_spill] sm:$0xff] }
 0x2ba   :  { %v766_v45 = vpop.xlane.xlu0 %765  ;;  %v4091_v32 = vpop.eup %4090  ;;  %v1142_v33 = vmax.f32 %v1078_v37, 0.0 }
 0x2bb   :  { %v828_v22 = vmul.f32 0.00390625, %v766_v45  ;;  %v769_v8 = vpop.xlane.xlu1 %768  ;;  %v1145_v13 = vmax.f32 %v1081_v55, 0.0  ;;  %v935_v42 = vmul.f32 %v4091_v32, %v4972_v20  ;;  %v1008_v46 = vmul.f32 %v5092_v63, %v933_v4 }
 0x2bc   :  { %1628 = vmatmul.mubr.bf16.gmra.mrb[16].mxu1 %v1194_v48  ;;  %1813 = vmatmul.mubr.bf16.gmra.mrb[80].mxu0 %v1194_v48  ;;  %v829_v29 = vmul.f32 0.00390625, %v769_v8  ;;  %v1144_v11 = vmax.f32 %v1080_v51, 0.0  ;;  %v934_v0 = vmul.f32 %v4091_v32, %v4969_v61  ;;  %v1007_v54 = vmul.f32 %v5089_v35, %v932_v30  ;;  %v6482_v30 = vld [vmem:[#allocation22_spill] sm:$0xff] }
 0x2bd   :  { %v860_v16 = vadd.f32 1e-05, %v828_v22  ;;  %v1197_v6 = vpack.c.bf16 %v1145_v13, %v1143_v10  ;;  %v1010_v5 = vmul.f32 %v5092_v63, %v935_v42  ;;  %v1083_v53 = vadd.f32 %v5105_v38, %v1008_v46 }
 0x2be   :  { %v861_v3 = vadd.f32 1e-05, %v829_v29  ;;  %v1009_v20 = vmul.f32 %v5089_v35, %v934_v0  ;;  %v1196_v28 = vpack.c.bf16 %v1144_v11, %v1142_v33  ;;  %v6483_v33 = vld [vmem:[#allocation24_spill] sm:$0xff] }
 0x2bf   :  { %4096 = vrsqrt.f32 %v860_v16  ;;  %1637 = vmatprep.mubr.bf16.mxu1 %v1197_v6  ;;  %1820 = vmatprep.mubr.bf16.mxu0 %v1197_v6  ;;  %v1085_v34 = vadd.f32 %v5105_v38, %v1010_v5  ;;  %v1147_v26 = vmax.f32 %v1083_v53, 0.0 }
 0x2c0   :  { %v4093_v14 = vpop.eup %4092  ;;  %4098 = vrsqrt.f32 %v861_v3  ;;  %v1084_v12 = vadd.f32 %v5101_v39, %v1009_v20 }
 0x2c1   :  { %v1149_v47 = vmax.f32 %v1085_v34, 0.0  ;;  %v937_v52 = vmul.f32 %v4093_v14, %v4986_v56  ;;  %v936_v40 = vmul.f32 %v4093_v14, %v4983_v2  ;;  %v1082_v56 = vadd.f32 %v5101_v39, %v1007_v54  ;;  %v6484_v54 = vld [vmem:[#allocation21_spill] sm:$0xff] }
 0x2c2   :  { %v772_v61 = vpop.xlane.xlu0 %771  ;;  %v4095_v27 = vpop.eup %4094  ;;  %v1148_v4 = vmax.f32 %v1084_v12, 0.0 }
 0x2c3   :  { %v830_v21 = vmul.f32 0.00390625, %v772_v61  ;;  %v775_v7 = vpop.xlane.xlu1 %774  ;;  %v1199_v15 = vpack.c.bf16 %v1149_v47, %v1147_v26  ;;  %v939_v58 = vmul.f32 %v4095_v27, %v6480_v44  ;;  %v1012_v1 = vmul.f32 %v5092_v63, %v937_v52  ;;  %v6485_v26 = vld [vmem:[#allocation23_spill] sm:$0xff] }
 0x2c4   :  { %v938_v25 = vmul.f32 %v4095_v27, %v6481_v19  ;;  %1638 = vmatmul.mubr.bf16.gmra.mrb[20].mxu1 %v1196_v28  ;;  %1821 = vmatmul.mubr.bf16.gmra.mrb[84].mxu0 %v1196_v28  ;;  %v831_v45 = vmul.f32 0.00390625, %v775_v7  ;;  %v1011_v10 = vmul.f32 %v5089_v35, %v936_v40  ;;  %v1146_v8 = vmax.f32 %v1082_v56, 0.0 }
 0x2c5   :  { %v862_v48 = vadd.f32 1e-05, %v830_v21  ;;  %1647 = vmatprep.mubr.bf16.mxu1 %v1199_v15  ;;  %1828 = vmatprep.mubr.bf16.mxu0 %v1199_v15  ;;  %v1014_v55 = vmul.f32 %v5092_v63, %v939_v58  ;;  %v1087_v2 = vadd.f32 %v5105_v38, %v1012_v1 }
 0x2c6   :  { %v863_v51 = vadd.f32 1e-05, %v831_v45  ;;  %v1013_v32 = vmul.f32 %v5089_v35, %v938_v25  ;;  %v1198_v11 = vpack.c.bf16 %v1148_v4, %v1146_v8  ;;  %v1086_v3 = vadd.f32 %v5101_v39, %v1011_v10  ;;  %v6486_v25 = vld [vmem:[#allocation26_spill] sm:$0xff]  ;;  %v6489_v8 = vld [vmem:[#allocation25_spill] sm:$0xff] }
 0x2c7   :  { %4100 = vrsqrt.f32 %v862_v48  ;;  %v1089_v22 = vadd.f32 %v5105_v38, %v1014_v55  ;;  %v1151_v42 = vmax.f32 %v1087_v2, 0.0 }
 0x2c8   :  { %4102 = vrsqrt.f32 %v863_v51  ;;  %v1088_v6 = vadd.f32 %v5101_v39, %v1013_v32  ;;  %v1150_v44 = vmax.f32 %v1086_v3, 0.0  ;;  %v6487_v51 = vld [vmem:[#allocation28_spill] sm:$0xff] }
 0x2c9   :  { %v4097_v37 = vpop.eup %4096  ;;  %v778_v13 = vpop.xlane.xlu0 %777  ;;  %v1153_v46 = vmax.f32 %v1089_v22, 0.0  ;;  %v6488_v22 = vld [vmem:[#allocation27_spill] sm:$0xff] }
 0x2ca   :  { %v941_v16 = vmul.f32 %v4097_v37, %v6482_v30  ;;  %v4099_v29 = vpop.eup %4098  ;;  %v832_v0 = vmul.f32 0.00390625, %v778_v13  ;;  %v940_v61 = vmul.f32 %v4097_v37, %v6484_v54  ;;  %v1152_v12 = vmax.f32 %v1088_v6, 0.0 }
 0x2cb   :  { %v781_v5 = vpop.xlane.xlu1 %780  ;;  %v1201_v53 = vpack.c.bf16 %v1153_v46, %v1151_v42  ;;  %v943_v20 = vmul.f32 %v4099_v29, %v6483_v33  ;;  %v942_v47 = vmul.f32 %v4099_v29, %v6485_v26 }
 0x2cc   :  { %v1016_v34 = vmul.f32 %v5092_v63, %v941_v16  ;;  %1648 = vmatmul.mubr.bf16.gmra.mrb[24].mxu1 %v1198_v11  ;;  %1829 = vmatmul.mubr.bf16.gmra.mrb[88].mxu0 %v1198_v11  ;;  %v864_v14 = vadd.f32 1e-05, %v832_v0  ;;  %v833_v28 = vmul.f32 0.00390625, %v781_v5  ;;  %v1015_v58 = vmul.f32 %v5089_v35, %v940_v61 }
 0x2cd   :  { %1657 = vmatprep.mubr.bf16.mxu1 %v1201_v53  ;;  %1836 = vmatprep.mubr.bf16.mxu0 %v1201_v53  ;;  %v1018_v52 = vmul.f32 %v5092_v63, %v943_v20  ;;  %v1017_v40 = vmul.f32 %v5089_v35, %v942_v47  ;;  %v1200_v56 = vpack.c.bf16 %v1152_v12, %v1150_v44  ;;  %v6491_v47 = vld [vmem:[#allocation29_spill] sm:$0xff] }
 0x2ce   :  { %v1091_v27 = vadd.f32 %v5105_v38, %v1016_v34  ;;  %4104 = vrsqrt.f32 %v864_v14  ;;  %v865_v21 = vadd.f32 1e-05, %v833_v28  ;;  %v1090_v37 = vadd.f32 %v5101_v39, %v1015_v58  ;;  %v6490_v28 = vld [vmem:[#allocation31_spill] sm:$0xff] }
 0x2cf   :  { %v1093_v7 = vadd.f32 %v5105_v38, %v1018_v52  ;;  %v1092_v55 = vadd.f32 %v5101_v39, %v1017_v40 }
 0x2d0   :  { %4106 = vrsqrt.f32 %v865_v21  ;;  %v1155_v1 = vmax.f32 %v1091_v27, 0.0  ;;  %v1154_v0 = vmax.f32 %v1090_v37, 0.0  ;;  %v6492_v27 = vld [vmem:[#allocation30_spill] sm:$0xff] }
 0x2d1   :  { %v4101_v15 = vpop.eup %4100  ;;  %v1157_v19 = vmax.f32 %v1093_v7, 0.0  ;;  %v1156_v30 = vmax.f32 %v1092_v55, 0.0 }
 0x2d2   :  { %v945_v48 = vmul.f32 %v4101_v15, %v6486_v25  ;;  %v4103_v45 = vpop.eup %4102  ;;  %v944_v13 = vmul.f32 %v4101_v15, %v6489_v8 }
 0x2d3   :  { %v1203_v2 = vpack.c.bf16 %v1157_v19, %v1155_v1  ;;  %v947_v4 = vmul.f32 %v4103_v45, %v6487_v51  ;;  %v946_v10 = vmul.f32 %v4103_v45, %v6488_v22  ;;  %v1202_v20 = vpack.c.bf16 %v1156_v30, %v1154_v0 }
 0x2d4   :  { %v1020_v32 = vmul.f32 %v5092_v63, %v945_v48  ;;  %1658 = vmatmul.mubr.bf16.gmra.mrb[28].mxu1 %v1200_v56  ;;  %1837 = vmatmul.mubr.bf16.gmra.mrb[92].mxu0 %v1200_v56  ;;  %v1019_v6 = vmul.f32 %v5089_v35, %v944_v13 }
 0x2d5   :  { %1667 = vmatprep.mubr.bf16.mxu1 %v1203_v2  ;;  %1844 = vmatprep.mubr.bf16.mxu0 %v1203_v2  ;;  %v1022_v42 = vmul.f32 %v5092_v63, %v947_v4  ;;  %v1021_v16 = vmul.f32 %v5089_v35, %v946_v10 }
 0x2d6   :  { %v1095_v46 = vadd.f32 %v5105_v38, %v1020_v32  ;;  %v1094_v26 = vadd.f32 %v5101_v39, %v1019_v6  ;;  %v6493_v6 = vld [vmem:[#allocation36_spill] sm:$0xff] }
 0x2d7   :  { %v1097_v29 = vadd.f32 %v5105_v38, %v1022_v42  ;;  %v1096_v34 = vadd.f32 %v5101_v39, %v1021_v16 }
 0x2d8   :  { %v4105_v11 = vpop.eup %4104  ;;  %v1159_v5 = vmax.f32 %v1095_v46, 0.0  ;;  %v1158_v44 = vmax.f32 %v1094_v26, 0.0  ;;  %v6495_v26 = vld [vmem:[#allocation38_spill] sm:$0xff] }
 0x2d9   :  { %v1161_v53 = vmax.f32 %v1097_v29, 0.0  ;;  %v949_v3 = vmul.f32 %v4105_v11, %v5046_v50  ;;  %v948_v52 = vmul.f32 %v4105_v11, %v6491_v47  ;;  %v1160_v40 = vmax.f32 %v1096_v34, 0.0 }
 0x2da   :  { %v4107_v33 = vpop.eup %4106 }
 0x2db   :  { %v1205_v14 = vpack.c.bf16 %v1161_v53, %v1159_v5  ;;  %v951_v54 = vmul.f32 %v4107_v33, %v6490_v28  ;;  %v1024_v61 = vmul.f32 %v5092_v63, %v949_v3  ;;  %v950_v21 = vmul.f32 %v4107_v33, %v6492_v27  ;;  %v6494_v53 = vld [vmem:[#allocation32_spill] sm:$0xff] }
 0x2dc   :  { %1668 = vmatmul.mubr.bf16.gmra.mrb[32].mxu1 %v1202_v20  ;;  %1845 = vmatmul.mubr.bf16.gmra.mrb[96].mxu0 %v1202_v20  ;;  %v1023_v58 = vmul.f32 %v5089_v35, %v948_v52  ;;  %v1204_v25 = vpack.c.bf16 %v1160_v40, %v1158_v44  ;;  %v6496_v52 = vld [vmem:[#allocation37_spill] sm:$0xff] }
 0x2dd   :  { %1677 = vmatprep.mubr.bf16.mxu1 %v1205_v14  ;;  %1852 = vmatprep.mubr.bf16.mxu0 %v1205_v14  ;;  %v1026_v50 = vmul.f32 %v5092_v63, %v951_v54  ;;  %v1099_v12 = vadd.f32 %v5105_v38, %v1024_v61  ;;  %v1025_v7 = vmul.f32 %v5089_v35, %v950_v21 }
 0x2de   :  { %v1098_v56 = vadd.f32 %v5101_v39, %v1023_v58 }
 0x2df   :  { %v1101_v15 = vadd.f32 %v5105_v38, %v1026_v50  ;;  %v1163_v1 = vmax.f32 %v1099_v12, 0.0  ;;  %v1100_v48 = vadd.f32 %v5101_v39, %v1025_v7 }
 0x2e0   :  { %v1162_v2 = vmax.f32 %v1098_v56, 0.0 }
 0x2e1   :  { %v1165_v19 = vmax.f32 %v1101_v15, 0.0  ;;  %v1164_v55 = vmax.f32 %v1100_v48, 0.0 }
 0x2e3   :  { %v1207_v45 = vpack.c.bf16 %v1165_v19, %v1163_v1  ;;  %v1206_v51 = vpack.c.bf16 %v1164_v55, %v1162_v2 }
 0x2e4   :  { %1678 = vmatmul.mubr.bf16.gmra.mrb[36].mxu1 %v1204_v25  ;;  %1853 = vmatmul.mubr.bf16.gmra.mrb[100].mxu0 %v1204_v25 }
 0x2e5   :  { %1687 = vmatprep.mubr.bf16.mxu1 %v1207_v45  ;;  %1860 = vmatprep.mubr.bf16.mxu0 %v1207_v45 }
 0x2ec   :  { %1688 = vmatmul.mubr.bf16.gmra.mrb[40].mxu1 %v1206_v51  ;;  %1861 = vmatmul.mubr.bf16.gmra.mrb[104].mxu0 %v1206_v51 }
 0x314   :  { %v784_v4 = vpop.xlane.xlu0 %783 }
 0x315   :  { %v834_v32 = vmul.f32 0.00390625, %v784_v4 }
 0x317   :  { %v866_v22 = vadd.f32 1e-05, %v834_v32 }
 0x318   :  { %v787_v10 = vpop.xlane.xlu1 %786 }
 0x319   :  { %4108 = vrsqrt.f32 %v866_v22  ;;  %v835_v37 = vmul.f32 0.00390625, %v787_v10 }
 0x31b   :  { %v867_v8 = vadd.f32 1e-05, %v835_v37  ;;  %v790_v13 = vpop.xlane.xlu0 %789 }
 0x31c   :  { %v836_v42 = vmul.f32 0.00390625, %v790_v13 }
 0x31d   :  { %4110 = vrsqrt.f32 %v867_v8 }
 0x31e   :  { %v868_v46 = vadd.f32 1e-05, %v836_v42 }
 0x31f   :  { %v793_v30 = vpop.xlane.xlu1 %792 }
 0x320   :  { %4112 = vrsqrt.f32 %v868_v46  ;;  %v837_v16 = vmul.f32 0.00390625, %v793_v30 }
 0x322   :  { %v869_v29 = vadd.f32 1e-05, %v837_v16 }
 0x323   :  { %v4109_v11 = vpop.eup %4108 }
 0x324   :  { %4114 = vrsqrt.f32 %v869_v29  ;;  %v796_v0 = vpop.xlane.xlu0 %795  ;;  %v953_v5 = vmul.f32 %v4109_v11, %v6493_v6  ;;  %v952_v3 = vmul.f32 %v4109_v11, %v6494_v53 }
 0x325   :  { %v838_v33 = vmul.f32 0.00390625, %v796_v0 }
 0x326   :  { %v1028_v20 = vmul.f32 %v5092_v63, %v953_v5  ;;  %v1027_v34 = vmul.f32 %v5089_v35, %v952_v3  ;;  %v6498_v3 = vld [vmem:[#allocation40_spill] sm:$0xff] }
 0x327   :  { %v4111_v14 = vpop.eup %4110  ;;  %v870_v28 = vadd.f32 1e-05, %v838_v33  ;;  %v799_v54 = vpop.xlane.xlu1 %798 }
 0x328   :  { %v839_v61 = vmul.f32 0.00390625, %v799_v54  ;;  %v955_v47 = vmul.f32 %v4111_v14, %v6495_v26  ;;  %v954_v27 = vmul.f32 %v4111_v14, %v6496_v52  ;;  %v1103_v21 = vadd.f32 %v5105_v38, %v1028_v20 }
 0x329   :  { %4116 = vrsqrt.f32 %v870_v28  ;;  %v1102_v15 = vadd.f32 %v5101_v39, %v1027_v34 }
 0x32a   :  { %v4113_v50 = vpop.eup %4112  ;;  %v871_v12 = vadd.f32 1e-05, %v839_v61  ;;  %v1030_v40 = vmul.f32 %v5092_v63, %v955_v47  ;;  %v1029_v7 = vmul.f32 %v5089_v35, %v954_v27  ;;  %v1167_v45 = vmax.f32 %v1103_v21, 0.0 }
 0x32b   :  { %v957_v44 = vmul.f32 %v4113_v50, %v5098_v49  ;;  %v956_v58 = vmul.f32 %v4113_v50, %v5095_v18  ;;  %v1166_v51 = vmax.f32 %v1102_v15, 0.0  ;;  %v6497_v18 = vld [vmem:[#allocation39_spill] sm:$0xff] }
 0x32c   :  { %4118 = vrsqrt.f32 %v871_v12  ;;  %v802_v1 = vpop.xlane.xlu0 %801  ;;  %v1105_v19 = vadd.f32 %v5105_v38, %v1030_v40  ;;  %v1104_v25 = vadd.f32 %v5101_v39, %v1029_v7 }
 0x32d   :  { %v840_v48 = vmul.f32 0.00390625, %v802_v1  ;;  %v1032_v56 = vmul.f32 %v5092_v63, %v957_v44  ;;  %v1031_v32 = vmul.f32 %v5089_v35, %v956_v58 }
 0x32e   :  { %v4115_v55 = vpop.eup %4114  ;;  %v1169_v2 = vmax.f32 %v1105_v19, 0.0  ;;  %v1168_v4 = vmax.f32 %v1104_v25, 0.0 }
 0x32f   :  { %v872_v22 = vadd.f32 1e-05, %v840_v48  ;;  %v959_v49 = vmul.f32 %v4115_v55, %v5118_v17  ;;  %v958_v10 = vmul.f32 %v4115_v55, %v6497_v18  ;;  %v1107_v30 = vadd.f32 %v5105_v38, %v1032_v56 }
 0x330   :  { %v805_v37 = vpop.xlane.xlu1 %804  ;;  %v1209_v8 = vpack.c.bf16 %v1169_v2, %v1167_v45  ;;  %v1208_v13 = vpack.c.bf16 %v1168_v4, %v1166_v51  ;;  %v1106_v29 = vadd.f32 %v5101_v39, %v1031_v32 }
 0x331   :  { %4120 = vrsqrt.f32 %v872_v22  ;;  %v841_v42 = vmul.f32 0.00390625, %v805_v37  ;;  %v1034_v46 = vmul.f32 %v5092_v63, %v959_v49  ;;  %v1033_v16 = vmul.f32 %v5089_v35, %v958_v10 }
 0x332   :  { %1697 = vmatprep.mubr.bf16.mxu1 %v1209_v8  ;;  %1868 = vmatprep.mubr.bf16.mxu0 %v1209_v8  ;;  %v1171_v34 = vmax.f32 %v1107_v30, 0.0  ;;  %v1170_v54 = vmax.f32 %v1106_v29, 0.0 }
 0x333   :  { %v4117_v11 = vpop.eup %4116  ;;  %v873_v0 = vadd.f32 1e-05, %v841_v42  ;;  %1698 = vmatmul.mubr.bf16.gmra.mrb[44].mxu1 %v1208_v13  ;;  %1869 = vmatmul.mubr.bf16.gmra.mrb[108].mxu0 %v1208_v13  ;;  %v1109_v17 = vadd.f32 %v5105_v38, %v1034_v46  ;;  %v1108_v5 = vadd.f32 %v5101_v39, %v1033_v16 }
 0x334   :  { %v808_v6 = vpop.xlane.xlu0 %807  ;;  %v961_v53 = vmul.f32 %v4117_v11, %v5134_v59  ;;  %v960_v33 = vmul.f32 %v4117_v11, %v6498_v3 }
 0x335   :  { %4122 = vrsqrt.f32 %v873_v0  ;;  %v842_v20 = vmul.f32 0.00390625, %v808_v6  ;;  %v1173_v14 = vmax.f32 %v1109_v17, 0.0  ;;  %v1172_v61 = vmax.f32 %v1108_v5, 0.0 }
 0x336   :  { %v4119_v28 = vpop.eup %4118  ;;  %v1036_v26 = vmul.f32 %v5092_v63, %v961_v53  ;;  %v1035_v47 = vmul.f32 %v5089_v35, %v960_v33 }
 0x337   :  { %v874_v52 = vadd.f32 1e-05, %v842_v20  ;;  %v811_v27 = vpop.xlane.xlu1 %810  ;;  %v1211_v21 = vpack.c.bf16 %v1173_v14, %v1171_v34  ;;  %v963_v50 = vmul.f32 %v4119_v28, %v5148_v62  ;;  %v962_v59 = vmul.f32 %v4119_v28, %v5145_v9 }
 0x338   :  { %v843_v12 = vmul.f32 0.00390625, %v811_v27  ;;  %v1210_v40 = vpack.c.bf16 %v1172_v61, %v1170_v54  ;;  %v1111_v7 = vadd.f32 %v5105_v38, %v1036_v26  ;;  %v1110_v58 = vadd.f32 %v5101_v39, %v1035_v47  ;;  %v6499_v47 = vld [vmem:[#allocation17_spill] sm:$0xff] }
 0x339   :  { %4124 = vrsqrt.f32 %v874_v52  ;;  %1707 = vmatprep.mubr.bf16.mxu1 %v1211_v21  ;;  %1876 = vmatprep.mubr.bf16.mxu0 %v1211_v21  ;;  %v1038_v15 = vmul.f32 %v5092_v63, %v963_v50  ;;  %v1037_v44 = vmul.f32 %v5089_v35, %v962_v59 }
 0x33a   :  { %v875_v1 = vadd.f32 1e-05, %v843_v12  ;;  %v1175_v45 = vmax.f32 %v1111_v7, 0.0  ;;  %v1174_v55 = vmax.f32 %v1110_v58, 0.0 }
 0x33b   :  { %v4121_v19 = vpop.eup %4120  ;;  %1708 = vmatmul.mubr.bf16.gmra.mrb[48].mxu1 %v1210_v40  ;;  %1877 = vmatmul.mubr.bf16.gmra.mrb[112].mxu0 %v1210_v40  ;;  %v1113_v62 = vadd.f32 %v5105_v38, %v1038_v15  ;;  %v1112_v9 = vadd.f32 %v5101_v39, %v1037_v44 }
 0x33c   :  { %4126 = vrsqrt.f32 %v875_v1  ;;  %v965_v25 = vmul.f32 %v4121_v19, %v5164_v36  ;;  %v964_v48 = vmul.f32 %v4121_v19, %v5161_v31 }
 0x33d   :  { %v1177_v56 = vmax.f32 %v1113_v62, 0.0  ;;  %v1176_v2 = vmax.f32 %v1112_v9, 0.0 }
 0x33e   :  { %v1040_v51 = vmul.f32 %v5092_v63, %v965_v25  ;;  %v1039_v4 = vmul.f32 %v5089_v35, %v964_v48 }
 0x33f   :  { %v4123_v32 = vpop.eup %4122  ;;  %v1213_v22 = vpack.c.bf16 %v1177_v56, %v1175_v45  ;;  %v1212_v49 = vpack.c.bf16 %v1176_v2, %v1174_v55 }
 0x340   :  { %v967_v18 = vmul.f32 %v4123_v32, %v5177_v60  ;;  %v966_v10 = vmul.f32 %v4123_v32, %v5174_v57  ;;  %v1115_v36 = vadd.f32 %v5105_v38, %v1040_v51  ;;  %v1114_v31 = vadd.f32 %v5101_v39, %v1039_v4 }
 0x341   :  { %1717 = vmatprep.mubr.bf16.mxu1 %v1213_v22  ;;  %1884 = vmatprep.mubr.bf16.mxu0 %v1213_v22 }
 0x342   :  { %v1042_v37 = vmul.f32 %v5092_v63, %v967_v18  ;;  %v1041_v8 = vmul.f32 %v5089_v35, %v966_v10  ;;  %v1179_v30 = vmax.f32 %v1115_v36, 0.0  ;;  %v1178_v16 = vmax.f32 %v1114_v31, 0.0 }
 0x343   :  { %v4125_v13 = vpop.eup %4124  ;;  %1718 = vmatmul.mubr.bf16.gmra.mrb[52].mxu1 %v1212_v49  ;;  %1885 = vmatmul.mubr.bf16.gmra.mrb[116].mxu0 %v1212_v49  ;;  %v6500_v49 = vld [vmem:[#allocation16_spill] sm:$0xff] }
 0x344   :  { %v1117_v42 = vadd.f32 %v5105_v38, %v1042_v37  ;;  %v1116_v46 = vadd.f32 %v5101_v39, %v1041_v8  ;;  %v969_v60 = vmul.f32 %v4125_v13, %v5192_v43  ;;  %v968_v57 = vmul.f32 %v4125_v13, %v5189_v41  ;;  %v6501_v8 = vld [vmem:[#allocation18_spill] sm:$0xff] }
 0x345   :  { %v1294_v18 = vsub.s32 2, %v6500_v49 }
 0x346   :  { %v4127_v29 = vpop.eup %4126  ;;  %v1181_v11 = vmax.f32 %v1117_v42, 0.0  ;;  %v1180_v0 = vmax.f32 %v1116_v46, 0.0  ;;  %v1044_v17 = vmul.f32 %v5092_v63, %v969_v60  ;;  %v1043_v6 = vmul.f32 %v5089_v35, %v968_v57 }
 0x347   :  { %v971_v5 = vmul.f32 %v4127_v29, %v5207_v24  ;;  %v970_v53 = vmul.f32 %v4127_v29, %v5204_v23 }
 0x348   :  { %v1215_v3 = vpack.c.bf16 %v1181_v11, %v1179_v30  ;;  %v1214_v33 = vpack.c.bf16 %v1180_v0, %v1178_v16  ;;  %v1119_v43 = vadd.f32 %v5105_v38, %v1044_v17  ;;  %v1118_v34 = vadd.f32 %v5101_v39, %v1043_v6 }
 0x349   :  { %v1046_v20 = vmul.f32 %v5092_v63, %v971_v5  ;;  %v1045_v41 = vmul.f32 %v5089_v35, %v970_v53  ;;  %v1282_v35 = vld [vmem:[%s6329_s6] sm:$0x7] }
 0x34a   :  { %1727 = vmatprep.mubr.bf16.mxu1 %v1215_v3  ;;  %1892 = vmatprep.mubr.bf16.mxu0 %v1215_v3  ;;  %v1183_v28 = vmax.f32 %v1119_v43, 0.0  ;;  %v1182_v54 = vmax.f32 %v1118_v34, 0.0  ;;  %v5376_v52 = vrot.slane %v1282_v35, %v6499_v47  ;;  %v5406_v13 = vrot.slane %v1282_v35, %v6501_v8 }
 0x34b   :  { %1728 = vmatmul.mubr.bf16.gmra.mrb[56].mxu1 %v1214_v33  ;;  %1893 = vmatmul.mubr.bf16.gmra.mrb[120].mxu0 %v1214_v33  ;;  %v1121_v14 = vadd.f32 %v5105_v38, %v1046_v20  ;;  %v1120_v24 = vadd.f32 %v5101_v39, %v1045_v41  ;;  %v5408_v42 = vrot.slane %v1282_v35, %v1294_v18 }
 0x34d   :  { %v1185_v23 = vmax.f32 %v1121_v14, 0.0  ;;  %v1184_v61 = vmax.f32 %v1120_v24, 0.0 }
 0x34f   :  { %v1217_v26 = vpack.c.bf16 %v1185_v23, %v1183_v28  ;;  %v1216_v63 = vpack.c.bf16 %v1184_v61, %v1182_v54 }
 0x351   :  { %1737 = vmatprep.mubr.bf16.mxu1 %v1217_v26  ;;  %1900 = vmatprep.mubr.bf16.mxu0 %v1217_v26 }
 0x353   :  { %1738 = vmatmul.mubr.bf16.gmra.mrb[60].mxu1 %v1216_v63  ;;  %1901 = vmatmul.mubr.bf16.gmra.mrb[124].mxu0 %v1216_v63 }
 0x36b   :  { %v1589_v38 = vpop.f32.mrb[0].mxu1 }
 0x36c   :  { %v3723_v27 = vpop.f32.mrb[64].mxu0  ;;  %v5378_v39 = vpop.f32.mrb[1].mxu1  ;;  %v1590_v59 = vadd.f32 %v1589_v38, %v5376_v52 }
 0x36d   :  { %v3724_v21 = vpop.f32.mrb[65].mxu0  ;;  %v1593_v50 = vpop.f32.mrb[2].mxu1 }
 0x36e   :  { %v5381_v12 = vadd.f32 %v3724_v21, %v3723_v27  ;;  %v1594_v40 = vadd.f32 %v1593_v50, %v5376_v52  ;;  %v3726_v7 = vpop.f32.mrb[66].mxu0  ;;  %v5384_v15 = vpop.f32.mrb[3].mxu1 }
 0x36f   :  { %v3727_v44 = vpop.f32.mrb[67].mxu0 }
 0x370   :  { %v3600_v58 = vpack.c.bf16 %v1594_v40, %v1590_v59  ;;  %v5386_v1 = vadd.f32 %v3727_v44, %v3726_v7 }
 0x372   :  { %3601 = vst [vmem:[%s6335_s12] sm:$0xff] %v3600_v58  }
 0x375   :  { %v1599_v19 = vpop.f32.mrb[4].mxu1  ;;  %v3729_v62 = vpop.f32.mrb[68].mxu0 }
 0x376   :  { %v5391_v9 = vpop.f32.mrb[5].mxu1  ;;  %v3730_v25 = vpop.f32.mrb[69].mxu0  ;;  %v1600_v55 = vadd.f32 %v1599_v19, %v5376_v52 }
 0x377   :  { %v5393_v48 = vadd.f32 %v3730_v25, %v3729_v62  ;;  %v1603_v45 = vpop.f32.mrb[6].mxu1  ;;  %v3732_v56 = vpop.f32.mrb[70].mxu0 }
 0x378   :  { %v1604_v2 = vadd.f32 %v1603_v45, %v5376_v52  ;;  %v5397_v51 = vpop.f32.mrb[7].mxu1  ;;  %v3733_v4 = vpop.f32.mrb[71].mxu0 }
 0x379   :  { %v5399_v32 = vadd.f32 %v3733_v4, %v3732_v56 }
 0x37a   :  { %v3605_v22 = vpack.c.bf16 %v1604_v2, %v1600_v55 }
 0x37c   :  { %3692 = vst [vmem:[%s6335_s12 + $0x8] sm:$0xff] %v3605_v22  }
 0x37f   :  { %v1609_v10 = vpop.f32.mrb[8].mxu1  ;;  %v3735_v36 = vpop.f32.mrb[72].mxu0 }
 0x380   :  { %v1611_v31 = vpop.f32.mrb[9].mxu1  ;;  %v3736_v37 = vpop.f32.mrb[73].mxu0  ;;  %v1610_v30 = vadd.f32 %v1609_v10, %v5376_v52 }
 0x381   :  { %v3737_v46 = vadd.f32 %v3736_v37, %v3735_v36  ;;  %v1613_v60 = vpop.f32.mrb[10].mxu1  ;;  %v3738_v57 = vpop.f32.mrb[74].mxu0  ;;  %v5413_v0 = vadd.f32 %v1611_v31, %v5406_v13 }
 0x382   :  { %v1614_v16 = vadd.f32 %v1613_v60, %v5376_v52  ;;  %v1615_v29 = vpop.f32.mrb[11].mxu1  ;;  %v3739_v11 = vpop.f32.mrb[75].mxu0 }
 0x383   :  { %v5416_v17 = vadd.f32 %v3737_v46, %v5408_v42  ;;  %v3740_v6 = vadd.f32 %v3739_v11, %v3738_v57  ;;  %v5419_v53 = vadd.f32 %v1615_v29, %v5406_v13 }
 0x384   :  { %v3610_v5 = vpack.c.bf16 %v1614_v16, %v1610_v30 }
 0x385   :  { %v5422_v3 = vadd.f32 %v3740_v6, %v5408_v42  ;;  %v1923_v33 = vadd.f32 %v5416_v17, %v5413_v0 }
 0x386   :  { %3693 = vst [vmem:[%s6335_s12 + $0x10] sm:$0xff] %v3610_v5  }
 0x387   :  { %v1619_v20 = vpop.f32.mrb[12].mxu1  ;;  %v3741_v43 = vpop.f32.mrb[76].mxu0  ;;  %1924 = vadd.xlane.f32.xlu0 %v1923_v33  ;;  %v1926_v41 = vadd.f32 %v5422_v3, %v5419_v53 }
 0x388   :  { %v1621_v34 = vpop.f32.mrb[13].mxu1  ;;  %v3742_v14 = vpop.f32.mrb[77].mxu0  ;;  %v1620_v54 = vadd.f32 %v1619_v20, %v5376_v52 }
 0x389   :  { %v3743_v24 = vadd.f32 %v3742_v14, %v3741_v43  ;;  %1927 = vadd.xlane.f32.xlu1 %v1926_v41  ;;  %v1623_v28 = vpop.f32.mrb[14].mxu1  ;;  %v3744_v23 = vpop.f32.mrb[78].mxu0  ;;  %v5434_v35 = vadd.f32 %v1621_v34, %v5406_v13 }
 0x38a   :  { %v1624_v61 = vadd.f32 %v1623_v28, %v5376_v52  ;;  %v1625_v26 = vpop.f32.mrb[15].mxu1  ;;  %v3745_v63 = vpop.f32.mrb[79].mxu0 }
 0x38b   :  { %v5437_v38 = vadd.f32 %v3743_v24, %v5408_v42  ;;  %v3746_v27 = vadd.f32 %v3745_v63, %v3744_v23  ;;  %v5440_v50 = vadd.f32 %v1625_v26, %v5406_v13 }
 0x38c   :  { %v3615_v21 = vpack.c.bf16 %v1624_v61, %v1620_v54 }
 0x38d   :  { %v5443_v59 = vadd.f32 %v3746_v27, %v5408_v42  ;;  %v1929_v40 = vadd.f32 %v5437_v38, %v5434_v35 }
 0x38e   :  { %3694 = vst [vmem:[%s6335_s12 + $0x18] sm:$0xff] %v3615_v21  }
 0x38f   :  { %v1629_v7 = vpop.f32.mrb[16].mxu1  ;;  %v3747_v44 = vpop.f32.mrb[80].mxu0  ;;  %1930 = vadd.xlane.f32.xlu0 %v1929_v40  ;;  %v1932_v58 = vadd.f32 %v5443_v59, %v5440_v50 }
 0x390   :  { %v1631_v19 = vpop.f32.mrb[17].mxu1  ;;  %v3748_v62 = vpop.f32.mrb[81].mxu0  ;;  %v1630_v55 = vadd.f32 %v1629_v7, %v5376_v52 }
 0x391   :  { %v3749_v25 = vadd.f32 %v3748_v62, %v3747_v44  ;;  %1933 = vadd.xlane.f32.xlu1 %v1932_v58  ;;  %v1633_v45 = vpop.f32.mrb[18].mxu1  ;;  %v3750_v56 = vpop.f32.mrb[82].mxu0  ;;  %v5455_v49 = vadd.f32 %v1631_v19, %v5406_v13 }
 0x392   :  { %v1634_v2 = vadd.f32 %v1633_v45, %v5376_v52  ;;  %v1635_v4 = vpop.f32.mrb[19].mxu1  ;;  %v3751_v22 = vpop.f32.mrb[83].mxu0 }
 0x393   :  { %v5458_v18 = vadd.f32 %v3749_v25, %v5408_v42  ;;  %v3752_v10 = vadd.f32 %v3751_v22, %v3750_v56  ;;  %v5461_v31 = vadd.f32 %v1635_v4, %v5406_v13 }
 0x394   :  { %v3620_v36 = vpack.c.bf16 %v1634_v2, %v1630_v55 }
 0x395   :  { %v5464_v37 = vadd.f32 %v3752_v10, %v5408_v42  ;;  %v1935_v46 = vadd.f32 %v5458_v18, %v5455_v49 }
 0x396   :  { %3695 = vst [vmem:[%s6335_s12 + $0x20] sm:$0xff] %v3620_v36  }
 0x397   :  { %1936 = vadd.xlane.f32.xlu0 %v1935_v46  ;;  %v1639_v60 = vpop.f32.mrb[20].mxu1  ;;  %v3753_v57 = vpop.f32.mrb[84].mxu0  ;;  %v1938_v30 = vadd.f32 %v5464_v37, %v5461_v31 }
 0x398   :  { %v1641_v16 = vpop.f32.mrb[21].mxu1  ;;  %v3754_v29 = vpop.f32.mrb[85].mxu0  ;;  %v1640_v33 = vadd.f32 %v1639_v60, %v5376_v52 }
 0x399   :  { %v3755_v11 = vadd.f32 %v3754_v29, %v3753_v57  ;;  %1939 = vadd.xlane.f32.xlu1 %v1938_v30  ;;  %v1643_v6 = vpop.f32.mrb[22].mxu1  ;;  %v3756_v5 = vpop.f32.mrb[86].mxu0  ;;  %v5476_v34 = vadd.f32 %v1641_v16, %v5406_v13 }
 0x39a   :  { %v1644_v20 = vadd.f32 %v1643_v6, %v5376_v52  ;;  %v1645_v43 = vpop.f32.mrb[23].mxu1  ;;  %v3757_v41 = vpop.f32.mrb[87].mxu0 }
 0x39b   :  { %v5479_v14 = vadd.f32 %v3755_v11, %v5408_v42  ;;  %v3758_v24 = vadd.f32 %v3757_v41, %v3756_v5  ;;  %v5482_v23 = vadd.f32 %v1645_v43, %v5406_v13 }
 0x39c   :  { %v3625_v28 = vpack.c.bf16 %v1644_v20, %v1640_v33 }
 0x39d   :  { %v5485_v54 = vadd.f32 %v3758_v24, %v5408_v42  ;;  %v1941_v61 = vadd.f32 %v5479_v14, %v5476_v34 }
 0x39e   :  { %3696 = vst [vmem:[%s6335_s12 + $0x28] sm:$0xff] %v3625_v28  }
 0x39f   :  { %1942 = vadd.xlane.f32.xlu0 %v1941_v61  ;;  %v1649_v26 = vpop.f32.mrb[24].mxu1  ;;  %v3759_v63 = vpop.f32.mrb[88].mxu0  ;;  %v1944_v27 = vadd.f32 %v5485_v54, %v5482_v23 }
 0x3a0   :  { %v1651_v21 = vpop.f32.mrb[25].mxu1  ;;  %v3760_v40 = vpop.f32.mrb[89].mxu0  ;;  %v1650_v19 = vadd.f32 %v1649_v26, %v5376_v52 }
 0x3a1   :  { %v3761_v7 = vadd.f32 %v3760_v40, %v3759_v63  ;;  %1945 = vadd.xlane.f32.xlu1 %v1944_v27  ;;  %v1653_v44 = vpop.f32.mrb[26].mxu1  ;;  %v3762_v58 = vpop.f32.mrb[90].mxu0  ;;  %v5497_v56 = vadd.f32 %v1651_v21, %v5406_v13 }
 0x3a2   :  { %v1654_v62 = vadd.f32 %v1653_v44, %v5376_v52  ;;  %v1655_v25 = vpop.f32.mrb[27].mxu1  ;;  %v3763_v45 = vpop.f32.mrb[91].mxu0 }
 0x3a3   :  { %v5500_v55 = vadd.f32 %v3761_v7, %v5408_v42  ;;  %v3764_v2 = vadd.f32 %v3763_v45, %v3762_v58  ;;  %v5503_v22 = vadd.f32 %v1655_v25, %v5406_v13 }
 0x3a4   :  { %v3630_v4 = vpack.c.bf16 %v1654_v62, %v1650_v19 }
 0x3a5   :  { %v5506_v10 = vadd.f32 %v3764_v2, %v5408_v42  ;;  %v1947_v36 = vadd.f32 %v5500_v55, %v5497_v56 }
 0x3a6   :  { %3697 = vst [vmem:[%s6335_s12 + $0x30] sm:$0xff] %v3630_v4  }
 0x3a7   :  { %1948 = vadd.xlane.f32.xlu0 %v1947_v36  ;;  %v1659_v46 = vpop.f32.mrb[28].mxu1  ;;  %v3765_v60 = vpop.f32.mrb[92].mxu0  ;;  %v1950_v57 = vadd.f32 %v5506_v10, %v5503_v22 }
 0x3a8   :  { %v1661_v30 = vpop.f32.mrb[29].mxu1  ;;  %v3766_v16 = vpop.f32.mrb[93].mxu0  ;;  %v1660_v5 = vadd.f32 %v1659_v46, %v5376_v52 }
 0x3a9   :  { %v3767_v29 = vadd.f32 %v3766_v16, %v3765_v60  ;;  %1951 = vadd.xlane.f32.xlu1 %v1950_v57  ;;  %v1663_v11 = vpop.f32.mrb[30].mxu1  ;;  %v3768_v6 = vpop.f32.mrb[94].mxu0  ;;  %v5518_v41 = vadd.f32 %v1661_v30, %v5406_v13 }
 0x3aa   :  { %v1664_v33 = vadd.f32 %v1663_v11, %v5376_v52  ;;  %v1665_v20 = vpop.f32.mrb[31].mxu1  ;;  %v3769_v43 = vpop.f32.mrb[95].mxu0 }
 0x3ab   :  { %v5521_v24 = vadd.f32 %v3767_v29, %v5408_v42  ;;  %v3770_v28 = vadd.f32 %v3769_v43, %v3768_v6  ;;  %v5524_v26 = vadd.f32 %v1665_v20, %v5406_v13 }
 0x3ac   :  { %v3635_v61 = vpack.c.bf16 %v1664_v33, %v1660_v5 }
 0x3ad   :  { %v5527_v63 = vadd.f32 %v3770_v28, %v5408_v42  ;;  %v1953_v27 = vadd.f32 %v5521_v24, %v5518_v41 }
 0x3ae   :  { %3698 = vst [vmem:[%s6335_s12 + $0x38] sm:$0xff] %v3635_v61  }
 0x3af   :  { %1954 = vadd.xlane.f32.xlu0 %v1953_v27  ;;  %v1669_v21 = vpop.f32.mrb[32].mxu1  ;;  %v3771_v40 = vpop.f32.mrb[96].mxu0  ;;  %v1956_v7 = vadd.f32 %v5527_v63, %v5524_v26 }
 0x3b0   :  { %v1671_v44 = vpop.f32.mrb[33].mxu1  ;;  %v3772_v58 = vpop.f32.mrb[97].mxu0  ;;  %v1670_v45 = vadd.f32 %v1669_v21, %v5376_v52 }
 0x3b1   :  { %v3773_v19 = vadd.f32 %v3772_v58, %v3771_v40  ;;  %1957 = vadd.xlane.f32.xlu1 %v1956_v7  ;;  %v1673_v62 = vpop.f32.mrb[34].mxu1  ;;  %v3774_v25 = vpop.f32.mrb[98].mxu0  ;;  %v5539_v46 = vadd.f32 %v1671_v44, %v5406_v13 }
 0x3b2   :  { %v1674_v2 = vadd.f32 %v1673_v62, %v5376_v52  ;;  %v1675_v4 = vpop.f32.mrb[35].mxu1  ;;  %v3775_v36 = vpop.f32.mrb[99].mxu0 }
 0x3b3   :  { %v5542_v60 = vadd.f32 %v3773_v19, %v5408_v42  ;;  %v3776_v57 = vadd.f32 %v3775_v36, %v3774_v25  ;;  %v5545_v16 = vadd.f32 %v1675_v4, %v5406_v13 }
 0x3b4   :  { %v3640_v30 = vpack.c.bf16 %v1674_v2, %v1670_v45  ;;  %v5567_v45 = vadd.f32 %v5381_v12, %v5408_v42  ;;  %v5586_v12 = vadd.f32 %v5386_v1, %v5408_v42 }
 0x3b5   :  { %v5548_v29 = vadd.f32 %v3776_v57, %v5408_v42  ;;  %v1959_v11 = vadd.f32 %v5542_v60, %v5539_v46  ;;  %v5582_v57 = vadd.f32 %v5378_v39, %v5406_v13 }
 0x3b6   :  { %3699 = vst [vmem:[%s6335_s12 + $0x40] sm:$0xff] %v3640_v30   ;;  %6502 = vst [vmem:[#allocation33_spill] sm:$0xff] %v5567_v45 }
 0x3b7   :  { %1960 = vadd.xlane.f32.xlu0 %v1959_v11  ;;  %v1679_v6 = vpop.f32.mrb[36].mxu1  ;;  %v3777_v5 = vpop.f32.mrb[100].mxu0  ;;  %v1962_v33 = vadd.f32 %v5548_v29, %v5545_v16  ;;  %6503 = vst [vmem:[#allocation34_spill] sm:$0xff] %v5582_v57  ;;  %6504 = vst [vmem:[#allocation35_spill] sm:$0xff] %v5586_v12  ;;  %v1911_v1 = vadd.f32 %v5567_v45, %v5582_v57 }
 0x3b8   :  { %v1681_v20 = vpop.f32.mrb[37].mxu1  ;;  %v3778_v43 = vpop.f32.mrb[101].mxu0  ;;  %v1680_v21 = vadd.f32 %v1679_v6, %v5376_v52 }
 0x3b9   :  { %v3779_v28 = vadd.f32 %v3778_v43, %v3777_v5  ;;  %1963 = vadd.xlane.f32.xlu1 %v1962_v33  ;;  %v1683_v61 = vpop.f32.mrb[38].mxu1  ;;  %v3780_v27 = vpop.f32.mrb[102].mxu0  ;;  %v5560_v58 = vadd.f32 %v1681_v20, %v5406_v13  ;;  %v5592_v20 = vadd.f32 %v5384_v15, %v5406_v13 }
 0x3ba   :  { %v1684_v40 = vadd.f32 %v1683_v61, %v5376_v52  ;;  %v1685_v7 = vpop.f32.mrb[39].mxu1  ;;  %v3781_v44 = vpop.f32.mrb[103].mxu0 }
 0x3bb   :  { %v5563_v19 = vadd.f32 %v3779_v28, %v5408_v42  ;;  %v3782_v62 = vadd.f32 %v3781_v44, %v3780_v27  ;;  %v5570_v2 = vadd.f32 %v1685_v7, %v5406_v13  ;;  %6505 = vst [vmem:[#allocation20_spill] sm:$0xff] %v5592_v20 }
 0x3bc   :  { %v3645_v25 = vpack.c.bf16 %v1684_v40, %v1680_v21 }
 0x3bd   :  { %v5573_v4 = vadd.f32 %v3782_v62, %v5408_v42  ;;  %v1965_v36 = vadd.f32 %v5563_v19, %v5560_v58  ;;  %v1914_v62 = vadd.f32 %v5586_v12, %v5592_v20 }
 0x3be   :  { %3700 = vst [vmem:[%s6335_s12 + $0x48] sm:$0xff] %v3645_v25  }
 0x3bf   :  { %1966 = vadd.xlane.f32.xlu0 %v1965_v36  ;;  %v1689_v30 = vpop.f32.mrb[40].mxu1  ;;  %v3783_v11 = vpop.f32.mrb[104].mxu0  ;;  %v1968_v6 = vadd.f32 %v5573_v4, %v5570_v2 }
 0x3c0   :  { %v1691_v5 = vpop.f32.mrb[41].mxu1  ;;  %v3784_v33 = vpop.f32.mrb[105].mxu0  ;;  %v1690_v61 = vadd.f32 %v1689_v30, %v5376_v52 }
 0x3c1   :  { %v3785_v43 = vadd.f32 %v3784_v33, %v3783_v11  ;;  %1969 = vadd.xlane.f32.xlu1 %v1968_v6  ;;  %v1693_v39 = vpop.f32.mrb[42].mxu1  ;;  %v3786_v28 = vpop.f32.mrb[106].mxu0  ;;  %v5599_v7 = vadd.f32 %v1691_v5, %v5406_v13  ;;  %v4048_v5 = vld [vmem:[#allocation8 + $0x40] sm:$0xff]  }
 0x3c2   :  { %v1694_v27 = vadd.f32 %v1693_v39, %v5376_v52  ;;  %v1695_v21 = vpop.f32.mrb[43].mxu1  ;;  %v3787_v40 = vpop.f32.mrb[107].mxu0  ;;  %v4049_v33 = vld [vmem:[#allocation8] sm:$0xff]   ;;  %3931 = vmatprep.subr.bf16.mxu1 %v4048_v5  ;;  %3819 = vmatprep.subr.bf16.mxu0 %v4048_v5 }
 0x3c3   :  { %v5602_v44 = vadd.f32 %v3785_v43, %v5408_v42  ;;  %v3788_v15 = vadd.f32 %v3787_v40, %v3786_v28  ;;  %1912 = vadd.xlane.f32.xlu0 %v1911_v1  ;;  %v5607_v36 = vadd.f32 %v1695_v21, %v5406_v13  ;;  %3939 = vmatpush3.bf16.msra.mxu1 %v4049_v33 }
 0x3c4   :  { %v3650_v25 = vpack.c.bf16 %v1694_v27, %v1690_v61  ;;  %3820 = vmatpush3.bf16.msra.mxu0 %v4049_v33 }
 0x3c5   :  { %v5610_v30 = vadd.f32 %v3788_v15, %v5408_v42  ;;  %1915 = vadd.xlane.f32.xlu1 %v1914_v62  ;;  %v1971_v11 = vadd.f32 %v5602_v44, %v5599_v7 }
 0x3c6   :  { %3701 = vst [vmem:[%s6335_s12 + $0x50] sm:$0xff] %v3650_v25  }
 0x3c7   :  { %1972 = vadd.xlane.f32.xlu0 %v1971_v11  ;;  %v1974_v6 = vadd.f32 %v5610_v30, %v5607_v36 }
 0x3c9   :  { %1975 = vadd.xlane.f32.xlu1 %v1974_v6 }
 0x406   :  { %v1699_v43 = vpop.f32.mrb[44].mxu1  ;;  %v3789_v39 = vpop.f32.mrb[108].mxu0 }
 0x407   :  { %v1701_v28 = vpop.f32.mrb[45].mxu1  ;;  %v3790_v1 = vpop.f32.mrb[109].mxu0  ;;  %v1700_v40 = vadd.f32 %v1699_v43, %v5376_v52 }
 0x408   :  { %v3791_v61 = vadd.f32 %v3790_v1, %v3789_v39  ;;  %v1703_v27 = vpop.f32.mrb[46].mxu1  ;;  %v3792_v21 = vpop.f32.mrb[110].mxu0  ;;  %v5622_v11 = vadd.f32 %v1701_v28, %v5406_v13 }
 0x409   :  { %v1704_v15 = vadd.f32 %v1703_v27, %v5376_v52  ;;  %v1705_v62 = vpop.f32.mrb[47].mxu1  ;;  %v3793_v25 = vpop.f32.mrb[111].mxu0 }
 0x40a   :  { %6506 = vst [vmem:[#allocation19_spill] sm:$0xff] %v5622_v11  ;;  %v5625_v6 = vadd.f32 %v3791_v61, %v5408_v42  ;;  %v3794_v5 = vadd.f32 %v3793_v25, %v3792_v21  ;;  %v5628_v8 = vadd.f32 %v1705_v62, %v5406_v13 }
 0x40b   :  { %v3655_v33 = vpack.c.bf16 %v1704_v15, %v1700_v40 }
 0x40c   :  { %6507 = vst [vmem:[#allocation22_spill] sm:$0xff] %v5625_v6  ;;  %6508 = vst [vmem:[#allocation24_spill] sm:$0xff] %v5628_v8  ;;  %v5631_v39 = vadd.f32 %v3794_v5, %v5408_v42  ;;  %v1977_v43 = vadd.f32 %v5625_v6, %v5622_v11  ;;  %v4051_v11 = vld [vmem:[#allocation8 + $0x8] sm:$0xff]  }
 0x40d   :  { %3702 = vst [vmem:[%s6335_s12 + $0x58] sm:$0xff] %v3655_v33  }
 0x40e   :  { %6509 = vst [vmem:[#allocation21_spill] sm:$0xff] %v5631_v39  ;;  %1978 = vadd.xlane.f32.xlu0 %v1977_v43  ;;  %v1709_v28 = vpop.f32.mrb[48].mxu1  ;;  %v3795_v1 = vpop.f32.mrb[112].mxu0  ;;  %v1980_v61 = vadd.f32 %v5631_v39, %v5628_v8 }
 0x40f   :  { %v1711_v27 = vpop.f32.mrb[49].mxu1  ;;  %v3796_v21 = vpop.f32.mrb[113].mxu0  ;;  %v1710_v25 = vadd.f32 %v1709_v28, %v5376_v52 }
 0x410   :  { %v3797_v40 = vadd.f32 %v3796_v21, %v3795_v1  ;;  %1981 = vadd.xlane.f32.xlu1 %v1980_v61  ;;  %v1713_v15 = vpop.f32.mrb[50].mxu1  ;;  %v3798_v62 = vpop.f32.mrb[114].mxu0  ;;  %v5643_v33 = vadd.f32 %v1711_v27, %v5406_v13 }
 0x411   :  { %v1714_v5 = vadd.f32 %v1713_v15, %v5376_v52  ;;  %v1715_v47 = vpop.f32.mrb[51].mxu1  ;;  %v3799_v12 = vpop.f32.mrb[115].mxu0 }
 0x412   :  { %6510 = vst [vmem:[#allocation23_spill] sm:$0xff] %v5643_v33  ;;  %v5646_v43 = vadd.f32 %v3797_v40, %v5408_v42  ;;  %v3800_v20 = vadd.f32 %v3799_v12, %v3798_v62  ;;  %v5649_v57 = vadd.f32 %v1715_v47, %v5406_v13 }
 0x413   :  { %v3660_v45 = vpack.c.bf16 %v1714_v5, %v1710_v25 }
 0x414   :  { %6511 = vst [vmem:[#allocation26_spill] sm:$0xff] %v5646_v43  ;;  %6512 = vst [vmem:[#allocation28_spill] sm:$0xff] %v5649_v57  ;;  %v5652_v1 = vadd.f32 %v3800_v20, %v5408_v42  ;;  %v1925_v61 = vpop.xlane.xlu0 %1924  ;;  %v1983_v28 = vadd.f32 %v5646_v43, %v5643_v33 }
 0x415   :  { %3703 = vst [vmem:[%s6335_s12 + $0x60] sm:$0xff] %v3660_v45   ;;  %v2011_v27 = vmul.f32 0.00390625, %v1925_v61 }
 0x416   :  { %6513 = vst [vmem:[#allocation27_spill] sm:$0xff] %v5652_v1  ;;  %v1928_v21 = vpop.xlane.xlu1 %1927  ;;  %1984 = vadd.xlane.f32.xlu0 %v1983_v28  ;;  %v1719_v40 = vpop.f32.mrb[52].mxu1  ;;  %v1986_v12 = vadd.f32 %v5652_v1, %v5649_v57 }
 0x417   :  { %v2012_v47 = vmul.f32 0.00390625, %v1928_v21  ;;  %v3801_v15 = vpop.f32.mrb[116].mxu0  ;;  %v1721_v62 = vpop.f32.mrb[53].mxu1  ;;  %v5662_v20 = vsub.f32 %v5413_v0, %v2011_v27  ;;  %v5665_v25 = vsub.f32 %v5416_v17, %v2011_v27  ;;  %v1720_v45 = vadd.f32 %v1719_v40, %v5376_v52 }
 0x418   :  { %v3802_v5 = vpop.f32.mrb[117].mxu0  ;;  %1987 = vadd.xlane.f32.xlu1 %v1986_v12  ;;  %v1723_v43 = vpop.f32.mrb[54].mxu1  ;;  %v5676_v17 = vadd.f32 %v1721_v62, %v5406_v13 }
 0x419   :  { %6514 = vst [vmem:[#allocation25_spill] sm:$0xff] %v5662_v20  ;;  %6515 = vst [vmem:[#allocation31_spill] sm:$0xff] %v5665_v25  ;;  %v3803_v61 = vadd.f32 %v3802_v5, %v3801_v15  ;;  %v1724_v28 = vadd.f32 %v1723_v43, %v5376_v52  ;;  %v3804_v33 = vpop.f32.mrb[118].mxu0  ;;  %v1725_v39 = vpop.f32.mrb[55].mxu1  ;;  %v5670_v21 = vsub.f32 %v5419_v53, %v2012_v47 }
 0x41a   :  { %v5673_v1 = vsub.f32 %v5422_v3, %v2012_v47  ;;  %v3805_v0 = vpop.f32.mrb[119].mxu0  ;;  %6518 = vst [vmem:[#allocation36_spill] sm:$0xff] %v5676_v17  ;;  %v2111_v43 = vmul.f32 %v5662_v20, %v5662_v20  ;;  %v2112_v53 = vmul.f32 %v5665_v25, %v5665_v25 }
 0x41b   :  { %6516 = vst [vmem:[#allocation29_spill] sm:$0xff] %v5670_v21  ;;  %v5679_v27 = vadd.f32 %v3803_v61, %v5408_v42  ;;  %v3665_v12 = vpack.c.bf16 %v1724_v28, %v1720_v45  ;;  %v3806_v40 = vadd.f32 %v3805_v0, %v3804_v33  ;;  %v5694_v33 = vadd.f32 %v1725_v39, %v5406_v13 }
 0x41c   :  { %6517 = vst [vmem:[#allocation30_spill] sm:$0xff] %v5673_v1  ;;  %v1931_v15 = vpop.xlane.xlu0 %1930  ;;  %v2113_v61 = vmul.f32 %v5670_v21, %v5670_v21  ;;  %v2114_v28 = vmul.f32 %v5673_v1, %v5673_v1 }
 0x41d   :  { %6519 = vst [vmem:[#allocation32_spill] sm:$0xff] %v5679_v27  ;;  %3704 = vst [vmem:[%s6335_s12 + $0x68] sm:$0xff] %v3665_v12   ;;  %v5689_v3 = vadd.f32 %v3806_v40, %v5408_v42  ;;  %v2013_v47 = vmul.f32 0.00390625, %v1931_v15  ;;  %v1989_v62 = vadd.f32 %v5679_v27, %v5676_v17  ;;  %v2179_v27 = vadd.f32 %v2112_v53, %v2111_v43  ;;  %v4050_v17 = vld [vmem:[#allocation8 + $0x48] sm:$0xff]  }
 0x41e   :  { %v1934_v5 = vpop.xlane.xlu1 %1933  ;;  %v1729_v45 = vpop.f32.mrb[56].mxu1  ;;  %3932 = vmatprep.subr.bf16.mxu1 %v4050_v17  ;;  %3821 = vmatprep.subr.bf16.mxu0 %v4050_v17 }
 0x41f   :  { %6520 = vst [vmem:[#allocation38_spill] sm:$0xff] %v5689_v3  ;;  %1990 = vadd.xlane.f32.xlu0 %v1989_v62  ;;  %v3807_v0 = vpop.f32.mrb[120].mxu0  ;;  %v1731_v12 = vpop.f32.mrb[57].mxu1  ;;  %v5701_v40 = vsub.f32 %v5434_v35, %v2013_v47  ;;  %v2014_v15 = vmul.f32 0.00390625, %v1934_v5  ;;  %v1992_v39 = vadd.f32 %v5689_v3, %v5694_v33  ;;  %v5706_v57 = vsub.f32 %v5437_v38, %v2013_v47 }
 0x420   :  { %v3808_v25 = vpop.f32.mrb[121].mxu0  ;;  %v1733_v20 = vpop.f32.mrb[58].mxu1  ;;  %v1730_v21 = vadd.f32 %v1729_v45, %v5376_v52  ;;  %v2182_v5 = vadd.f32 %v2114_v28, %v2113_v61  ;;  %v5711_v3 = vadd.f32 %v1731_v12, %v5406_v13  ;;  %3940 = vmatpush3.bf16.msra.mxu1 %v4051_v11  ;;  %3822 = vmatpush3.bf16.msra.mxu0 %v4051_v11 }
 0x421   :  { %6521 = vst [vmem:[#allocation37_spill] sm:$0xff] %v5701_v40  ;;  %v3809_v1 = vadd.f32 %v3808_v25, %v3807_v0  ;;  %v1734_v62 = vadd.f32 %v1733_v20, %v5376_v52  ;;  %v3810_v8 = vpop.f32.mrb[122].mxu0  ;;  %v1735_v6 = vpop.f32.mrb[59].mxu1  ;;  %1993 = vadd.xlane.f32.xlu1 %v1992_v39  ;;  %v5717_v25 = vsub.f32 %v5440_v50, %v2014_v15 }
 0x422   :  { %v3811_v35 = vpop.f32.mrb[123].mxu0  ;;  %v5720_v20 = vsub.f32 %v5443_v59, %v2014_v15  ;;  %v2115_v45 = vmul.f32 %v5701_v40, %v5701_v40  ;;  %v2116_v59 = vmul.f32 %v5706_v57, %v5706_v57 }
 0x423   :  { %v5714_v43 = vadd.f32 %v3809_v1, %v5408_v42  ;;  %v3670_v38 = vpack.c.bf16 %v1734_v62, %v1730_v21  ;;  %v3812_v53 = vadd.f32 %v3811_v35, %v3810_v8  ;;  %2180 = vadd.xlane.f32.xlu0 %v2179_v27  ;;  %6522 = vst [vmem:[#allocation39_spill] sm:$0xff] %v5717_v25 }
 0x424   :  { %v1937_v47 = vpop.xlane.xlu0 %1936  ;;  %v5735_v21 = vadd.f32 %v1735_v6, %v5406_v13  ;;  %v2117_v62 = vmul.f32 %v5717_v25, %v5717_v25  ;;  %v2118_v11 = vmul.f32 %v5720_v20, %v5720_v20  ;;  %v5745_v6 = vadd.f32 %v5393_v48, %v5408_v42 }
 0x425   :  { %3705 = vst [vmem:[%s6335_s12 + $0x70] sm:$0xff] %v3670_v38   ;;  %v5728_v1 = vadd.f32 %v3812_v53, %v5408_v42  ;;  %v2015_v8 = vmul.f32 0.00390625, %v1937_v47  ;;  %v1995_v50 = vadd.f32 %v5714_v43, %v5711_v3  ;;  %2183 = vadd.xlane.f32.xlu1 %v2182_v5  ;;  %v2185_v47 = vadd.f32 %v2116_v59, %v2115_v45 }
 0x426   :  { %v1940_v27 = vpop.xlane.xlu1 %1939  ;;  %v1739_v17 = vpop.f32.mrb[60].mxu1  ;;  %v5757_v48 = vadd.f32 %v5391_v9, %v5406_v13  ;;  %v5767_v45 = vadd.f32 %v5399_v32, %v5408_v42 }
 0x427   :  { %v2016_v61 = vmul.f32 0.00390625, %v1940_v27  ;;  %v3813_v28 = vpop.f32.mrb[124].mxu0  ;;  %1996 = vadd.xlane.f32.xlu0 %v1995_v50  ;;  %v1741_v0 = vpop.f32.mrb[61].mxu1  ;;  %v1998_v15 = vadd.f32 %v5728_v1, %v5735_v21  ;;  %v5748_v35 = vsub.f32 %v5455_v49, %v2015_v8  ;;  %v5751_v5 = vsub.f32 %v5458_v18, %v2015_v8 }
 0x428   :  { %v3814_v12 = vpop.f32.mrb[125].mxu0  ;;  %v1743_v39 = vpop.f32.mrb[62].mxu1  ;;  %v1740_v50 = vadd.f32 %v1739_v17, %v5376_v52 }
 0x429   :  { %v3816_v38 = vpop.f32.mrb[126].mxu0  ;;  %v1745_v53 = vpop.f32.mrb[63].mxu1  ;;  %v3815_v27 = vadd.f32 %v3814_v12, %v3813_v28  ;;  %1999 = vadd.xlane.f32.xlu1 %v1998_v15  ;;  %v1744_v25 = vadd.f32 %v1743_v39, %v5376_v52  ;;  %v5760_v49 = vsub.f32 %v5461_v31, %v2016_v61  ;;  %v5763_v18 = vsub.f32 %v5464_v37, %v2016_v61 }
 0x42a   :  { %v3817_v40 = vpop.f32.mrb[127].mxu0  ;;  %v2188_v52 = vadd.f32 %v2118_v11, %v2117_v62  ;;  %v2119_v28 = vmul.f32 %v5748_v35, %v5748_v35  ;;  %v2120_v9 = vmul.f32 %v5751_v5, %v5751_v5  ;;  %v1917_v37 = vadd.f32 %v5745_v6, %v5757_v48 }
 0x42b   :  { %v3818_v8 = vadd.f32 %v3817_v40, %v3816_v38  ;;  %2186 = vadd.xlane.f32.xlu0 %v2185_v47  ;;  %v3675_v59 = vpack.c.bf16 %v1744_v25, %v1740_v50  ;;  %v5777_v40 = vadd.f32 %v5397_v51, %v5406_v13  ;;  %v2121_v25 = vmul.f32 %v5760_v49, %v5760_v49  ;;  %v4052_v38 = vld [vmem:[#allocation8 + $0x50] sm:$0xff]  }
 0x42c   :  { %v1943_v17 = vpop.xlane.xlu0 %1942  ;;  %v2122_v61 = vmul.f32 %v5763_v18, %v5763_v18  ;;  %v5795_v62 = vadd.f32 %v3815_v27, %v5408_v42  ;;  %v2191_v11 = vadd.f32 %v2120_v9, %v2119_v28  ;;  %v5798_v47 = vadd.f32 %v1741_v0, %v5406_v13  ;;  %3933 = vmatprep.subr.bf16.mxu1 %v4052_v38 }
 0x42d   :  { %v2017_v31 = vmul.f32 0.00390625, %v1943_v17  ;;  %3706 = vst [vmem:[%s6335_s12 + $0x78] sm:$0xff] %v3675_v59   ;;  %2189 = vadd.xlane.f32.xlu1 %v2188_v52  ;;  %v1920_v39 = vadd.f32 %v5767_v45, %v5777_v40  ;;  %v5801_v50 = vadd.f32 %v3818_v8, %v5408_v42  ;;  %v4053_v52 = vld [vmem:[#allocation8 + $0x10] sm:$0xff]   ;;  %3823 = vmatprep.subr.bf16.mxu0 %v4052_v38 }
 0x42e   :  { %v1946_v32 = vpop.xlane.xlu1 %1945  ;;  %v2001_v8 = vadd.f32 %v5795_v62, %v5798_v47  ;;  %v5816_v28 = vadd.f32 %v1745_v53, %v5406_v13  ;;  %3941 = vmatpush3.bf16.msra.mxu1 %v4053_v52  ;;  %3824 = vmatpush3.bf16.msra.mxu0 %v4053_v52 }
 0x42f   :  { %1918 = vadd.xlane.f32.xlu0 %v1917_v37  ;;  %v5787_v12 = vsub.f32 %v5476_v34, %v2017_v31  ;;  %v5790_v15 = vsub.f32 %v5479_v14, %v2017_v31  ;;  %v2018_v51 = vmul.f32 0.00390625, %v1946_v32  ;;  %v2194_v34 = vadd.f32 %v2122_v61, %v2121_v25 }
 0x430   :  { %v2004_v13 = vadd.f32 %v5801_v50, %v5816_v28 }
 0x431   :  { %1921 = vadd.xlane.f32.xlu1 %v1920_v39  ;;  %v2123_v14 = vmul.f32 %v5787_v12, %v5787_v12  ;;  %v2124_v59 = vmul.f32 %v5790_v15, %v5790_v15  ;;  %v5808_v27 = vsub.f32 %v5482_v23, %v2018_v51  ;;  %v5811_v17 = vsub.f32 %v5485_v54, %v2018_v51 }
 0x433   :  { %2192 = vadd.xlane.f32.xlu0 %v2191_v11  ;;  %v2125_v37 = vmul.f32 %v5808_v27, %v5808_v27  ;;  %v2126_v32 = vmul.f32 %v5811_v17, %v5811_v17  ;;  %v2197_v53 = vadd.f32 %v2124_v59, %v2123_v14  ;;  %v4054_v59 = vld [vmem:[#allocation8 + $0x58] sm:$0xff]  }
 0x434   :  { %v1949_v0 = vpop.xlane.xlu0 %1948  ;;  %3934 = vmatprep.subr.bf16.mxu1 %v4054_v59  ;;  %3825 = vmatprep.subr.bf16.mxu0 %v4054_v59 }
 0x435   :  { %v2019_v42 = vmul.f32 0.00390625, %v1949_v0  ;;  %2195 = vadd.xlane.f32.xlu1 %v2194_v34  ;;  %v2200_v38 = vadd.f32 %v2126_v32, %v2125_v37  ;;  %v4057_v32 = vld [vmem:[#allocation8 + $0x20] sm:$0xff]  }
 0x436   :  { %v1952_v9 = vpop.xlane.xlu1 %1951 }
 0x437   :  { %v5819_v31 = vsub.f32 %v5497_v56, %v2019_v42  ;;  %v5822_v23 = vsub.f32 %v5500_v55, %v2019_v42  ;;  %v2020_v54 = vmul.f32 0.00390625, %v1952_v9  ;;  %2002 = vadd.xlane.f32.xlu0 %v2001_v8 }
 0x439   :  { %v2127_v56 = vmul.f32 %v5819_v31, %v5819_v31  ;;  %v2128_v55 = vmul.f32 %v5822_v23, %v5822_v23  ;;  %v5835_v25 = vsub.f32 %v5503_v22, %v2020_v54  ;;  %v5838_v61 = vsub.f32 %v5506_v10, %v2020_v54  ;;  %2005 = vadd.xlane.f32.xlu1 %v2004_v13  ;;  %v4055_v22 = vld [vmem:[#allocation8 + $0x18] sm:$0xff]  }
 0x43a   :  { %3942 = vmatpush3.bf16.msra.mxu1 %v4055_v22  ;;  %3826 = vmatpush3.bf16.msra.mxu0 %v4055_v22 }
 0x43b   :  { %2198 = vadd.xlane.f32.xlu0 %v2197_v53  ;;  %v2129_v51 = vmul.f32 %v5835_v25, %v5835_v25  ;;  %v2130_v39 = vmul.f32 %v5838_v61, %v5838_v61  ;;  %v2203_v14 = vadd.f32 %v2128_v55, %v2127_v56 }
 0x43c   :  { %v1955_v11 = vpop.xlane.xlu0 %1954 }
 0x43d   :  { %v2021_v34 = vmul.f32 0.00390625, %v1955_v11  ;;  %2201 = vadd.xlane.f32.xlu1 %v2200_v38  ;;  %v2206_v8 = vadd.f32 %v2130_v39, %v2129_v51  ;;  %v4059_v39 = vld [vmem:[#allocation8 + $0x28] sm:$0xff]  }
 0x43e   :  { %v1958_v0 = vpop.xlane.xlu1 %1957 }
 0x43f   :  { %v5845_v52 = vsub.f32 %v5518_v41, %v2021_v34  ;;  %v5848_v10 = vsub.f32 %v5521_v24, %v2021_v34  ;;  %v2022_v42 = vmul.f32 0.00390625, %v1958_v0  ;;  %2204 = vadd.xlane.f32.xlu0 %v2203_v14  ;;  %v4056_v24 = vld [vmem:[#allocation8 + $0x60] sm:$0xff]  }
 0x440   :  { %3935 = vmatprep.subr.bf16.mxu1 %v4056_v24  ;;  %3827 = vmatprep.subr.bf16.mxu0 %v4056_v24 }
 0x441   :  { %v2131_v9 = vmul.f32 %v5845_v52, %v5845_v52  ;;  %v2132_v54 = vmul.f32 %v5848_v10, %v5848_v10  ;;  %v5855_v37 = vsub.f32 %v5524_v26, %v2022_v42  ;;  %v5858_v41 = vsub.f32 %v5527_v63, %v2022_v42  ;;  %2207 = vadd.xlane.f32.xlu1 %v2206_v8  ;;  %v4058_v63 = vld [vmem:[#allocation8 + $0x68] sm:$0xff]   ;;  %v4060_v42 = vld [vmem:[#allocation8 + $0x70] sm:$0xff]  }
 0x442   :  { %3943 = vmatpush3.bf16.msra.mxu1 %v4057_v32  ;;  %3828 = vmatpush3.bf16.msra.mxu0 %v4057_v32 }
 0x443   :  { %v2133_v13 = vmul.f32 %v5855_v37, %v5855_v37  ;;  %v2134_v53 = vmul.f32 %v5858_v41, %v5858_v41  ;;  %v2209_v56 = vadd.f32 %v2132_v54, %v2131_v9  ;;  %3936 = vmatprep.subr.bf16.mxu1 %v4058_v63  ;;  %3829 = vmatprep.subr.bf16.mxu0 %v4058_v63 }
 0x444   :  { %v1961_v55 = vpop.xlane.xlu0 %1960 }
 0x445   :  { %v2023_v26 = vmul.f32 0.00390625, %v1961_v55  ;;  %2210 = vadd.xlane.f32.xlu0 %v2209_v56  ;;  %v2212_v51 = vadd.f32 %v2134_v53, %v2133_v13  ;;  %v4062_v13 = vld [vmem:[#allocation8 + $0x78] sm:$0xff]  }
 0x446   :  { %v1964_v11 = vpop.xlane.xlu1 %1963  ;;  %3944 = vmatpush3.bf16.msra.mxu1 %v4059_v39  ;;  %3830 = vmatpush3.bf16.msra.mxu0 %v4059_v39 }
 0x447   :  { %v5865_v38 = vsub.f32 %v5539_v46, %v2023_v26  ;;  %v5868_v34 = vsub.f32 %v5542_v60, %v2023_v26  ;;  %v2024_v14 = vmul.f32 0.00390625, %v1964_v11  ;;  %2213 = vadd.xlane.f32.xlu1 %v2212_v51  ;;  %v4061_v60 = vld [vmem:[#allocation8 + $0x30] sm:$0xff]   ;;  %3937 = vmatprep.subr.bf16.mxu1 %v4060_v42 }
 0x448   :  { %3831 = vmatprep.subr.bf16.mxu0 %v4060_v42 }
 0x449   :  { %v2135_v59 = vmul.f32 %v5865_v38, %v5865_v38  ;;  %v2136_v0 = vmul.f32 %v5868_v34, %v5868_v34  ;;  %v5875_v22 = vsub.f32 %v5545_v16, %v2024_v14  ;;  %v5878_v46 = vsub.f32 %v5548_v29, %v2024_v14  ;;  %v4063_v29 = vld [vmem:[#allocation8 + $0x38] sm:$0xff]  }
 0x44a   :  { %3945 = vmatpush3.bf16.msra.mxu1 %v4061_v60  ;;  %3832 = vmatpush3.bf16.msra.mxu0 %v4061_v60 }
 0x44b   :  { %v2137_v8 = vmul.f32 %v5875_v22, %v5875_v22  ;;  %v2138_v9 = vmul.f32 %v5878_v46, %v5878_v46  ;;  %v2215_v54 = vadd.f32 %v2136_v0, %v2135_v59  ;;  %3938 = vmatprep.subr.bf16.mxu1 %v4062_v13  ;;  %3833 = vmatprep.subr.bf16.mxu0 %v4062_v13 }
 0x44c   :  { %v1967_v24 = vpop.xlane.xlu0 %1966 }
 0x44d   :  { %v2025_v32 = vmul.f32 0.00390625, %v1967_v24  ;;  %2216 = vadd.xlane.f32.xlu0 %v2215_v54  ;;  %v2218_v16 = vadd.f32 %v2138_v9, %v2137_v8 }
 0x44e   :  { %v1970_v53 = vpop.xlane.xlu1 %1969  ;;  %3946 = vmatpush3.bf16.msra.mxu1 %v4063_v29  ;;  %3834 = vmatpush3.bf16.msra.mxu0 %v4063_v29 }
 0x44f   :  { %v5885_v56 = vsub.f32 %v5560_v58, %v2025_v32  ;;  %v5888_v55 = vsub.f32 %v5563_v19, %v2025_v32  ;;  %v2026_v26 = vmul.f32 0.00390625, %v1970_v53  ;;  %2219 = vadd.xlane.f32.xlu1 %v2218_v16 }
 0x450   :  { %v1913_v51 = vpop.xlane.xlu0 %1912 }
 0x451   :  { %v2139_v63 = vmul.f32 %v5885_v56, %v5885_v56  ;;  %v2140_v39 = vmul.f32 %v5888_v55, %v5888_v55  ;;  %v5895_v11 = vsub.f32 %v5570_v2, %v2026_v26  ;;  %v5898_v58 = vsub.f32 %v5573_v4, %v2026_v26 }
 0x452   :  { %v1916_v19 = vpop.xlane.xlu1 %1915 }
 0x453   :  { %v2141_v14 = vmul.f32 %v5895_v11, %v5895_v11  ;;  %v2142_v59 = vmul.f32 %v5898_v58, %v5898_v58  ;;  %v2221_v0 = vadd.f32 %v2140_v39, %v2139_v63 }
 0x454   :  { %v1973_v42 = vpop.xlane.xlu0 %1972 }
 0x455   :  { %v2027_v60 = vmul.f32 0.00390625, %v1973_v42  ;;  %2222 = vadd.xlane.f32.xlu0 %v2221_v0  ;;  %v2224_v8 = vadd.f32 %v2142_v59, %v2141_v14  ;;  %v6523_v14 = vld [vmem:[#allocation19_spill] sm:$0xff] }
 0x456   :  { %v1976_v9 = vpop.xlane.xlu1 %1975 }
 0x457   :  { %v5905_v2 = vsub.f32 %v5599_v7, %v2027_v60  ;;  %v5908_v4 = vsub.f32 %v5602_v44, %v2027_v60  ;;  %2225 = vadd.xlane.f32.xlu1 %v2224_v8  ;;  %v2028_v54 = vmul.f32 0.00390625, %v1976_v9  ;;  %v6527_v8 = vld [vmem:[#allocation24_spill] sm:$0xff] }
 0x459   :  { %v2143_v24 = vmul.f32 %v5905_v2, %v5905_v2  ;;  %v2144_v32 = vmul.f32 %v5908_v4, %v5908_v4  ;;  %v5915_v16 = vsub.f32 %v5607_v36, %v2028_v54  ;;  %v5918_v13 = vsub.f32 %v5610_v30, %v2028_v54  ;;  %v6525_v36 = vld [vmem:[#allocation22_spill] sm:$0xff]  ;;  %v6529_v54 = vld [vmem:[#allocation21_spill] sm:$0xff] }
 0x45b   :  { %v2227_v29 = vadd.f32 %v2144_v32, %v2143_v24  ;;  %v2145_v7 = vmul.f32 %v5915_v16, %v5915_v16  ;;  %v2146_v44 = vmul.f32 %v5918_v13, %v5918_v13 }
 0x45d   :  { %2228 = vadd.xlane.f32.xlu0 %v2227_v29  ;;  %v2230_v53 = vadd.f32 %v2146_v44, %v2145_v7 }
 0x45f   :  { %2231 = vadd.xlane.f32.xlu1 %v2230_v53 }
 0x49b   :  { %v1979_v26 = vpop.xlane.xlu0 %1978 }
 0x49c   :  { %v2029_v63 = vmul.f32 0.00390625, %v1979_v26 }
 0x49d   :  { %v1982_v39 = vpop.xlane.xlu1 %1981 }
 0x49e   :  { %v5925_v59 = vsub.f32 %v6523_v14, %v2029_v63  ;;  %v5928_v0 = vsub.f32 %v6525_v36, %v2029_v63  ;;  %v2030_v30 = vmul.f32 0.00390625, %v1982_v39  ;;  %v6531_v39 = vld [vmem:[#allocation23_spill] sm:$0xff]  ;;  %v6533_v36 = vld [vmem:[#allocation26_spill] sm:$0xff] }
 0x4a0   :  { %6524 = vst [vmem:[#allocation40_spill] sm:$0xff] %v5925_v59  ;;  %6526 = vst [vmem:[#allocation16_spill] sm:$0xff] %v5928_v0  ;;  %v2147_v42 = vmul.f32 %v5925_v59, %v5925_v59  ;;  %v2148_v60 = vmul.f32 %v5928_v0, %v5928_v0  ;;  %v5935_v9 = vsub.f32 %v6527_v8, %v2030_v30 }
 0x4a1   :  { %v5938_v24 = vsub.f32 %v6529_v54, %v2030_v30 }
 0x4a2   :  { %6528 = vst [vmem:[#allocation19_spill] sm:$0xff] %v5935_v9  ;;  %v2149_v32 = vmul.f32 %v5935_v9, %v5935_v9  ;;  %v2233_v7 = vadd.f32 %v2148_v60, %v2147_v42  ;;  %v6535_v42 = vld [vmem:[#allocation28_spill] sm:$0xff] }
 0x4a3   :  { %6530 = vst [vmem:[#allocation22_spill] sm:$0xff] %v5938_v24  ;;  %v2150_v29 = vmul.f32 %v5938_v24, %v5938_v24  ;;  %v1985_v44 = vpop.xlane.xlu0 %1984  ;;  %v6540_v24 = vld [vmem:[#allocation33_spill] sm:$0xff] }
 0x4a4   :  { %v2031_v53 = vmul.f32 0.00390625, %v1985_v44  ;;  %2234 = vadd.xlane.f32.xlu0 %v2233_v7  ;;  %v6537_v7 = vld [vmem:[#allocation27_spill] sm:$0xff] }
 0x4a5   :  { %v2236_v26 = vadd.f32 %v2150_v29, %v2149_v32  ;;  %v1988_v63 = vpop.xlane.xlu1 %1987 }
 0x4a6   :  { %v5945_v14 = vsub.f32 %v6531_v39, %v2031_v53  ;;  %v5948_v8 = vsub.f32 %v6533_v36, %v2031_v53  ;;  %v2032_v30 = vmul.f32 0.00390625, %v1988_v63 }
 0x4a7   :  { %2237 = vadd.xlane.f32.xlu1 %v2236_v26  ;;  %v2007_v26 = vmul.f32 0.00390625, %v1913_v51 }
 0x4a8   :  { %6532 = vst [vmem:[#allocation24_spill] sm:$0xff] %v5945_v14  ;;  %6534 = vst [vmem:[#allocation21_spill] sm:$0xff] %v5948_v8  ;;  %v2151_v54 = vmul.f32 %v5945_v14, %v5945_v14  ;;  %v2152_v9 = vmul.f32 %v5948_v8, %v5948_v8  ;;  %v5955_v60 = vsub.f32 %v6535_v42, %v2032_v30  ;;  %v2008_v14 = vmul.f32 0.00390625, %v1916_v19  ;;  %v6538_v8 = vld [vmem:[#allocation34_spill] sm:$0xff] }
 0x4a9   :  { %v5958_v32 = vsub.f32 %v6537_v7, %v2032_v30  ;;  %v5965_v42 = vsub.f32 %v6538_v8, %v2007_v26  ;;  %v5968_v30 = vsub.f32 %v6540_v24, %v2007_v26  ;;  %v6542_v7 = vld [vmem:[#allocation36_spill] sm:$0xff]  ;;  %v6546_v24 = vld [vmem:[#allocation35_spill] sm:$0xff] }
 0x4aa   :  { %6536 = vst [vmem:[#allocation23_spill] sm:$0xff] %v5955_v60  ;;  %v2153_v29 = vmul.f32 %v5955_v60, %v5955_v60  ;;  %v2239_v53 = vadd.f32 %v2152_v9, %v2151_v54  ;;  %v6544_v60 = vld [vmem:[#allocation32_spill] sm:$0xff]  ;;  %v5984_v26 = vsub.f32 %v6546_v24, %v2008_v14 }
 0x4ab   :  { %v2154_v44 = vmul.f32 %v5958_v32, %v5958_v32  ;;  %6539 = vst [vmem:[#allocation26_spill] sm:$0xff] %v5965_v42  ;;  %6541 = vst [vmem:[#allocation28_spill] sm:$0xff] %v5968_v30 }
 0x4ac   :  { %v1991_v63 = vpop.xlane.xlu0 %1990  ;;  %2240 = vadd.xlane.f32.xlu0 %v2239_v53  ;;  %6547 = vst [vmem:[#allocation34_spill] sm:$0xff] %v5984_v26 }
 0x4ad   :  { %v2242_v39 = vadd.f32 %v2154_v44, %v2153_v29  ;;  %v2033_v36 = vmul.f32 0.00390625, %v1991_v63  ;;  %v6545_v44 = vld [vmem:[#allocation20_spill] sm:$0xff] }
 0x4ae   :  { %v1994_v9 = vpop.xlane.xlu1 %1993  ;;  %v5981_v53 = vsub.f32 %v6545_v44, %v2008_v14 }
 0x4af   :  { %2243 = vadd.xlane.f32.xlu1 %v2242_v39  ;;  %v5971_v59 = vsub.f32 %v6542_v7, %v2033_v36  ;;  %v5974_v0 = vsub.f32 %v6544_v60, %v2033_v36  ;;  %v2034_v51 = vmul.f32 0.00390625, %v1994_v9  ;;  %v6549_v60 = vld [vmem:[#allocation38_spill] sm:$0xff]  ;;  %v2103_v36 = vmul.f32 %v5965_v42, %v5965_v42 }
 0x4b0   :  { %v2181_v54 = vpop.xlane.xlu0 %2180  ;;  %v2104_v7 = vmul.f32 %v5968_v30, %v5968_v30  ;;  %v2106_v30 = vmul.f32 %v5984_v26, %v5984_v26 }
 0x4b1   :  { %6543 = vst [vmem:[#allocation27_spill] sm:$0xff] %v5971_v59  ;;  %v2155_v29 = vmul.f32 %v5971_v59, %v5971_v59  ;;  %v2156_v19 = vmul.f32 %v5974_v0, %v5974_v0  ;;  %v2267_v8 = vmul.f32 0.00390625, %v2181_v54  ;;  %v5987_v63 = vsub.f32 %v5694_v33, %v2034_v51 }
 0x4b2   :  { %v5990_v39 = vsub.f32 %v6549_v60, %v2034_v51  ;;  %v2184_v54 = vpop.xlane.xlu1 %2183  ;;  %v2105_v60 = vmul.f32 %v5981_v53, %v5981_v53 }
 0x4b3   :  { %6548 = vst [vmem:[#allocation33_spill] sm:$0xff] %v5987_v63  ;;  %v2299_v9 = vadd.f32 1e-05, %v2267_v8  ;;  %v2245_v59 = vadd.f32 %v2156_v19, %v2155_v29  ;;  %v2157_v44 = vmul.f32 %v5987_v63, %v5987_v63  ;;  %v2268_v33 = vmul.f32 0.00390625, %v2184_v54 }
 0x4b4   :  { %v2158_v14 = vmul.f32 %v5990_v39, %v5990_v39  ;;  %v1997_v24 = vpop.xlane.xlu0 %1996  ;;  %v2167_v54 = vadd.f32 %v2104_v7, %v2103_v36 }
 0x4b5   :  { %4128 = vrsqrt.f32 %v2299_v9  ;;  %v2035_v51 = vmul.f32 0.00390625, %v1997_v24  ;;  %2246 = vadd.xlane.f32.xlu0 %v2245_v59  ;;  %v2300_v8 = vadd.f32 1e-05, %v2268_v33 }
 0x4b6   :  { %v2248_v42 = vadd.f32 %v2158_v14, %v2157_v44  ;;  %v2000_v63 = vpop.xlane.xlu1 %1999  ;;  %v2170_v44 = vadd.f32 %v2106_v30, %v2105_v60  ;;  %v6554_v60 = vld [vmem:[#allocation17_spill] sm:$0xff] }
 0x4b7   :  { %v6005_v29 = vsub.f32 %v5711_v3, %v2035_v51  ;;  %v6008_v19 = vsub.f32 %v5714_v43, %v2035_v51  ;;  %4130 = vrsqrt.f32 %v2300_v8  ;;  %v2036_v9 = vmul.f32 0.00390625, %v2000_v63 }
 0x4b8   :  { %2249 = vadd.xlane.f32.xlu1 %v2248_v42  ;;  %v2187_v59 = vpop.xlane.xlu0 %2186  ;;  %v1909_v42 = vld [vmem:[%s6330_s7] sm:$0x3]  ;;  %s4344_s7 = smov [#allocation11]  }
 0x4b9   :  { %6550 = vst [vmem:[#allocation36_spill] sm:$0xff] %v6005_v29  ;;  %6551 = vst [vmem:[#allocation32_spill] sm:$0xff] %v6008_v19  ;;  %v2159_v24 = vmul.f32 %v6005_v29, %v6005_v29  ;;  %v2160_v26 = vmul.f32 %v6008_v19, %v6008_v19  ;;  %v2269_v33 = vmul.f32 0.00390625, %v2187_v59  ;;  %2168 = vadd.xlane.f32.xlu0 %v2167_v54  ;;  %v6555_v59 = vld [vmem:[#allocation18_spill] sm:$0xff] }
 0x4ba   :  { %v6015_v3 = vsub.f32 %v5735_v21, %v2036_v9  ;;  %v6018_v43 = vsub.f32 %v5728_v1, %v2036_v9  ;;  %v2190_v36 = vpop.xlane.xlu1 %2189  ;;  %v1910_v1 = vld [vmem:[%s6331_s8] sm:$0x3]  ;;  %v6031_v54 = vrot.slane %v1909_v42, %v6554_v60  ;;  %s3290_s8 = sshll.u32 %s4344_s7, 4  ;;  %s3291_s8 = int_to_ptr.vmem [resolvable:$true] %s3290_s8 }
 0x4bb   :  { %v2301_v63 = vadd.f32 1e-05, %v2269_v33  ;;  %v2251_v7 = vadd.f32 %v2160_v26, %v2159_v24  ;;  %v2270_v8 = vmul.f32 0.00390625, %v2190_v36  ;;  %v6034_v24 = vrot.slane %v1909_v42, %v6555_v59  ;;  %s4302_s29 = scalar_lea.vmem %s3291_s8, 2048  ;;  %p4307_p13 = scmp.lt.s32.totalorder %s3291_s8, %s3291_s8 }
 0x4bc   :  { %6552 = vst [vmem:[#allocation20_spill] sm:$0xff] %v6015_v3  ;;  %6553 = vst [vmem:[#allocation35_spill] sm:$0xff] %v6018_v43  ;;  %v2161_v14 = vmul.f32 %v6015_v3, %v6015_v3  ;;  %v2162_v51 = vmul.f32 %v6018_v43, %v6018_v43  ;;  %2171 = vadd.xlane.f32.xlu1 %v2170_v44  ;;  %v1919_v21 = vpop.xlane.xlu0 %1918  ;;  %p4303_p12 = scmp.ne.s32.totalorder %s3291_s8, %s4302_s29  ;;  %p4308_p0 = scmp.lt.s32.totalorder %s4302_s29, %s4302_s29 }
 0x4bd   :  { %4132 = vrsqrt.f32 %v2301_v63  ;;  %v2009_v30 = vmul.f32 0.00390625, %v1919_v21  ;;  %2252 = vadd.xlane.f32.xlu0 %v2251_v7  ;;  %v2302_v26 = vadd.f32 1e-05, %v2270_v8  ;;  %v6043_v63 = vrot.slane %v1910_v1, %v6555_v59  ;;  %v6558_v7 = vld [vmem:[#allocation25_spill] sm:$0xff] }
 0x4be   :  { %v2254_v9 = vadd.f32 %v2162_v51, %v2161_v14  ;;  %v1922_v3 = vpop.xlane.xlu1 %1921  ;;  %v6559_v51 = vld [vmem:[#allocation31_spill] sm:$0xff]  ;;  %p4309_p1 = por %p4308_p0, %p4307_p13 }
 0x4bf   :  { %v4129_v33 = vpop.eup %4128  ;;  %v6037_v36 = vsub.f32 %v5757_v48, %v2009_v30  ;;  %v6040_v44 = vsub.f32 %v5745_v6, %v2009_v30  ;;  %4134 = vrsqrt.f32 %v2302_v26  ;;  %v2010_v29 = vmul.f32 0.00390625, %v1922_v3 }
 0x4c0   :  { %v2367_v21 = vmul.f32 %v4129_v33, %v6558_v7  ;;  %2255 = vadd.xlane.f32.xlu1 %v2254_v9  ;;  %v2193_v14 = vpop.xlane.xlu0 %2192  ;;  %v2368_v42 = vmul.f32 %v4129_v33, %v6559_v51  ;;  %v6052_v30 = vrot.slane %v1910_v1, %v6554_v60  ;;  %v6561_v33 = vld [vmem:[#allocation29_spill] sm:$0xff]  ;;  %p4310_p2 = pnand %p4309_p1, %p4303_p12 }
 0x4c1   :  { %6556 = vst [vmem:[#allocation38_spill] sm:$0xff] %v6037_v36  ;;  %6557 = vst [vmem:[#allocation17_spill] sm:$0xff] %v6040_v44  ;;  %v2107_v8 = vmul.f32 %v6037_v36, %v6037_v36  ;;  %v2108_v48 = vmul.f32 %v6040_v44, %v6040_v44  ;;  %v2271_v6 = vmul.f32 0.00390625, %v2193_v14  ;;  %v4131_v59 = vpop.eup %4130  ;;  %v6056_v26 = vsub.f32 %v5777_v40, %v2010_v29  ;;  %v6562_v14 = vld [vmem:[#allocation30_spill] sm:$0xff] }
 0x4c2   :  { %v2442_v43 = vmul.f32 %v6031_v54, %v2367_v21  ;;  %v6059_v3 = vsub.f32 %v5767_v45, %v2010_v29  ;;  %v2443_v9 = vmul.f32 %v6034_v24, %v2368_v42  ;;  %v2369_v7 = vmul.f32 %v4131_v59, %v6561_v33  ;;  %v2196_v36 = vpop.xlane.xlu1 %2195 }
 0x4c3   :  { %6560 = vst [vmem:[#allocation18_spill] sm:$0xff] %v6056_v26  ;;  %v2303_v51 = vadd.f32 1e-05, %v2271_v6  ;;  %v2173_v44 = vadd.f32 %v2108_v48, %v2107_v8  ;;  %v2370_v19 = vmul.f32 %v4131_v59, %v6562_v14  ;;  %v2109_v1 = vmul.f32 %v6056_v26, %v6056_v26 }
 0x4c4   :  { %v2110_v60 = vmul.f32 %v6059_v3, %v6059_v3  ;;  %v2272_v40 = vmul.f32 0.00390625, %v2196_v36  ;;  %v2003_v21 = vpop.xlane.xlu0 %2002  ;;  %v2518_v45 = vadd.f32 %v6043_v63, %v2443_v9  ;;  %v2444_v29 = vmul.f32 %v6031_v54, %v2369_v7 }
 0x4c5   :  { %4136 = vrsqrt.f32 %v2303_v51  ;;  %v2037_v42 = vmul.f32 0.00390625, %v2003_v21  ;;  %2174 = vadd.xlane.f32.xlu0 %v2173_v44  ;;  %v2445_v6 = vmul.f32 %v6034_v24, %v2370_v19  ;;  %v2517_v33 = vadd.f32 %v6052_v30, %v2442_v43 }
 0x4c6   :  { %v2304_v8 = vadd.f32 1e-05, %v2272_v40  ;;  %v2176_v48 = vadd.f32 %v2110_v60, %v2109_v1  ;;  %v2582_v59 = vmax.f32 %v2518_v45, 0.0  ;;  %v2006_v9 = vpop.xlane.xlu1 %2005  ;;  %v2519_v51 = vadd.f32 %v6052_v30, %v2444_v29 }
 0x4c7   :  { %v4133_v14 = vpop.eup %4132  ;;  %v6073_v26 = vsub.f32 %v5798_v47, %v2037_v42  ;;  %v6076_v36 = vsub.f32 %v5795_v62, %v2037_v42  ;;  %v2520_v7 = vadd.f32 %v6043_v63, %v2445_v6  ;;  %v2038_v44 = vmul.f32 0.00390625, %v2006_v9 }
 0x4c8   :  { %4138 = vrsqrt.f32 %v2304_v8  ;;  %2177 = vadd.xlane.f32.xlu1 %v2176_v48  ;;  %v2199_v19 = vpop.xlane.xlu0 %2198  ;;  %v2581_v1 = vmax.f32 %v2517_v33, 0.0  ;;  %v2372_v60 = vmul.f32 %v4133_v14, %v5706_v57  ;;  %v2583_v42 = vmax.f32 %v2519_v51, 0.0 }
 0x4c9   :  { %6563 = vst [vmem:[#allocation25_spill] sm:$0xff] %v6073_v26  ;;  %6564 = vst [vmem:[#allocation31_spill] sm:$0xff] %v6076_v36  ;;  %v2163_v43 = vmul.f32 %v6073_v26, %v6073_v26  ;;  %v2164_v47 = vmul.f32 %v6076_v36, %v6076_v36  ;;  %v2273_v62 = vmul.f32 0.00390625, %v2199_v19  ;;  %v2584_v40 = vmax.f32 %v2520_v7, 0.0  ;;  %v4135_v21 = vpop.eup %4134 }
 0x4ca   :  { %v6086_v45 = vsub.f32 %v5816_v28, %v2038_v44  ;;  %v6089_v29 = vsub.f32 %v5801_v50, %v2038_v44  ;;  %v2447_v6 = vmul.f32 %v6034_v24, %v2372_v60  ;;  %v2202_v57 = vpop.xlane.xlu1 %2201  ;;  %v2374_v9 = vmul.f32 %v4135_v21, %v5720_v20  ;;  %v6566_v60 = vld [vmem:[#allocation37_spill] sm:$0xff] }
 0x4cb   :  { %v2305_v8 = vadd.f32 1e-05, %v2273_v62  ;;  %v2642_v48 = vpack.c.bf16 %v2584_v40, %v2582_v59  ;;  %v2257_v33 = vadd.f32 %v2164_v47, %v2163_v43  ;;  %v2274_v28 = vmul.f32 0.00390625, %v2202_v57  ;;  %v6567_v47 = vld [vmem:[#allocation39_spill] sm:$0xff] }
 0x4cc   :  { %6565 = vst [vmem:[#allocation29_spill] sm:$0xff] %v6086_v45  ;;  %v2165_v19 = vmul.f32 %v6086_v45, %v6086_v45  ;;  %v2166_v7 = vmul.f32 %v6089_v29, %v6089_v29  ;;  %v2205_v26 = vpop.xlane.xlu0 %2204  ;;  %v2641_v36 = vpack.c.bf16 %v2583_v42, %v2581_v1  ;;  %v2449_v51 = vmul.f32 %v6034_v24, %v2374_v9 }
 0x4cd   :  { %4140 = vrsqrt.f32 %v2305_v8  ;;  %2852 = vmatprep.mubr.bf16.mxu1 %v2642_v48  ;;  %v2275_v50 = vmul.f32 0.00390625, %v2205_v26  ;;  %2258 = vadd.xlane.f32.xlu0 %v2257_v33  ;;  %v2522_v59 = vadd.f32 %v6043_v63, %v2447_v6  ;;  %v2306_v44 = vadd.f32 1e-05, %v2274_v28 }
 0x4ce   :  { %2853 = vmatmul.mubr.bf16.vlgmr.msra.gmra.mrb[64].mxu1 %v2641_v36  ;;  %v2260_v20 = vadd.f32 %v2166_v7, %v2165_v19  ;;  %v2371_v43 = vmul.f32 %v4133_v14, %v6566_v60  ;;  %v2373_v62 = vmul.f32 %v4135_v21, %v6567_v47  ;;  %v2208_v57 = vpop.xlane.xlu1 %2207  ;;  %v2524_v1 = vadd.f32 %v6043_v63, %v2449_v51 }
 0x4cf   :  { %v4137_v40 = vpop.eup %4136  ;;  %v2307_v45 = vadd.f32 1e-05, %v2275_v50  ;;  %4142 = vrsqrt.f32 %v2306_v44  ;;  %v2276_v42 = vmul.f32 0.00390625, %v2208_v57  ;;  %v2586_v6 = vmax.f32 %v2522_v59, 0.0 }
 0x4d0   :  { %2261 = vadd.xlane.f32.xlu1 %v2260_v20  ;;  %v2446_v26 = vmul.f32 %v6031_v54, %v2371_v43  ;;  %v2448_v8 = vmul.f32 %v6031_v54, %v2373_v62  ;;  %v2588_v36 = vmax.f32 %v2524_v1, 0.0  ;;  %v2376_v48 = vmul.f32 %v4137_v40, %v5751_v5 }
 0x4d1   :  { %4144 = vrsqrt.f32 %v2307_v45  ;;  %v2308_v33 = vadd.f32 1e-05, %v2276_v42  ;;  %v2375_v7 = vmul.f32 %v4137_v40, %v5748_v35 }
 0x4d2   :  { %v4139_v14 = vpop.eup %4138  ;;  %v2211_v21 = vpop.xlane.xlu0 %2210  ;;  %v2521_v9 = vadd.f32 %v6052_v30, %v2446_v26  ;;  %v2523_v19 = vadd.f32 %v6052_v30, %v2448_v8  ;;  %v2644_v50 = vpack.c.bf16 %v2588_v36, %v2586_v6  ;;  %v2451_v44 = vmul.f32 %v6034_v24, %v2376_v48 }
 0x4d3   :  { %v2277_v28 = vmul.f32 0.00390625, %v2211_v21  ;;  %v2378_v51 = vmul.f32 %v4139_v14, %v5763_v18  ;;  %4146 = vrsqrt.f32 %v2308_v33  ;;  %v2377_v5 = vmul.f32 %v4139_v14, %v5760_v49 }
 0x4d4   :  { %v2214_v45 = vpop.xlane.xlu1 %2213  ;;  %v2585_v59 = vmax.f32 %v2521_v9, 0.0  ;;  %v2587_v20 = vmax.f32 %v2523_v19, 0.0  ;;  %2860 = vmatprep.mubr.bf16.mxu1 %v2644_v50  ;;  %v2526_v62 = vadd.f32 %v6043_v63, %v2451_v44  ;;  %v2450_v40 = vmul.f32 %v6031_v54, %v2375_v7 }
 0x4d5   :  { %v2309_v60 = vadd.f32 1e-05, %v2277_v28  ;;  %v2278_v43 = vmul.f32 0.00390625, %v2214_v45  ;;  %v2453_v47 = vmul.f32 %v6034_v24, %v2378_v51  ;;  %v2452_v18 = vmul.f32 %v6031_v54, %v2377_v5 }
 0x4d6   :  { %v2643_v35 = vpack.c.bf16 %v2587_v20, %v2585_v59  ;;  %v2525_v49 = vadd.f32 %v6052_v30, %v2450_v40  ;;  %v2590_v36 = vmax.f32 %v2526_v62, 0.0 }
 0x4d7   :  { %v4141_v57 = vpop.eup %4140  ;;  %4148 = vrsqrt.f32 %v2309_v60  ;;  %v2310_v1 = vadd.f32 1e-05, %v2278_v43  ;;  %v2528_v42 = vadd.f32 %v6043_v63, %v2453_v47  ;;  %v2527_v26 = vadd.f32 %v6052_v30, %v2452_v18 }
 0x4d8   :  { %2861 = vmatmul.mubr.bf16.gmra.mrb[68].mxu1 %v2643_v35  ;;  %v2380_v8 = vmul.f32 %v4141_v57, %v5790_v15  ;;  %v2379_v6 = vmul.f32 %v4141_v57, %v5787_v12  ;;  %v2589_v21 = vmax.f32 %v2525_v49, 0.0 }
 0x4d9   :  { %4150 = vrsqrt.f32 %v2310_v1  ;;  %v2592_v48 = vmax.f32 %v2528_v42, 0.0  ;;  %v4143_v14 = vpop.eup %4142  ;;  %v2591_v9 = vmax.f32 %v2527_v26, 0.0 }
 0x4da   :  { %v2217_v33 = vpop.xlane.xlu0 %2216  ;;  %v2455_v19 = vmul.f32 %v6034_v24, %v2380_v8  ;;  %v2454_v7 = vmul.f32 %v6031_v54, %v2379_v6  ;;  %v2382_v44 = vmul.f32 %v4143_v14, %v5811_v17  ;;  %v2381_v15 = vmul.f32 %v4143_v14, %v5808_v27 }
 0x4db   :  { %v4145_v28 = vpop.eup %4144  ;;  %v2279_v50 = vmul.f32 0.00390625, %v2217_v33  ;;  %v2646_v51 = vpack.c.bf16 %v2592_v48, %v2590_v36  ;;  %v2645_v12 = vpack.c.bf16 %v2591_v9, %v2589_v21 }
 0x4dc   :  { %v2220_v45 = vpop.xlane.xlu1 %2219  ;;  %v2530_v59 = vadd.f32 %v6043_v63, %v2455_v19  ;;  %v2384_v20 = vmul.f32 %v4145_v28, %v5822_v23  ;;  %v2457_v43 = vmul.f32 %v6034_v24, %v2382_v44  ;;  %v2456_v47 = vmul.f32 %v6031_v54, %v2381_v15 }
 0x4dd   :  { %v2311_v5 = vadd.f32 1e-05, %v2279_v50  ;;  %v2280_v60 = vmul.f32 0.00390625, %v2220_v45  ;;  %2868 = vmatprep.mubr.bf16.mxu1 %v2646_v51  ;;  %v4147_v62 = vpop.eup %4146  ;;  %v2529_v35 = vadd.f32 %v6052_v30, %v2454_v7  ;;  %v2383_v27 = vmul.f32 %v4145_v28, %v5819_v31 }
 0x4de   :  { %v2459_v17 = vmul.f32 %v6034_v24, %v2384_v20  ;;  %v2532_v18 = vadd.f32 %v6043_v63, %v2457_v43  ;;  %v2531_v23 = vadd.f32 %v6052_v30, %v2456_v47  ;;  %v2386_v57 = vmul.f32 %v4147_v62, %v5838_v61 }
 0x4df   :  { %4152 = vrsqrt.f32 %v2311_v5  ;;  %v2312_v40 = vadd.f32 1e-05, %v2280_v60  ;;  %v2385_v1 = vmul.f32 %v4147_v62, %v5835_v25  ;;  %v2594_v49 = vmax.f32 %v2530_v59, 0.0 }
 0x4e0   :  { %2869 = vmatmul.mubr.bf16.gmra.mrb[72].mxu1 %v2645_v12  ;;  %v2596_v26 = vmax.f32 %v2532_v18, 0.0  ;;  %v2595_v8 = vmax.f32 %v2531_v23, 0.0  ;;  %v2593_v36 = vmax.f32 %v2529_v35, 0.0  ;;  %v2461_v31 = vmul.f32 %v6034_v24, %v2386_v57 }
 0x4e1   :  { %v4149_v42 = vpop.eup %4148  ;;  %4154 = vrsqrt.f32 %v2312_v40  ;;  %v2534_v48 = vadd.f32 %v6043_v63, %v2459_v17  ;;  %v2460_v14 = vmul.f32 %v6031_v54, %v2385_v1  ;;  %v2458_v61 = vmul.f32 %v6031_v54, %v2383_v27 }
 0x4e2   :  { %v2223_v6 = vpop.xlane.xlu0 %2222  ;;  %v2648_v9 = vpack.c.bf16 %v2596_v26, %v2594_v49  ;;  %v2388_v25 = vmul.f32 %v4149_v42, %v5848_v10  ;;  %v2647_v7 = vpack.c.bf16 %v2595_v8, %v2593_v36  ;;  %v2536_v28 = vadd.f32 %v6043_v63, %v2461_v31 }
 0x4e3   :  { %v4151_v33 = vpop.eup %4150  ;;  %v2281_v21 = vmul.f32 0.00390625, %v2223_v6  ;;  %v2535_v15 = vadd.f32 %v6052_v30, %v2460_v14  ;;  %v2598_v12 = vmax.f32 %v2534_v48, 0.0  ;;  %v2533_v60 = vadd.f32 %v6052_v30, %v2458_v61 }
 0x4e4   :  { %v2226_v19 = vpop.xlane.xlu1 %2225  ;;  %v2390_v50 = vmul.f32 %v4151_v33, %v5858_v41  ;;  %2876 = vmatprep.mubr.bf16.mxu1 %v2648_v9  ;;  %v2463_v45 = vmul.f32 %v6034_v24, %v2388_v25  ;;  %v2600_v59 = vmax.f32 %v2536_v28, 0.0  ;;  %v2389_v5 = vmul.f32 %v4151_v33, %v5855_v37 }
 0x4e5   :  { %v2313_v51 = vadd.f32 1e-05, %v2281_v21  ;;  %v2282_v44 = vmul.f32 0.00390625, %v2226_v19  ;;  %v2387_v47 = vmul.f32 %v4149_v42, %v5845_v52  ;;  %v2599_v35 = vmax.f32 %v2535_v15, 0.0 }
 0x4e6   :  { %v2465_v20 = vmul.f32 %v6034_v24, %v2390_v50  ;;  %v2650_v43 = vpack.c.bf16 %v2600_v59, %v2598_v12  ;;  %v2538_v17 = vadd.f32 %v6043_v63, %v2463_v45  ;;  %v2464_v40 = vmul.f32 %v6031_v54, %v2389_v5 }
 0x4e7   :  { %4156 = vrsqrt.f32 %v2313_v51  ;;  %v2314_v10 = vadd.f32 1e-05, %v2282_v44  ;;  %v2597_v57 = vmax.f32 %v2533_v60, 0.0  ;;  %v2462_v49 = vmul.f32 %v6031_v54, %v2387_v47 }
 0x4e8   :  { %2877 = vmatmul.mubr.bf16.gmra.mrb[76].mxu1 %v2647_v7  ;;  %v2540_v41 = vadd.f32 %v6043_v63, %v2465_v20  ;;  %v2602_v6 = vmax.f32 %v2538_v17, 0.0  ;;  %v2539_v48 = vadd.f32 %v6052_v30, %v2464_v40 }
 0x4e9   :  { %v4153_v62 = vpop.eup %4152  ;;  %4158 = vrsqrt.f32 %v2314_v10  ;;  %2884 = vmatprep.mubr.bf16.mxu1 %v2650_v43  ;;  %v2649_v8 = vpack.c.bf16 %v2599_v35, %v2597_v57  ;;  %v2537_v9 = vadd.f32 %v6052_v30, %v2462_v49 }
 0x4ea   :  { %v2229_v27 = vpop.xlane.xlu0 %2228  ;;  %v2392_v37 = vmul.f32 %v4153_v62, %v5868_v34  ;;  %v2604_v1 = vmax.f32 %v2540_v41, 0.0  ;;  %v2391_v61 = vmul.f32 %v4153_v62, %v5865_v38  ;;  %v2603_v7 = vmax.f32 %v2539_v48, 0.0 }
 0x4eb   :  { %v4155_v18 = vpop.eup %4154  ;;  %v2283_v23 = vmul.f32 0.00390625, %v2229_v27  ;;  %v2601_v44 = vmax.f32 %v2537_v9, 0.0 }
 0x4ec   :  { %v2394_v26 = vmul.f32 %v4155_v18, %v5878_v46  ;;  %v2232_v42 = vpop.xlane.xlu1 %2231  ;;  %v2467_v36 = vmul.f32 %v6034_v24, %v2392_v37  ;;  %v2393_v34 = vmul.f32 %v4155_v18, %v5875_v22  ;;  %v2652_v33 = vpack.c.bf16 %v2604_v1, %v2602_v6 }
 0x4ed   :  { %v2315_v52 = vadd.f32 1e-05, %v2283_v23  ;;  %v2284_v31 = vmul.f32 0.00390625, %v2232_v42  ;;  %v2466_v15 = vmul.f32 %v6031_v54, %v2391_v61  ;;  %v2651_v59 = vpack.c.bf16 %v2603_v7, %v2601_v44 }
 0x4ee   :  { %v2469_v14 = vmul.f32 %v6034_v24, %v2394_v26  ;;  %v2542_v19 = vadd.f32 %v6043_v63, %v2467_v36  ;;  %v2468_v28 = vmul.f32 %v6031_v54, %v2393_v34 }
 0x4ef   :  { %4160 = vrsqrt.f32 %v2315_v52  ;;  %v2316_v21 = vadd.f32 1e-05, %v2284_v31 }
 0x4f0   :  { %2885 = vmatmul.mubr.bf16.gmra.mrb[80].mxu1 %v2649_v8  ;;  %v2544_v46 = vadd.f32 %v6043_v63, %v2469_v14  ;;  %v2606_v12 = vmax.f32 %v2542_v19, 0.0  ;;  %v2543_v20 = vadd.f32 %v6052_v30, %v2468_v28 }
 0x4f1   :  { %v4157_v25 = vpop.eup %4156  ;;  %2892 = vmatprep.mubr.bf16.mxu1 %v2652_v33  ;;  %4162 = vrsqrt.f32 %v2316_v21 }
 0x4f2   :  { %v2396_v22 = vmul.f32 %v4157_v25, %v5888_v55  ;;  %v2608_v51 = vmax.f32 %v2544_v46, 0.0  ;;  %v2541_v55 = vadd.f32 %v6052_v30, %v2466_v15  ;;  %v2395_v41 = vmul.f32 %v4157_v25, %v5885_v56 }
 0x4f3   :  { %v4159_v50 = vpop.eup %4158  ;;  %v2607_v62 = vmax.f32 %v2543_v20, 0.0  ;;  %v6568_v20 = vld [vmem:[#allocation16_spill] sm:$0xff] }
 0x4f4   :  { %v2398_v45 = vmul.f32 %v4159_v50, %v5898_v58  ;;  %v2471_v38 = vmul.f32 %v6034_v24, %v2396_v22  ;;  %v2397_v10 = vmul.f32 %v4159_v50, %v5895_v11  ;;  %v2654_v60 = vpack.c.bf16 %v2608_v51, %v2606_v12 }
 0x4f5   :  { %v2605_v11 = vmax.f32 %v2541_v55, 0.0  ;;  %v2470_v37 = vmul.f32 %v6031_v54, %v2395_v41 }
 0x4f6   :  { %v2473_v5 = vmul.f32 %v6034_v24, %v2398_v45  ;;  %v2546_v58 = vadd.f32 %v6043_v63, %v2471_v38  ;;  %v2472_v35 = vmul.f32 %v6031_v54, %v2397_v10  ;;  %v6569_v10 = vld [vmem:[#allocation40_spill] sm:$0xff] }
 0x4f7   :  { %v2653_v56 = vpack.c.bf16 %v2607_v62, %v2605_v11 }
 0x4f8   :  { %2893 = vmatmul.mubr.bf16.gmra.mrb[84].mxu1 %v2651_v59  ;;  %v2548_v43 = vadd.f32 %v6043_v63, %v2473_v5  ;;  %v2610_v18 = vmax.f32 %v2546_v58, 0.0  ;;  %v2547_v1 = vadd.f32 %v6052_v30, %v2472_v35  ;;  %v6571_v35 = vld [vmem:[#allocation19_spill] sm:$0xff] }
 0x4f9   :  { %v4161_v47 = vpop.eup %4160  ;;  %2900 = vmatprep.mubr.bf16.mxu1 %v2654_v60 }
 0x4fa   :  { %v2400_v17 = vmul.f32 %v4161_v47, %v5908_v4  ;;  %v2612_v27 = vmax.f32 %v2548_v43, 0.0  ;;  %v2545_v4 = vadd.f32 %v6052_v30, %v2470_v37  ;;  %v2399_v42 = vmul.f32 %v4161_v47, %v5905_v2  ;;  %v6570_v47 = vld [vmem:[#allocation22_spill] sm:$0xff] }
 0x4fb   :  { %v4163_v40 = vpop.eup %4162  ;;  %v2611_v6 = vmax.f32 %v2547_v1, 0.0 }
 0x4fc   :  { %v2402_v23 = vmul.f32 %v4163_v40, %v5918_v13  ;;  %v2475_v57 = vmul.f32 %v6034_v24, %v2400_v17  ;;  %v2401_v49 = vmul.f32 %v4163_v40, %v5915_v16  ;;  %v2656_v26 = vpack.c.bf16 %v2612_v27, %v2610_v18 }
 0x4fd   :  { %v2609_v48 = vmax.f32 %v2545_v4, 0.0  ;;  %v2474_v16 = vmul.f32 %v6031_v54, %v2399_v42 }
 0x4fe   :  { %v2477_v52 = vmul.f32 %v6034_v24, %v2402_v23  ;;  %v2550_v8 = vadd.f32 %v6043_v63, %v2475_v57  ;;  %v2476_v36 = vmul.f32 %v6031_v54, %v2401_v49 }
 0x4ff   :  { %v2655_v34 = vpack.c.bf16 %v2611_v6, %v2609_v48  ;;  %v2549_v2 = vadd.f32 %v6052_v30, %v2474_v16  ;;  %v6573_v16 = vld [vmem:[#allocation24_spill] sm:$0xff] }
 0x500   :  { %2901 = vmatmul.mubr.bf16.gmra.mrb[88].mxu1 %v2653_v56  ;;  %v2552_v13 = vadd.f32 %v6043_v63, %v2477_v52  ;;  %v2614_v14 = vmax.f32 %v2550_v8, 0.0  ;;  %v2551_v33 = vadd.f32 %v6052_v30, %v2476_v36 }
 0x501   :  { %2908 = vmatprep.mubr.bf16.mxu1 %v2656_v26  ;;  %v2613_v46 = vmax.f32 %v2549_v2, 0.0 }
 0x502   :  { %v2616_v31 = vmax.f32 %v2552_v13, 0.0  ;;  %v2615_v9 = vmax.f32 %v2551_v33, 0.0 }
 0x504   :  { %v2658_v21 = vpack.c.bf16 %v2616_v31, %v2614_v14  ;;  %v2657_v61 = vpack.c.bf16 %v2615_v9, %v2613_v46  ;;  %v6572_v31 = vld [vmem:[#allocation21_spill] sm:$0xff] }
 0x508   :  { %2909 = vmatmul.mubr.bf16.gmra.mrb[92].mxu1 %v2655_v34 }
 0x509   :  { %2916 = vmatprep.mubr.bf16.mxu1 %v2658_v21 }
 0x510   :  { %2917 = vmatmul.mubr.bf16.gmra.mrb[96].mxu1 %v2657_v61 }
 0x531   :  { %v2235_v25 = vpop.xlane.xlu0 %2234 }
 0x532   :  { %v2285_v19 = vmul.f32 0.00390625, %v2235_v25 }
 0x534   :  { %v2238_v7 = vpop.xlane.xlu1 %2237  ;;  %v2317_v28 = vadd.f32 1e-05, %v2285_v19 }
 0x535   :  { %v2286_v22 = vmul.f32 0.00390625, %v2238_v7 }
 0x536   :  { %4164 = vrsqrt.f32 %v2317_v28 }
 0x537   :  { %v2318_v50 = vadd.f32 1e-05, %v2286_v22  ;;  %v6574_v22 = vld [vmem:[#allocation23_spill] sm:$0xff] }
 0x539   :  { %4166 = vrsqrt.f32 %v2318_v50  ;;  %v2241_v51 = vpop.xlane.xlu0 %2240 }
 0x53a   :  { %v2287_v44 = vmul.f32 0.00390625, %v2241_v51 }
 0x53c   :  { %v2244_v15 = vpop.xlane.xlu1 %2243  ;;  %v2319_v45 = vadd.f32 1e-05, %v2287_v44 }
 0x53d   :  { %v2288_v12 = vmul.f32 0.00390625, %v2244_v15 }
 0x53e   :  { %4168 = vrsqrt.f32 %v2319_v45 }
 0x53f   :  { %v2320_v38 = vadd.f32 1e-05, %v2288_v12 }
 0x540   :  { %v4165_v59 = vpop.eup %4164 }
 0x541   :  { %4170 = vrsqrt.f32 %v2320_v38  ;;  %v2404_v5 = vmul.f32 %v4165_v59, %v6568_v20  ;;  %v2403_v60 = vmul.f32 %v4165_v59, %v6569_v10 }
 0x542   :  { %v2247_v43 = vpop.xlane.xlu0 %2246 }
 0x543   :  { %v4167_v55 = vpop.eup %4166  ;;  %v2289_v41 = vmul.f32 0.00390625, %v2247_v43  ;;  %v2479_v62 = vmul.f32 %v6034_v24, %v2404_v5  ;;  %v2478_v27 = vmul.f32 %v6031_v54, %v2403_v60 }
 0x544   :  { %v2406_v58 = vmul.f32 %v4167_v55, %v6570_v47  ;;  %v2405_v17 = vmul.f32 %v4167_v55, %v6571_v35  ;;  %v6575_v35 = vld [vmem:[#allocation27_spill] sm:$0xff] }
 0x545   :  { %v2321_v40 = vadd.f32 1e-05, %v2289_v41  ;;  %v2250_v11 = vpop.xlane.xlu1 %2249  ;;  %v2554_v18 = vadd.f32 %v6043_v63, %v2479_v62  ;;  %v2553_v1 = vadd.f32 %v6052_v30, %v2478_v27 }
 0x546   :  { %v2481_v37 = vmul.f32 %v6034_v24, %v2406_v58  ;;  %v2480_v23 = vmul.f32 %v6031_v54, %v2405_v17  ;;  %v2290_v57 = vmul.f32 0.00390625, %v2250_v11  ;;  %v2169_v56 = vpop.xlane.xlu0 %2168 }
 0x547   :  { %4172 = vrsqrt.f32 %v2321_v40  ;;  %v2263_v49 = vmul.f32 0.00390625, %v2169_v56  ;;  %v2618_v42 = vmax.f32 %v2554_v18, 0.0  ;;  %v2617_v2 = vmax.f32 %v2553_v1, 0.0 }
 0x548   :  { %v2556_v26 = vadd.f32 %v6043_v63, %v2481_v37  ;;  %v4169_v52 = vpop.eup %4168  ;;  %v2322_v4 = vadd.f32 1e-05, %v2290_v57  ;;  %v2555_v8 = vadd.f32 %v6052_v30, %v2480_v23 }
 0x549   :  { %v2295_v13 = vadd.f32 1e-05, %v2263_v49  ;;  %v2172_v6 = vpop.xlane.xlu1 %2171  ;;  %v2408_v48 = vmul.f32 %v4169_v52, %v6572_v31  ;;  %v2407_v14 = vmul.f32 %v4169_v52, %v6573_v16  ;;  %v6578_v31 = vld [vmem:[#allocation28_spill] sm:$0xff] }
 0x54a   :  { %v2620_v36 = vmax.f32 %v2556_v26, 0.0  ;;  %4174 = vrsqrt.f32 %v2322_v4  ;;  %v2264_v33 = vmul.f32 0.00390625, %v2172_v6  ;;  %v2253_v21 = vpop.xlane.xlu0 %2252  ;;  %v2619_v9 = vmax.f32 %v2555_v8, 0.0  ;;  %v6576_v26 = vld [vmem:[#allocation33_spill] sm:$0xff]  ;;  %v6577_v4 = vld [vmem:[#allocation26_spill] sm:$0xff] }
 0x54b   :  { %v4171_v34 = vpop.eup %4170  ;;  %4176 = vrsqrt.f32 %v2295_v13  ;;  %v2291_v46 = vmul.f32 0.00390625, %v2253_v21  ;;  %v2483_v28 = vmul.f32 %v6034_v24, %v2408_v48  ;;  %v2482_v45 = vmul.f32 %v6031_v54, %v2407_v14 }
 0x54c   :  { %v2660_v61 = vpack.c.bf16 %v2620_v36, %v2618_v42  ;;  %v2410_v25 = vmul.f32 %v4171_v34, %v5958_v32  ;;  %v2296_v19 = vadd.f32 1e-05, %v2264_v33  ;;  %v2659_v7 = vpack.c.bf16 %v2619_v9, %v2617_v2 }
 0x54d   :  { %v2409_v50 = vmul.f32 %v4171_v34, %v6574_v22  ;;  %v2323_v51 = vadd.f32 1e-05, %v2291_v46  ;;  %v2256_v44 = vpop.xlane.xlu1 %2255  ;;  %v2558_v38 = vadd.f32 %v6043_v63, %v2483_v28  ;;  %v2557_v20 = vadd.f32 %v6052_v30, %v2482_v45  ;;  %v6580_v22 = vld [vmem:[#allocation32_spill] sm:$0xff] }
 0x54e   :  { %2924 = vmatprep.mubr.bf16.mxu1 %v2660_v61  ;;  %v2485_v15 = vmul.f32 %v6034_v24, %v2410_v25  ;;  %4178 = vrsqrt.f32 %v2296_v19  ;;  %v2292_v12 = vmul.f32 0.00390625, %v2256_v44  ;;  %v6579_v61 = vld [vmem:[#allocation34_spill] sm:$0xff] }
 0x54f   :  { %2925 = vmatmul.mubr.bf16.gmra.mrb[100].mxu1 %v2659_v7  ;;  %v2484_v32 = vmul.f32 %v6031_v54, %v2409_v50  ;;  %4180 = vrsqrt.f32 %v2323_v51  ;;  %v2622_v55 = vmax.f32 %v2558_v38, 0.0  ;;  %v2621_v41 = vmax.f32 %v2557_v20, 0.0 }
 0x550   :  { %v2560_v59 = vadd.f32 %v6043_v63, %v2485_v15  ;;  %v2324_v5 = vadd.f32 1e-05, %v2292_v12 }
 0x551   :  { %v2559_v10 = vadd.f32 %v6052_v30, %v2484_v32  ;;  %v4173_v60 = vpop.eup %4172 }
 0x552   :  { %v2624_v43 = vmax.f32 %v2560_v59, 0.0  ;;  %4182 = vrsqrt.f32 %v2324_v5  ;;  %v2175_v47 = vpop.xlane.xlu0 %2174  ;;  %v2412_v62 = vmul.f32 %v4173_v60, %v5974_v0  ;;  %v2411_v17 = vmul.f32 %v4173_v60, %v6575_v35 }
 0x553   :  { %v2623_v58 = vmax.f32 %v2559_v10, 0.0  ;;  %v2265_v27 = vmul.f32 0.00390625, %v2175_v47 }
 0x554   :  { %v2662_v40 = vpack.c.bf16 %v2624_v43, %v2622_v55  ;;  %v4175_v11 = vpop.eup %4174  ;;  %v2487_v18 = vmul.f32 %v6034_v24, %v2412_v62  ;;  %v2486_v23 = vmul.f32 %v6031_v54, %v2411_v17 }
 0x555   :  { %v2661_v37 = vpack.c.bf16 %v2623_v58, %v2621_v41  ;;  %v4177_v57 = vpop.eup %4176  ;;  %v2297_v56 = vadd.f32 1e-05, %v2265_v27  ;;  %v2178_v1 = vpop.xlane.xlu1 %2177  ;;  %v2414_v49 = vmul.f32 %v4175_v11, %v5990_v39  ;;  %v2413_v52 = vmul.f32 %v4175_v11, %v6576_v26  ;;  %v6581_v58 = vld [vmem:[#allocation35_spill] sm:$0xff]  ;;  %v6582_v27 = vld [vmem:[#allocation36_spill] sm:$0xff] }
 0x556   :  { %2932 = vmatprep.mubr.bf16.mxu1 %v2662_v40  ;;  %v2359_v0 = vmul.f32 %v4177_v57, %v6577_v4  ;;  %v2266_v42 = vmul.f32 0.00390625, %v2178_v1  ;;  %v2562_v8 = vadd.f32 %v6043_v63, %v2487_v18  ;;  %v2561_v13 = vadd.f32 %v6052_v30, %v2486_v23  ;;  %v6583_v23 = vld [vmem:[#allocation20_spill] sm:$0xff] }
 0x557   :  { %2933 = vmatmul.mubr.bf16.gmra.mrb[104].mxu1 %v2661_v37  ;;  %4184 = vrsqrt.f32 %v2297_v56  ;;  %v2489_v6 = vmul.f32 %v6034_v24, %v2414_v49  ;;  %v2488_v36 = vmul.f32 %v6031_v54, %v2413_v52  ;;  %v2360_v48 = vmul.f32 %v4177_v57, %v6578_v31 }
 0x558   :  { %v4179_v16 = vpop.eup %4178  ;;  %v2434_v39 = vmul.f32 %v6031_v54, %v2359_v0  ;;  %v2298_v14 = vadd.f32 1e-05, %v2266_v42  ;;  %v2626_v34 = vmax.f32 %v2562_v8, 0.0  ;;  %v2625_v33 = vmax.f32 %v2561_v13, 0.0  ;;  %v6584_v42 = vld [vmem:[#allocation17_spill] sm:$0xff]  ;;  %v6585_v13 = vld [vmem:[#allocation38_spill] sm:$0xff] }
 0x559   :  { %v4181_v21 = vpop.eup %4180  ;;  %v2361_v2 = vmul.f32 %v4179_v16, %v5981_v53  ;;  %v2564_v9 = vadd.f32 %v6043_v63, %v2489_v6  ;;  %v2563_v46 = vadd.f32 %v6052_v30, %v2488_v36  ;;  %v2362_v25 = vmul.f32 %v4179_v16, %v6579_v61 }
 0x55a   :  { %4186 = vrsqrt.f32 %v2298_v14  ;;  %v2259_v19 = vpop.xlane.xlu0 %2258  ;;  %v2435_v7 = vmul.f32 %v6034_v24, %v2360_v48  ;;  %v2509_v28 = vadd.f32 %v6052_v30, %v2434_v39  ;;  %v2416_v50 = vmul.f32 %v4181_v21, %v6580_v22 }
 0x55b   :  { %v2436_v51 = vmul.f32 %v6031_v54, %v2361_v2  ;;  %v2293_v44 = vmul.f32 0.00390625, %v2259_v19  ;;  %v2628_v15 = vmax.f32 %v2564_v9, 0.0  ;;  %v2627_v45 = vmax.f32 %v2563_v46, 0.0 }
 0x55c   :  { %v4183_v53 = vpop.eup %4182  ;;  %v2437_v12 = vmul.f32 %v6034_v24, %v2362_v25  ;;  %v2510_v38 = vadd.f32 %v6043_v63, %v2435_v7  ;;  %v2573_v32 = vmax.f32 %v2509_v28, 0.0  ;;  %v2491_v59 = vmul.f32 %v6034_v24, %v2416_v50 }
 0x55d   :  { %v2325_v20 = vadd.f32 1e-05, %v2293_v44  ;;  %v2262_v5 = vpop.xlane.xlu1 %2261  ;;  %v2664_v10 = vpack.c.bf16 %v2628_v15, %v2626_v34  ;;  %v2663_v60 = vpack.c.bf16 %v2627_v45, %v2625_v33  ;;  %v2511_v55 = vadd.f32 %v6052_v30, %v2436_v51  ;;  %v6586_v34 = vld [vmem:[#allocation18_spill] sm:$0xff]  ;;  %v6587_v51 = vld [vmem:[#allocation31_spill] sm:$0xff]  ;;  %v6588_v15 = vld [vmem:[#allocation25_spill] sm:$0xff] }
 0x55e   :  { %v2294_v43 = vmul.f32 0.00390625, %v2262_v5  ;;  %v2512_v41 = vadd.f32 %v6043_v63, %v2437_v12  ;;  %v2574_v47 = vmax.f32 %v2510_v38, 0.0  ;;  %v2418_v62 = vmul.f32 %v4183_v53, %v6581_v58 }
 0x55f   :  { %4188 = vrsqrt.f32 %v2325_v20  ;;  %2940 = vmatprep.mubr.bf16.mxu1 %v2664_v10  ;;  %v2575_v35 = vmax.f32 %v2511_v55, 0.0  ;;  %v2566_v17 = vadd.f32 %v6043_v63, %v2491_v59  ;;  %v2415_v40 = vmul.f32 %v4181_v21, %v6582_v27 }
 0x560   :  { %v2326_v11 = vadd.f32 1e-05, %v2294_v43  ;;  %2941 = vmatmul.mubr.bf16.gmra.mrb[108].mxu1 %v2663_v60  ;;  %v2576_v37 = vmax.f32 %v2512_v41, 0.0  ;;  %v2493_v18 = vmul.f32 %v6034_v24, %v2418_v62  ;;  %v2417_v57 = vmul.f32 %v4183_v53, %v6583_v23  ;;  %v6589_v43 = vld [vmem:[#allocation29_spill] sm:$0xff] }
 0x561   :  { %v4185_v56 = vpop.eup %4184  ;;  %v2637_v1 = vpack.c.bf16 %v2575_v35, %v2573_v32  ;;  %v2490_v49 = vmul.f32 %v6031_v54, %v2415_v40  ;;  %v2630_v31 = vmax.f32 %v2566_v17, 0.0 }
 0x562   :  { %4190 = vrsqrt.f32 %v2326_v11  ;;  %v2638_v26 = vpack.c.bf16 %v2576_v37, %v2574_v47  ;;  %v2568_v52 = vadd.f32 %v6043_v63, %v2493_v18  ;;  %v2492_v4 = vmul.f32 %v6031_v54, %v2417_v57 }
 0x563   :  { %v2565_v0 = vadd.f32 %v6052_v30, %v2490_v49  ;;  %v2364_v8 = vmul.f32 %v4185_v56, %v6584_v42  ;;  %v2363_v6 = vmul.f32 %v4185_v56, %v6585_v13 }
 0x564   :  { %v4187_v36 = vpop.eup %4186  ;;  %2836 = vmatprep.mubr.bf16.mxu0 %v2638_v26  ;;  %v2632_v48 = vmax.f32 %v2568_v52, 0.0  ;;  %v2567_v16 = vadd.f32 %v6052_v30, %v2492_v4 }
 0x565   :  { %2837 = vmatmul.mubr.bf16.vlgmr.msra.gmra.mrb[128].mxu0 %v2637_v1  ;;  %v2366_v39 = vmul.f32 %v4187_v36, %v6059_v3  ;;  %v2439_v14 = vmul.f32 %v6034_v24, %v2364_v8  ;;  %v2365_v33 = vmul.f32 %v4187_v36, %v6586_v34  ;;  %v2629_v2 = vmax.f32 %v2565_v0, 0.0 }
 0x566   :  { %v2666_v21 = vpack.c.bf16 %v2632_v48, %v2630_v31  ;;  %v2631_v9 = vmax.f32 %v2567_v16, 0.0  ;;  %v2438_v46 = vmul.f32 %v6031_v54, %v2363_v6 }
 0x567   :  { %v2441_v61 = vmul.f32 %v6034_v24, %v2366_v39  ;;  %v2514_v25 = vadd.f32 %v6043_v63, %v2439_v14  ;;  %v2440_v19 = vmul.f32 %v6031_v54, %v2365_v33 }
 0x568   :  { %2948 = vmatprep.mubr.bf16.mxu1 %v2666_v21  ;;  %v2665_v7 = vpack.c.bf16 %v2631_v9, %v2629_v2  ;;  %v2513_v28 = vadd.f32 %v6052_v30, %v2438_v46 }
 0x569   :  { %v4189_v3 = vpop.eup %4188  ;;  %v2516_v22 = vadd.f32 %v6043_v63, %v2441_v61  ;;  %v2515_v50 = vadd.f32 %v6052_v30, %v2440_v19  ;;  %v2578_v53 = vmax.f32 %v2514_v25, 0.0 }
 0x56a   :  { %2949 = vmatmul.mubr.bf16.gmra.mrb[112].mxu1 %v2665_v7  ;;  %v2420_v44 = vmul.f32 %v4189_v3, %v6587_v51  ;;  %v2419_v45 = vmul.f32 %v4189_v3, %v6588_v15  ;;  %v2577_v38 = vmax.f32 %v2513_v28, 0.0 }
 0x56b   :  { %v2580_v12 = vmax.f32 %v2516_v22, 0.0  ;;  %v2579_v32 = vmax.f32 %v2515_v50, 0.0 }
 0x56c   :  { %v4191_v59 = vpop.eup %4190  ;;  %v2495_v20 = vmul.f32 %v6034_v24, %v2420_v44  ;;  %v2494_v5 = vmul.f32 %v6031_v54, %v2419_v45 }
 0x56d   :  { %v2640_v10 = vpack.c.bf16 %v2580_v12, %v2578_v53  ;;  %v2639_v60 = vpack.c.bf16 %v2579_v32, %v2577_v38  ;;  %v2422_v55 = vmul.f32 %v4191_v59, %v6089_v29  ;;  %v2421_v41 = vmul.f32 %v4191_v59, %v6589_v43 }
 0x56e   :  { %v2570_v58 = vadd.f32 %v6043_v63, %v2495_v20  ;;  %v2569_v35 = vadd.f32 %v6052_v30, %v2494_v5 }
 0x56f   :  { %2844 = vmatprep.mubr.bf16.mxu0 %v2640_v10  ;;  %v2497_v47 = vmul.f32 %v6034_v24, %v2422_v55  ;;  %v2496_v62 = vmul.f32 %v6031_v54, %v2421_v41  ;;  %v6274_v54 = vld [vmem:[#allocation10] ss:$0 sm:$0xff] }
 0x570   :  { %2845 = vmatmul.mubr.bf16.gmra.mrb[132].mxu0 %v2639_v60  ;;  %v2634_v40 = vmax.f32 %v2570_v58, 0.0  ;;  %v2633_v37 = vmax.f32 %v2569_v35, 0.0 }
 0x571   :  { %v2572_v17 = vadd.f32 %v6043_v63, %v2497_v47  ;;  %v2571_v27 = vadd.f32 %v6052_v30, %v2496_v62 }
 0x573   :  { %v2636_v11 = vmax.f32 %v2572_v17, 0.0  ;;  %v2635_v29 = vmax.f32 %v2571_v27, 0.0 }
 0x575   :  { %v2668_v18 = vpack.c.bf16 %v2636_v11, %v2634_v40  ;;  %v2667_v23 = vpack.c.bf16 %v2635_v29, %v2633_v37 }
 0x577   :  { %2956 = vmatprep.mubr.bf16.mxu1 %v2668_v18 }
 0x578   :  { %2957 = vmatmul.mubr.bf16.gmra.mrb[116].mxu1 %v2667_v23 }
 0x5a1   :  { %v3847_v24 = vpop.f32.mrb[64].mxu1 }
 0x5a2   :  { %v3848_v57 = vpop.f32.mrb[65].mxu1 }
 0x5a3   :  { %v3849_v56 = vadd.f32 %v3848_v57, %v3847_v24  ;;  %v3850_v1 = vpop.f32.mrb[66].mxu1 }
 0x5a4   :  { %v3851_v49 = vpop.f32.mrb[67].mxu1 }
 0x5a5   :  { %v3852_v26 = vadd.f32 %v3851_v49, %v3850_v1  ;;  %v2855_v63 = vadd.f32 %v3849_v56, %v6274_v54 }
 0x5a7   :  { %v2858_v30 = vadd.f32 %v3852_v26, %v6274_v54 }
 0x5a9   :  { %v3530_v52 = vpack.c.bf16 %v2858_v30, %v2855_v63 }
 0x5ab   :  { %3678 = vst [vmem:[#allocation11 + $0x10] sm:$0xff] %v3530_v52   ;;  %v3853_v4 = vpop.f32.mrb[68].mxu1 }
 0x5ac   :  { %v3854_v0 = vpop.f32.mrb[69].mxu1 }
 0x5ad   :  { %v3855_v42 = vadd.f32 %v3854_v0, %v3853_v4  ;;  %v3856_v8 = vpop.f32.mrb[70].mxu1 }
 0x5ae   :  { %v3857_v13 = vpop.f32.mrb[71].mxu1 }
 0x5af   :  { %v3858_v6 = vadd.f32 %v3857_v13, %v3856_v8  ;;  %v2863_v36 = vadd.f32 %v3855_v42, %v6274_v54 }
 0x5b1   :  { %v2866_v31 = vadd.f32 %v3858_v6, %v6274_v54 }
 0x5b3   :  { %v3535_v48 = vpack.c.bf16 %v2866_v31, %v2863_v36  ;;  %v3859_v16 = vpop.f32.mrb[72].mxu1 }
 0x5b4   :  { %v3860_v39 = vpop.f32.mrb[73].mxu1 }
 0x5b5   :  { %3679 = vst [vmem:[#allocation11 + $0x18] sm:$0xff] %v3535_v48   ;;  %v3861_v14 = vadd.f32 %v3860_v39, %v3859_v16  ;;  %v3862_v34 = vpop.f32.mrb[74].mxu1 }
 0x5b6   :  { %v3863_v33 = vpop.f32.mrb[75].mxu1 }
 0x5b7   :  { %v3864_v21 = vadd.f32 %v3863_v33, %v3862_v34  ;;  %v2871_v2 = vadd.f32 %v3861_v14, %v6274_v54 }
 0x5b9   :  { %v2874_v9 = vadd.f32 %v3864_v21, %v6274_v54 }
 0x5bb   :  { %v3540_v46 = vpack.c.bf16 %v2874_v9, %v2871_v2  ;;  %v3865_v61 = vpop.f32.mrb[76].mxu1 }
 0x5bc   :  { %v3866_v25 = vpop.f32.mrb[77].mxu1 }
 0x5bd   :  { %3680 = vst [vmem:[#allocation11 + $0x20] sm:$0xff] %v3540_v46   ;;  %v3867_v19 = vadd.f32 %v3866_v25, %v3865_v61  ;;  %v3868_v7 = vpop.f32.mrb[78].mxu1 }
 0x5be   :  { %v3869_v28 = vpop.f32.mrb[79].mxu1 }
 0x5bf   :  { %v3870_v3 = vadd.f32 %v3869_v28, %v3868_v7  ;;  %v2879_v22 = vadd.f32 %v3867_v19, %v6274_v54 }
 0x5c1   :  { %v2882_v50 = vadd.f32 %v3870_v3, %v6274_v54 }
 0x5c3   :  { %v3545_v51 = vpack.c.bf16 %v2882_v50, %v2879_v22  ;;  %v3871_v44 = vpop.f32.mrb[80].mxu1 }
 0x5c4   :  { %v3872_v15 = vpop.f32.mrb[81].mxu1 }
 0x5c5   :  { %3681 = vst [vmem:[#allocation11 + $0x28] sm:$0xff] %v3545_v51   ;;  %v3873_v45 = vadd.f32 %v3872_v15, %v3871_v44  ;;  %v3874_v53 = vpop.f32.mrb[82].mxu1 }
 0x5c6   :  { %v3875_v12 = vpop.f32.mrb[83].mxu1 }
 0x5c7   :  { %v3876_v38 = vadd.f32 %v3875_v12, %v3874_v53  ;;  %v2887_v32 = vadd.f32 %v3873_v45, %v6274_v54 }
 0x5c9   :  { %v2890_v59 = vadd.f32 %v3876_v38, %v6274_v54 }
 0x5cb   :  { %v3550_v20 = vpack.c.bf16 %v2890_v59, %v2887_v32  ;;  %v3877_v5 = vpop.f32.mrb[84].mxu1 }
 0x5cc   :  { %v3878_v10 = vpop.f32.mrb[85].mxu1 }
 0x5cd   :  { %3682 = vst [vmem:[#allocation11 + $0x30] sm:$0xff] %v3550_v20   ;;  %v3879_v60 = vadd.f32 %v3878_v10, %v3877_v5  ;;  %v3880_v55 = vpop.f32.mrb[86].mxu1 }
 0x5ce   :  { %v3881_v43 = vpop.f32.mrb[87].mxu1 }
 0x5cf   :  { %v3882_v41 = vadd.f32 %v3881_v43, %v3880_v55  ;;  %v2895_v47 = vadd.f32 %v3879_v60, %v6274_v54 }
 0x5d1   :  { %v2898_v58 = vadd.f32 %v3882_v41, %v6274_v54 }
 0x5d3   :  { %v3555_v62 = vpack.c.bf16 %v2898_v58, %v2895_v47  ;;  %v3883_v35 = vpop.f32.mrb[88].mxu1 }
 0x5d4   :  { %v3884_v17 = vpop.f32.mrb[89].mxu1 }
 0x5d5   :  { %3683 = vst [vmem:[#allocation11 + $0x38] sm:$0xff] %v3555_v62   ;;  %v3885_v27 = vadd.f32 %v3884_v17, %v3883_v35  ;;  %v3886_v40 = vpop.f32.mrb[90].mxu1 }
 0x5d6   :  { %v3887_v11 = vpop.f32.mrb[91].mxu1 }
 0x5d7   :  { %v3888_v37 = vadd.f32 %v3887_v11, %v3886_v40  ;;  %v2903_v29 = vadd.f32 %v3885_v27, %v6274_v54 }
 0x5d9   :  { %v2906_v18 = vadd.f32 %v3888_v37, %v6274_v54 }
 0x5db   :  { %v3560_v23 = vpack.c.bf16 %v2906_v18, %v2903_v29  ;;  %v3889_v24 = vpop.f32.mrb[92].mxu1 }
 0x5dc   :  { %v3890_v57 = vpop.f32.mrb[93].mxu1 }
 0x5dd   :  { %3684 = vst [vmem:[#allocation11 + $0x40] sm:$0xff] %v3560_v23   ;;  %v3891_v56 = vadd.f32 %v3890_v57, %v3889_v24  ;;  %v3892_v1 = vpop.f32.mrb[94].mxu1 }
 0x5de   :  { %v3893_v49 = vpop.f32.mrb[95].mxu1 }
 0x5df   :  { %v3894_v26 = vadd.f32 %v3893_v49, %v3892_v1  ;;  %v2911_v63 = vadd.f32 %v3891_v56, %v6274_v54 }
 0x5e1   :  { %v2914_v30 = vadd.f32 %v3894_v26, %v6274_v54 }
 0x5e3   :  { %v3565_v52 = vpack.c.bf16 %v2914_v30, %v2911_v63  ;;  %v3895_v4 = vpop.f32.mrb[96].mxu1 }
 0x5e4   :  { %v3896_v0 = vpop.f32.mrb[97].mxu1 }
 0x5e5   :  { %3685 = vst [vmem:[#allocation11 + $0x48] sm:$0xff] %v3565_v52   ;;  %v3897_v42 = vadd.f32 %v3896_v0, %v3895_v4  ;;  %v3898_v8 = vpop.f32.mrb[98].mxu1 }
 0x5e6   :  { %v3899_v13 = vpop.f32.mrb[99].mxu1 }
 0x5e7   :  { %v3900_v6 = vadd.f32 %v3899_v13, %v3898_v8  ;;  %v2919_v36 = vadd.f32 %v3897_v42, %v6274_v54 }
 0x5e9   :  { %v2922_v31 = vadd.f32 %v3900_v6, %v6274_v54 }
 0x5eb   :  { %v3570_v48 = vpack.c.bf16 %v2922_v31, %v2919_v36 }
 0x5ed   :  { %3686 = vst [vmem:[#allocation11 + $0x50] sm:$0xff] %v3570_v48  }
 0x622   :  { %v3901_v16 = vpop.f32.mrb[100].mxu1 }
 0x623   :  { %v3902_v39 = vpop.f32.mrb[101].mxu1 }
 0x624   :  { %v3903_v14 = vadd.f32 %v3902_v39, %v3901_v16  ;;  %v3904_v34 = vpop.f32.mrb[102].mxu1 }
 0x625   :  { %v3905_v33 = vpop.f32.mrb[103].mxu1 }
 0x626   :  { %v3906_v21 = vadd.f32 %v3905_v33, %v3904_v34  ;;  %v2927_v2 = vadd.f32 %v3903_v14, %v6274_v54 }
 0x628   :  { %v2930_v9 = vadd.f32 %v3906_v21, %v6274_v54 }
 0x62a   :  { %v3575_v46 = vpack.c.bf16 %v2930_v9, %v2927_v2  ;;  %v3907_v61 = vpop.f32.mrb[104].mxu1 }
 0x62b   :  { %v3908_v25 = vpop.f32.mrb[105].mxu1 }
 0x62c   :  { %3687 = vst [vmem:[#allocation11 + $0x58] sm:$0xff] %v3575_v46   ;;  %v3909_v19 = vadd.f32 %v3908_v25, %v3907_v61  ;;  %v3910_v7 = vpop.f32.mrb[106].mxu1 }
 0x62d   :  { %v3911_v28 = vpop.f32.mrb[107].mxu1 }
 0x62e   :  { %v3912_v3 = vadd.f32 %v3911_v28, %v3910_v7  ;;  %v2935_v22 = vadd.f32 %v3909_v19, %v6274_v54 }
 0x630   :  { %v2938_v50 = vadd.f32 %v3912_v3, %v6274_v54 }
 0x632   :  { %v3580_v51 = vpack.c.bf16 %v2938_v50, %v2935_v22 }
 0x633   :  { %v3913_v44 = vpop.f32.mrb[108].mxu1 }
 0x634   :  { %3688 = vst [vmem:[#allocation11 + $0x60] sm:$0xff] %v3580_v51   ;;  %v3914_v15 = vpop.f32.mrb[109].mxu1 }
 0x635   :  { %v3915_v45 = vadd.f32 %v3914_v15, %v3913_v44  ;;  %v3916_v53 = vpop.f32.mrb[110].mxu1 }
 0x636   :  { %v3917_v12 = vpop.f32.mrb[111].mxu1 }
 0x637   :  { %v3918_v38 = vadd.f32 %v3917_v12, %v3916_v53  ;;  %v2943_v59 = vadd.f32 %v3915_v45, %v6274_v54 }
 0x638   :  { %v3835_v32 = vpop.f32.mrb[128].mxu0 }
 0x639   :  { %v2946_v20 = vadd.f32 %v3918_v38, %v6274_v54  ;;  %v3836_v5 = vpop.f32.mrb[129].mxu0 }
 0x63a   :  { %v3837_v10 = vadd.f32 %v3836_v5, %v3835_v32  ;;  %v3838_v60 = vpop.f32.mrb[130].mxu0 }
 0x63b   :  { %v3585_v55 = vpack.c.bf16 %v2946_v20, %v2943_v59  ;;  %v3839_v43 = vpop.f32.mrb[131].mxu0 }
 0x63c   :  { %v3840_v41 = vadd.f32 %v3839_v43, %v3838_v60  ;;  %v2839_v58 = vadd.f32 %v3837_v10, %v6274_v54 }
 0x63d   :  { %3689 = vst [vmem:[#allocation11 + $0x68] sm:$0xff] %v3585_v55   ;;  %v3919_v47 = vpop.f32.mrb[112].mxu1 }
 0x63e   :  { %v2842_v62 = vadd.f32 %v3840_v41, %v6274_v54  ;;  %v3920_v35 = vpop.f32.mrb[113].mxu1 }
 0x63f   :  { %v3921_v17 = vadd.f32 %v3920_v35, %v3919_v47  ;;  %v3922_v27 = vpop.f32.mrb[114].mxu1 }
 0x640   :  { %v3520_v40 = vpack.c.bf16 %v2842_v62, %v2839_v58  ;;  %v3923_v11 = vpop.f32.mrb[115].mxu1 }
 0x641   :  { %v3924_v37 = vadd.f32 %v3923_v11, %v3922_v27  ;;  %v2951_v29 = vadd.f32 %v3921_v17, %v6274_v54 }
 0x642   :  { %3521 = vst [vmem:[#allocation11] sm:$0xff] %v3520_v40  }
 0x643   :  { %v2954_v18 = vadd.f32 %v3924_v37, %v6274_v54  ;;  %v3841_v23 = vpop.f32.mrb[132].mxu0 }
 0x644   :  { %v3842_v24 = vpop.f32.mrb[133].mxu0 }
 0x645   :  { %v3590_v57 = vpack.c.bf16 %v2954_v18, %v2951_v29  ;;  %v3843_v56 = vadd.f32 %v3842_v24, %v3841_v23  ;;  %v3844_v1 = vpop.f32.mrb[134].mxu0 }
 0x646   :  { %v3845_v49 = vpop.f32.mrb[135].mxu0 }
 0x647   :  { %3690 = vst [vmem:[#allocation11 + $0x70] sm:$0xff] %v3590_v57   ;;  %v3846_v26 = vadd.f32 %v3845_v49, %v3844_v1  ;;  %v2847_v63 = vadd.f32 %v3843_v56, %v6274_v54 }
 0x649   :  { %v2850_v30 = vadd.f32 %v3846_v26, %v6274_v54 }
 0x64b   :  { %v3525_v52 = vpack.c.bf16 %v2850_v30, %v2847_v63  ;;  %v3925_v4 = vpop.f32.mrb[116].mxu1 }
 0x64c   :  { %v3926_v0 = vpop.f32.mrb[117].mxu1 }
 0x64d   :  { %3677 = vst [vmem:[#allocation11 + $0x8] sm:$0xff] %v3525_v52   ;;  %v3927_v42 = vadd.f32 %v3926_v0, %v3925_v4  ;;  %v3928_v8 = vpop.f32.mrb[118].mxu1 }
 0x64e   :  { %v3929_v13 = vpop.f32.mrb[119].mxu1 }
 0x64f   :  { %v3930_v6 = vadd.f32 %v3929_v13, %v3928_v8  ;;  %v2959_v36 = vadd.f32 %v3927_v42, %v6274_v54 }
 0x651   :  { %v2962_v31 = vadd.f32 %v3930_v6, %v6274_v54 }
 0x653   :  { %v3595_v48 = vpack.c.bf16 %v2962_v31, %v2959_v36 }
 0x655   :  { %3691 = vst [vmem:[#allocation11 + $0x78] sm:$0xff] %v3595_v48  }
 0x656   :  { %4313 = shalt.err (!%p4310_p2)
}
 0x657   :  { %s4314_s17 = scalar_lea.hbm %s6334_s11, 2048 }
 0x658   :  { %p4315_p3 = scmp.ne.s32.totalorder %s6334_s11, %s4314_s17  ;;  %p4318_p4 = scmp.lt.u32.totalorder %s4314_s17, %s6334_s11 }
 0x65a   :  { %p4320_p5 = pnand %p4318_p4, %p4315_p3 }
 0x65c   :  { %4323 = shalt.err (!%p4320_p5)
}
 0x65d   :  { %3296 = dma.vmem_to_hbm [thread:$0]  %s3291_s8, 2048, %s6334_s11, [#allocation4], %s4336_s1, %s4336_s1, %s4337_s22  }
 0x65e   :  { %4330 = dma.done.wait [#allocation4], 2048  }
 0x65f   :  { %4331 = vsyncadd [#allocation4], 4294965248 }
 0x660   :  { %3304 = vsyncpa [#allocation3], 1 }
 0x661   :  { %3305 = vsyncpa [#allocation6], 1 }
 0x662   :  { %3306 = vsyncpa [#allocation9], 1 }
 0x663   :  { %3307 = vsyncpa [#allocation4], 1 }

</bundles_post_ra>
